<compile_context>
chip_gen: v7x
topology: tpu7x:2x2x1
jax: 0.10.0
libtpu: 0.0.40
codegen_flags: <defaults>
</compile_context>

<pallas_src>
import functools

import jax
import jax.numpy as jnp
import numpy as np
from jax import lax
from jax.experimental import pallas as pl
from jax.experimental.pallas import tpu as pltpu


# ----------------------------- fused Pallas kernel ----------------------------

def _make_fused_lstm_kernel(T, B, H, L, Din, O):
    """Build the fused kernel. Ref order:
       x_tm (T*B, Din), h0 (L,B,H), c0 (L,B,H),
       [wih_l (Din_l,4H), whh_l (H,4H), b_l (1,4H)] * L,
       fc_w (O,H), fc_b (1,O),
       out (B, T*O), h_n (L,B,H), c_n (L,B,H)
    """

    def kernel(*refs):
        x_ref, h0_ref, c0_ref = refs[0], refs[1], refs[2]
        w_refs = refs[3:3 + 3 * L]
        fcw_ref, fcb_ref = refs[3 + 3 * L], refs[4 + 3 * L]
        out_ref, hn_ref, cn_ref = refs[5 + 3 * L], refs[6 + 3 * L], refs[7 + 3 * L]

        # Per-layer recurrent state carried as values (no HBM traffic).
        h = [h0_ref[l] for l in range(L)]
        c = [c0_ref[l] for l in range(L)]
        cols = [None] * T  # (B, O) head column per time step

        # Hoisted layer-0 input projection only when Din > 1 (real MXU matmul).
        # For Din == 1 it is a per-step VPU broadcast (see wavefront loop).
        if Din > 1:
            gx0_all = jnp.dot(x_ref[...], w_refs[0][...],
                              preferred_element_type=jnp.float32) + w_refs[2][...]

        # ----------------- wavefront over (layer, time) cells -----------------
        for s in range(T + L - 1):
            h_in = list(h)  # snapshot: all cells in this step are independent
            for l in range(L):
                t = s - l
                if not (0 <= t < T):
                    continue
                wih_ref = w_refs[3 * l + 0]
                whh_ref = w_refs[3 * l + 1]
                b_ref = w_refs[3 * l + 2]

                # Input projection for this cell.
                if l == 0:
                    if Din == 1:
                        # (B,1) * (1,4H) broadcast: VPU outer product, no K=1 matmul.
                        x_t = x_ref[t * B:(t + 1) * B, :]
                        gx = x_t * wih_ref[...] + b_ref[...]
                    else:
                        gx = gx0_all[t * B:(t + 1) * B, :]
                else:
                    gx = jnp.dot(h_in[l - 1], wih_ref[...],
                                 preferred_element_type=jnp.float32) + b_ref[...]

                # Keep the dot adjacent to the add (MRB-friendly accumulate on v7x).
                gates = gx + jnp.dot(h[l], whh_ref[...],
                                     preferred_element_type=jnp.float32)   # (B, 4H)

                # One EUP pass each over the full (B, 4H) tile; slice afterwards.
                sig = jax.nn.sigmoid(gates)
                th = jnp.tanh(gates)
                i_g = sig[:, 0 * H:1 * H]
                f_g = sig[:, 1 * H:2 * H]
                g_g = th[:, 2 * H:3 * H]
                o_g = sig[:, 3 * H:4 * H]
                c_new = f_g * c[l] + i_g * g_g
                h_new = o_g * jnp.tanh(c_new)
                c[l] = c_new
                h[l] = h_new

                if l == L - 1:
                    # Fused Linear head folded into the last layer's step.
                    if O == 1:
                        col = jnp.sum(h_new * fcw_ref[...], axis=-1,
                                      keepdims=True) + fcb_ref[...]         # (B, 1)
                    else:
                        col = jnp.dot(h_new, jnp.transpose(fcw_ref[...]),
                                      preferred_element_type=jnp.float32) + fcb_ref[...]
                    cols[t] = col

        # Finalize: final states + one store of the whole (B, T*O) head tile.
        for l in range(L):
            hn_ref[l] = h[l]
            cn_ref[l] = c[l]
        out_ref[...] = jnp.concatenate(cols, axis=1)

    return kernel


# ----------------------------- wrapper -----------------------------------------

@functools.partial(jax.jit, static_argnames=("hidden_dim", "n_layers"))
def lstm_forward(input_seq, h0, c0, params, *, hidden_dim, n_layers):
    """Mirrors LSTM.forward(input_seq, hidden) in eval mode.

    input_seq: (B, T, input_size)  [batch_first]
    h0, c0   : (n_layers, B, hidden_dim)
    returns  : out (B*T, output_size), (h_n, c_n)
    """
    B, T, Din = input_seq.shape
    H, L = hidden_dim, n_layers
    O = params["fc_w"].shape[0]

    # batch_first -> time-major flat outside the kernel (tiny XLA transpose).
    x_tm = jnp.swapaxes(input_seq, 0, 1).reshape(T * B, Din)   # row t*B + b

    args = [x_tm, h0, c0]
    for l in range(L):
        args += [params[f"l{l}_wih_t"], params[f"l{l}_whh_t"], params[f"l{l}_b"]]
    args += [params["fc_w"], params["fc_b"]]

    vmem = pl.BlockSpec(memory_space=pltpu.MemorySpace.VMEM)

    # Advisory cost hint (recurrence matmuls dominate).
    flops = 2 * B * H * 4 * H * T * (2 * L - 1) + 2 * T * B * 4 * H + 2 * T * B * H * O
    transcendentals = T * L * B * (4 * H + 4 * H + H)
    out_elems = B * T * O + 2 * L * B * H
    bytes_accessed = 4 * (sum(int(np.prod(a.shape)) for a in args) + out_elems)

    out_bt, h_n, c_n = pl.pallas_call(
        _make_fused_lstm_kernel(T, B, H, L, Din, O),
        out_shape=(jax.ShapeDtypeStruct((B, T * O), jnp.float32),
                   jax.ShapeDtypeStruct((L, B, H), jnp.float32),
                   jax.ShapeDtypeStruct((L, B, H), jnp.float32)),
        in_specs=[vmem] * len(args),
        out_specs=(vmem, vmem, vmem),
        cost_estimate=pl.CostEstimate(flops=flops,
                                      transcendentals=transcendentals,
                                      bytes_accessed=bytes_accessed),
    )(*args)

    # (B, T*O) -> (B*T, O): row b*T + t, matching PyTorch's .view(-1, H) @ fc order.
    out = out_bt.reshape(B * T, O)
    return out, (h_n, c_n)


# ----------------------------- reference (pure JAX) ----------------------------

def _lstm_layer_ref(x_bt, h0, c0, wih_t, whh_t, b):
    H = h0.shape[-1]

    def step(carry, x_t):
        h, c = carry
        g = x_t @ wih_t + h @ whh_t + b
        i = jax.nn.sigmoid(g[:, 0 * H:1 * H])
        f = jax.nn.sigmoid(g[:, 1 * H:2 * H])
        gg = jnp.tanh(g[:, 2 * H:3 * H])
        o = jax.nn.sigmoid(g[:, 3 * H:4 * H])
        c = f * c + i * gg
        h = o * jnp.tanh(c)
        return (h, c), h

    (h_n, c_n), ys = lax.scan(step, (h0, c0), jnp.swapaxes(x_bt, 0, 1))
    return jnp.swapaxes(ys, 0, 1), h_n, c_n


def lstm_forward_ref(input_seq, h0, c0, params, *, hidden_dim, n_layers):
    x = input_seq
    hs, cs = [], []
    for l in range(n_layers):
        x, h, c = _lstm_layer_ref(x, h0[l], c0[l],
                                  params[f"l{l}_wih_t"], params[f"l{l}_whh_t"],
                                  params[f"l{l}_b"])
        hs.append(h)
        cs.append(c)
    flat = x.reshape(-1, hidden_dim)
    out = flat @ params["fc_w"].T + params["fc_b"]
    return out, (jnp.stack(hs), jnp.stack(cs))


# ----------------------------- main ---------------------------------------------

if __name__ == "__main__":
    # Module config (matches the Kaggle script's globals: hidden_dim=32, n_layers=3)
    input_size, hidden_dim, n_layers, output_size = 1, 32, 3, 1
    batch, seq_len = 8, 8

    key = jax.random.PRNGKey(0)
    k = 1.0 / np.sqrt(hidden_dim)

    params = {}
    for l in range(n_layers):
        d_in = input_size if l == 0 else hidden_dim
        key, k1, k2, k3, k4 = jax.random.split(key, 5)
        w_ih = jax.random.uniform(k1, (4 * hidden_dim, d_in), jnp.float32, -k, k)
        w_hh = jax.random.uniform(k2, (4 * hidden_dim, hidden_dim), jnp.float32, -k, k)
        b_ih = jax.random.uniform(k3, (4 * hidden_dim,), jnp.float32, -k, k)
        b_hh = jax.random.uniform(k4, (4 * hidden_dim,), jnp.float32, -k, k)
        params[f"l{l}_wih_t"] = w_ih.T                      # (d_in, 4H)
        params[f"l{l}_whh_t"] = w_hh.T                      # (H, 4H)
        params[f"l{l}_b"] = (b_ih + b_hh).reshape(1, -1)    # (1, 4H)

    key, k5, k6, k7 = jax.random.split(key, 4)
    fc_w = jax.random.uniform(k5, (output_size, hidden_dim), jnp.float32, -k, k)
    fc_b = jax.random.uniform(k6, (output_size,), jnp.float32, -k, k)
    params["fc_w"] = fc_w                                   # (O, H) row for VPU head
    params["fc_b"] = fc_b.reshape(1, -1)                    # (1, O)

    x = jax.random.normal(k7, (batch, seq_len, input_size), jnp.float32)
    h0 = jnp.zeros((n_layers, batch, hidden_dim), jnp.float32)   # init_hidden()
    c0 = jnp.zeros((n_layers, batch, hidden_dim), jnp.float32)

    out, (h_n, c_n) = lstm_forward(x, h0, c0, params,
                                   hidden_dim=hidden_dim, n_layers=n_layers)
    jax.block_until_ready((out, h_n, c_n))

    out_r, (h_r, c_r) = lstm_forward_ref(x, h0, c0, params,
                                         hidden_dim=hidden_dim, n_layers=n_layers)
    np.testing.assert_allclose(np.asarray(out), np.asarray(out_r), atol=2e-5, rtol=2e-5)
    np.testing.assert_allclose(np.asarray(h_n), np.asarray(h_r), atol=2e-5, rtol=2e-5)
    np.testing.assert_allclose(np.asarray(c_n), np.asarray(c_r), atol=2e-5, rtol=2e-5)

    assert out.shape == (batch * seq_len, output_size)
    assert h_n.shape == (n_layers, batch, hidden_dim)
    assert c_n.shape == (n_layers, batch, hidden_dim)
    print("KERNEL_OK")
</pallas_src>

<mosaic_0001>
module attributes {stable_mosaic.version = 11 : i64} {
  func.func @kernel(%arg0: memref<64x1xf32, #tpu.memory_space<vmem>>, %arg1: memref<3x8x32xf32, #tpu.memory_space<vmem>>, %arg2: memref<3x8x32xf32, #tpu.memory_space<vmem>>, %arg3: memref<1x128xf32, #tpu.memory_space<vmem>>, %arg4: memref<32x128xf32, #tpu.memory_space<vmem>>, %arg5: memref<1x128xf32, #tpu.memory_space<vmem>>, %arg6: memref<32x128xf32, #tpu.memory_space<vmem>>, %arg7: memref<32x128xf32, #tpu.memory_space<vmem>>, %arg8: memref<1x128xf32, #tpu.memory_space<vmem>>, %arg9: memref<32x128xf32, #tpu.memory_space<vmem>>, %arg10: memref<32x128xf32, #tpu.memory_space<vmem>>, %arg11: memref<1x128xf32, #tpu.memory_space<vmem>>, %arg12: memref<1x32xf32, #tpu.memory_space<vmem>>, %arg13: memref<1x1xf32, #tpu.memory_space<vmem>>, %arg14: memref<8x8xf32, #tpu.memory_space<vmem>>, %arg15: memref<3x8x32xf32, #tpu.memory_space<vmem>>, %arg16: memref<3x8x32xf32, #tpu.memory_space<vmem>>) attributes {dimension_semantics = [], scalar_prefetch = 0 : i64, scratch_operands = 0 : i64, tpu.core_type = #tpu.core_type<tc>} {
    %c0 = arith.constant 0 : index
    %c0_0 = arith.constant 0 : index
    %c0_1 = arith.constant 0 : index
    %0 = vector.load %arg1[%c0, %c0_0, %c0_1] : memref<3x8x32xf32, #tpu.memory_space<vmem>>, vector<1x8x32xf32>
    %1 = vector.shape_cast %0 : vector<1x8x32xf32> to vector<8x32xf32>
    %c1 = arith.constant 1 : index
    %c0_2 = arith.constant 0 : index
    %c0_3 = arith.constant 0 : index
    %2 = vector.load %arg1[%c1, %c0_2, %c0_3] : memref<3x8x32xf32, #tpu.memory_space<vmem>>, vector<1x8x32xf32>
    %3 = vector.shape_cast %2 : vector<1x8x32xf32> to vector<8x32xf32>
    %c2 = arith.constant 2 : index
    %c0_4 = arith.constant 0 : index
    %c0_5 = arith.constant 0 : index
    %4 = vector.load %arg1[%c2, %c0_4, %c0_5] : memref<3x8x32xf32, #tpu.memory_space<vmem>>, vector<1x8x32xf32>
    %5 = vector.shape_cast %4 : vector<1x8x32xf32> to vector<8x32xf32>
    %c0_6 = arith.constant 0 : index
    %c0_7 = arith.constant 0 : index
    %c0_8 = arith.constant 0 : index
    %6 = vector.load %arg2[%c0_6, %c0_7, %c0_8] : memref<3x8x32xf32, #tpu.memory_space<vmem>>, vector<1x8x32xf32>
    %7 = vector.shape_cast %6 : vector<1x8x32xf32> to vector<8x32xf32>
    %c1_9 = arith.constant 1 : index
    %c0_10 = arith.constant 0 : index
    %c0_11 = arith.constant 0 : index
    %8 = vector.load %arg2[%c1_9, %c0_10, %c0_11] : memref<3x8x32xf32, #tpu.memory_space<vmem>>, vector<1x8x32xf32>
    %9 = vector.shape_cast %8 : vector<1x8x32xf32> to vector<8x32xf32>
    %c2_12 = arith.constant 2 : index
    %c0_13 = arith.constant 0 : index
    %c0_14 = arith.constant 0 : index
    %10 = vector.load %arg2[%c2_12, %c0_13, %c0_14] : memref<3x8x32xf32, #tpu.memory_space<vmem>>, vector<1x8x32xf32>
    %11 = vector.shape_cast %10 : vector<1x8x32xf32> to vector<8x32xf32>
    %c0_15 = arith.constant 0 : index
    %c0_16 = arith.constant 0 : index
    %12 = vector.load %arg0[%c0_15, %c0_16] : memref<64x1xf32, #tpu.memory_space<vmem>>, vector<8x1xf32>
    %c0_17 = arith.constant 0 : index
    %c0_18 = arith.constant 0 : index
    %13 = vector.load %arg3[%c0_17, %c0_18] : memref<1x128xf32, #tpu.memory_space<vmem>>, vector<1x128xf32>
    %14 = vector.broadcast %12 : vector<8x1xf32> to vector<8x128xf32>
    %15 = vector.broadcast %13 : vector<1x128xf32> to vector<8x128xf32>
    %16 = arith.mulf %14, %15 : vector<8x128xf32>
    %c0_19 = arith.constant 0 : index
    %c0_20 = arith.constant 0 : index
    %17 = vector.load %arg5[%c0_19, %c0_20] : memref<1x128xf32, #tpu.memory_space<vmem>>, vector<1x128xf32>
    %18 = vector.broadcast %17 : vector<1x128xf32> to vector<8x128xf32>
    %19 = arith.addf %16, %18 : vector<8x128xf32>
    %c0_21 = arith.constant 0 : index
    %c0_22 = arith.constant 0 : index
    %20 = vector.load %arg4[%c0_21, %c0_22] : memref<32x128xf32, #tpu.memory_space<vmem>>, vector<32x128xf32>
    %cst = arith.constant dense<0.000000e+00> : vector<8x128xf32>
    %21 = tpu.matmul %1, %20, %cst {dimension_numbers = #tpu.dot_dimension_numbers<[1], [0], [0], [1], [0, 0, 1, 1], [], []>} : vector<8x32xf32>, vector<32x128xf32>, vector<8x128xf32> -> vector<8x128xf32>
    %22 = arith.addf %19, %21 : vector<8x128xf32>
    %23 = arith.negf %22 : vector<8x128xf32>
    %24 = math.exp %23 : vector<8x128xf32>
    %cst_23 = arith.constant 1.000000e+00 : f32
    %25 = vector.broadcast %cst_23 : f32 to vector<8x128xf32>
    %26 = arith.addf %25, %24 : vector<8x128xf32>
    %27 = arith.divf %25, %26 : vector<8x128xf32>
    %28 = math.tanh %22 : vector<8x128xf32>
    %29 = vector.extract_strided_slice %27 {offsets = [0, 0], sizes = [8, 32], strides = [1, 1]} : vector<8x128xf32> to vector<8x32xf32>
    %30 = vector.extract_strided_slice %27 {offsets = [0, 32], sizes = [8, 32], strides = [1, 1]} : vector<8x128xf32> to vector<8x32xf32>
    %31 = vector.extract_strided_slice %28 {offsets = [0, 64], sizes = [8, 32], strides = [1, 1]} : vector<8x128xf32> to vector<8x32xf32>
    %32 = vector.extract_strided_slice %27 {offsets = [0, 96], sizes = [8, 32], strides = [1, 1]} : vector<8x128xf32> to vector<8x32xf32>
    %33 = arith.mulf %30, %7 : vector<8x32xf32>
    %34 = arith.mulf %29, %31 : vector<8x32xf32>
    %35 = arith.addf %33, %34 : vector<8x32xf32>
    %36 = math.tanh %35 : vector<8x32xf32>
    %37 = arith.mulf %32, %36 : vector<8x32xf32>
    %c8 = arith.constant 8 : index
    %c0_24 = arith.constant 0 : index
    %38 = vector.load %arg0[%c8, %c0_24] : memref<64x1xf32, #tpu.memory_space<vmem>>, vector<8x1xf32>
    %c0_25 = arith.constant 0 : index
    %c0_26 = arith.constant 0 : index
    %39 = vector.load %arg3[%c0_25, %c0_26] : memref<1x128xf32, #tpu.memory_space<vmem>>, vector<1x128xf32>
    %40 = vector.broadcast %38 : vector<8x1xf32> to vector<8x128xf32>
    %41 = vector.broadcast %39 : vector<1x128xf32> to vector<8x128xf32>
    %42 = arith.mulf %40, %41 : vector<8x128xf32>
    %c0_27 = arith.constant 0 : index
    %c0_28 = arith.constant 0 : index
    %43 = vector.load %arg5[%c0_27, %c0_28] : memref<1x128xf32, #tpu.memory_space<vmem>>, vector<1x128xf32>
    %44 = vector.broadcast %43 : vector<1x128xf32> to vector<8x128xf32>
    %45 = arith.addf %42, %44 : vector<8x128xf32>
    %c0_29 = arith.constant 0 : index
    %c0_30 = arith.constant 0 : index
    %46 = vector.load %arg4[%c0_29, %c0_30] : memref<32x128xf32, #tpu.memory_space<vmem>>, vector<32x128xf32>
    %cst_31 = arith.constant dense<0.000000e+00> : vector<8x128xf32>
    %47 = tpu.matmul %37, %46, %cst_31 {dimension_numbers = #tpu.dot_dimension_numbers<[1], [0], [0], [1], [0, 0, 1, 1], [], []>} : vector<8x32xf32>, vector<32x128xf32>, vector<8x128xf32> -> vector<8x128xf32>
    %48 = arith.addf %45, %47 : vector<8x128xf32>
    %49 = arith.negf %48 : vector<8x128xf32>
    %50 = math.exp %49 : vector<8x128xf32>
    %cst_32 = arith.constant 1.000000e+00 : f32
    %51 = vector.broadcast %cst_32 : f32 to vector<8x128xf32>
    %52 = arith.addf %51, %50 : vector<8x128xf32>
    %53 = arith.divf %51, %52 : vector<8x128xf32>
    %54 = math.tanh %48 : vector<8x128xf32>
    %55 = vector.extract_strided_slice %53 {offsets = [0, 0], sizes = [8, 32], strides = [1, 1]} : vector<8x128xf32> to vector<8x32xf32>
    %56 = vector.extract_strided_slice %53 {offsets = [0, 32], sizes = [8, 32], strides = [1, 1]} : vector<8x128xf32> to vector<8x32xf32>
    %57 = vector.extract_strided_slice %54 {offsets = [0, 64], sizes = [8, 32], strides = [1, 1]} : vector<8x128xf32> to vector<8x32xf32>
    %58 = vector.extract_strided_slice %53 {offsets = [0, 96], sizes = [8, 32], strides = [1, 1]} : vector<8x128xf32> to vector<8x32xf32>
    %59 = arith.mulf %56, %35 : vector<8x32xf32>
    %60 = arith.mulf %55, %57 : vector<8x32xf32>
    %61 = arith.addf %59, %60 : vector<8x32xf32>
    %62 = math.tanh %61 : vector<8x32xf32>
    %63 = arith.mulf %58, %62 : vector<8x32xf32>
    %c0_33 = arith.constant 0 : index
    %c0_34 = arith.constant 0 : index
    %64 = vector.load %arg6[%c0_33, %c0_34] : memref<32x128xf32, #tpu.memory_space<vmem>>, vector<32x128xf32>
    %cst_35 = arith.constant dense<0.000000e+00> : vector<8x128xf32>
    %65 = tpu.matmul %37, %64, %cst_35 {dimension_numbers = #tpu.dot_dimension_numbers<[1], [0], [0], [1], [0, 0, 1, 1], [], []>} : vector<8x32xf32>, vector<32x128xf32>, vector<8x128xf32> -> vector<8x128xf32>
    %c0_36 = arith.constant 0 : index
    %c0_37 = arith.constant 0 : index
    %66 = vector.load %arg8[%c0_36, %c0_37] : memref<1x128xf32, #tpu.memory_space<vmem>>, vector<1x128xf32>
    %67 = vector.broadcast %66 : vector<1x128xf32> to vector<8x128xf32>
    %68 = arith.addf %65, %67 : vector<8x128xf32>
    %c0_38 = arith.constant 0 : index
    %c0_39 = arith.constant 0 : index
    %69 = vector.load %arg7[%c0_38, %c0_39] : memref<32x128xf32, #tpu.memory_space<vmem>>, vector<32x128xf32>
    %cst_40 = arith.constant dense<0.000000e+00> : vector<8x128xf32>
    %70 = tpu.matmul %3, %69, %cst_40 {dimension_numbers = #tpu.dot_dimension_numbers<[1], [0], [0], [1], [0, 0, 1, 1], [], []>} : vector<8x32xf32>, vector<32x128xf32>, vector<8x128xf32> -> vector<8x128xf32>
    %71 = arith.addf %68, %70 : vector<8x128xf32>
    %72 = arith.negf %71 : vector<8x128xf32>
    %73 = math.exp %72 : vector<8x128xf32>
    %cst_41 = arith.constant 1.000000e+00 : f32
    %74 = vector.broadcast %cst_41 : f32 to vector<8x128xf32>
    %75 = arith.addf %74, %73 : vector<8x128xf32>
    %76 = arith.divf %74, %75 : vector<8x128xf32>
    %77 = math.tanh %71 : vector<8x128xf32>
    %78 = vector.extract_strided_slice %76 {offsets = [0, 0], sizes = [8, 32], strides = [1, 1]} : vector<8x128xf32> to vector<8x32xf32>
    %79 = vector.extract_strided_slice %76 {offsets = [0, 32], sizes = [8, 32], strides = [1, 1]} : vector<8x128xf32> to vector<8x32xf32>
    %80 = vector.extract_strided_slice %77 {offsets = [0, 64], sizes = [8, 32], strides = [1, 1]} : vector<8x128xf32> to vector<8x32xf32>
    %81 = vector.extract_strided_slice %76 {offsets = [0, 96], sizes = [8, 32], strides = [1, 1]} : vector<8x128xf32> to vector<8x32xf32>
    %82 = arith.mulf %79, %9 : vector<8x32xf32>
    %83 = arith.mulf %78, %80 : vector<8x32xf32>
    %84 = arith.addf %82, %83 : vector<8x32xf32>
    %85 = math.tanh %84 : vector<8x32xf32>
    %86 = arith.mulf %81, %85 : vector<8x32xf32>
    %c16 = arith.constant 16 : index
    %c0_42 = arith.constant 0 : index
    %87 = vector.load %arg0[%c16, %c0_42] : memref<64x1xf32, #tpu.memory_space<vmem>>, vector<8x1xf32>
    %c0_43 = arith.constant 0 : index
    %c0_44 = arith.constant 0 : index
    %88 = vector.load %arg3[%c0_43, %c0_44] : memref<1x128xf32, #tpu.memory_space<vmem>>, vector<1x128xf32>
    %89 = vector.broadcast %87 : vector<8x1xf32> to vector<8x128xf32>
    %90 = vector.broadcast %88 : vector<1x128xf32> to vector<8x128xf32>
    %91 = arith.mulf %89, %90 : vector<8x128xf32>
    %c0_45 = arith.constant 0 : index
    %c0_46 = arith.constant 0 : index
    %92 = vector.load %arg5[%c0_45, %c0_46] : memref<1x128xf32, #tpu.memory_space<vmem>>, vector<1x128xf32>
    %93 = vector.broadcast %92 : vector<1x128xf32> to vector<8x128xf32>
    %94 = arith.addf %91, %93 : vector<8x128xf32>
    %c0_47 = arith.constant 0 : index
    %c0_48 = arith.constant 0 : index
    %95 = vector.load %arg4[%c0_47, %c0_48] : memref<32x128xf32, #tpu.memory_space<vmem>>, vector<32x128xf32>
    %cst_49 = arith.constant dense<0.000000e+00> : vector<8x128xf32>
    %96 = tpu.matmul %63, %95, %cst_49 {dimension_numbers = #tpu.dot_dimension_numbers<[1], [0], [0], [1], [0, 0, 1, 1], [], []>} : vector<8x32xf32>, vector<32x128xf32>, vector<8x128xf32> -> vector<8x128xf32>
    %97 = arith.addf %94, %96 : vector<8x128xf32>
    %98 = arith.negf %97 : vector<8x128xf32>
    %99 = math.exp %98 : vector<8x128xf32>
    %cst_50 = arith.constant 1.000000e+00 : f32
    %100 = vector.broadcast %cst_50 : f32 to vector<8x128xf32>
    %101 = arith.addf %100, %99 : vector<8x128xf32>
    %102 = arith.divf %100, %101 : vector<8x128xf32>
    %103 = math.tanh %97 : vector<8x128xf32>
    %104 = vector.extract_strided_slice %102 {offsets = [0, 0], sizes = [8, 32], strides = [1, 1]} : vector<8x128xf32> to vector<8x32xf32>
    %105 = vector.extract_strided_slice %102 {offsets = [0, 32], sizes = [8, 32], strides = [1, 1]} : vector<8x128xf32> to vector<8x32xf32>
    %106 = vector.extract_strided_slice %103 {offsets = [0, 64], sizes = [8, 32], strides = [1, 1]} : vector<8x128xf32> to vector<8x32xf32>
    %107 = vector.extract_strided_slice %102 {offsets = [0, 96], sizes = [8, 32], strides = [1, 1]} : vector<8x128xf32> to vector<8x32xf32>
    %108 = arith.mulf %105, %61 : vector<8x32xf32>
    %109 = arith.mulf %104, %106 : vector<8x32xf32>
    %110 = arith.addf %108, %109 : vector<8x32xf32>
    %111 = math.tanh %110 : vector<8x32xf32>
    %112 = arith.mulf %107, %111 : vector<8x32xf32>
    %c0_51 = arith.constant 0 : index
    %c0_52 = arith.constant 0 : index
    %113 = vector.load %arg6[%c0_51, %c0_52] : memref<32x128xf32, #tpu.memory_space<vmem>>, vector<32x128xf32>
    %cst_53 = arith.constant dense<0.000000e+00> : vector<8x128xf32>
    %114 = tpu.matmul %63, %113, %cst_53 {dimension_numbers = #tpu.dot_dimension_numbers<[1], [0], [0], [1], [0, 0, 1, 1], [], []>} : vector<8x32xf32>, vector<32x128xf32>, vector<8x128xf32> -> vector<8x128xf32>
    %c0_54 = arith.constant 0 : index
    %c0_55 = arith.constant 0 : index
    %115 = vector.load %arg8[%c0_54, %c0_55] : memref<1x128xf32, #tpu.memory_space<vmem>>, vector<1x128xf32>
    %116 = vector.broadcast %115 : vector<1x128xf32> to vector<8x128xf32>
    %117 = arith.addf %114, %116 : vector<8x128xf32>
    %c0_56 = arith.constant 0 : index
    %c0_57 = arith.constant 0 : index
    %118 = vector.load %arg7[%c0_56, %c0_57] : memref<32x128xf32, #tpu.memory_space<vmem>>, vector<32x128xf32>
    %cst_58 = arith.constant dense<0.000000e+00> : vector<8x128xf32>
    %119 = tpu.matmul %86, %118, %cst_58 {dimension_numbers = #tpu.dot_dimension_numbers<[1], [0], [0], [1], [0, 0, 1, 1], [], []>} : vector<8x32xf32>, vector<32x128xf32>, vector<8x128xf32> -> vector<8x128xf32>
    %120 = arith.addf %117, %119 : vector<8x128xf32>
    %121 = arith.negf %120 : vector<8x128xf32>
    %122 = math.exp %121 : vector<8x128xf32>
    %cst_59 = arith.constant 1.000000e+00 : f32
    %123 = vector.broadcast %cst_59 : f32 to vector<8x128xf32>
    %124 = arith.addf %123, %122 : vector<8x128xf32>
    %125 = arith.divf %123, %124 : vector<8x128xf32>
    %126 = math.tanh %120 : vector<8x128xf32>
    %127 = vector.extract_strided_slice %125 {offsets = [0, 0], sizes = [8, 32], strides = [1, 1]} : vector<8x128xf32> to vector<8x32xf32>
    %128 = vector.extract_strided_slice %125 {offsets = [0, 32], sizes = [8, 32], strides = [1, 1]} : vector<8x128xf32> to vector<8x32xf32>
    %129 = vector.extract_strided_slice %126 {offsets = [0, 64], sizes = [8, 32], strides = [1, 1]} : vector<8x128xf32> to vector<8x32xf32>
    %130 = vector.extract_strided_slice %125 {offsets = [0, 96], sizes = [8, 32], strides = [1, 1]} : vector<8x128xf32> to vector<8x32xf32>
    %131 = arith.mulf %128, %84 : vector<8x32xf32>
    %132 = arith.mulf %127, %129 : vector<8x32xf32>
    %133 = arith.addf %131, %132 : vector<8x32xf32>
    %134 = math.tanh %133 : vector<8x32xf32>
    %135 = arith.mulf %130, %134 : vector<8x32xf32>
    %c0_60 = arith.constant 0 : index
    %c0_61 = arith.constant 0 : index
    %136 = vector.load %arg9[%c0_60, %c0_61] : memref<32x128xf32, #tpu.memory_space<vmem>>, vector<32x128xf32>
    %cst_62 = arith.constant dense<0.000000e+00> : vector<8x128xf32>
    %137 = tpu.matmul %86, %136, %cst_62 {dimension_numbers = #tpu.dot_dimension_numbers<[1], [0], [0], [1], [0, 0, 1, 1], [], []>} : vector<8x32xf32>, vector<32x128xf32>, vector<8x128xf32> -> vector<8x128xf32>
    %c0_63 = arith.constant 0 : index
    %c0_64 = arith.constant 0 : index
    %138 = vector.load %arg11[%c0_63, %c0_64] : memref<1x128xf32, #tpu.memory_space<vmem>>, vector<1x128xf32>
    %139 = vector.broadcast %138 : vector<1x128xf32> to vector<8x128xf32>
    %140 = arith.addf %137, %139 : vector<8x128xf32>
    %c0_65 = arith.constant 0 : index
    %c0_66 = arith.constant 0 : index
    %141 = vector.load %arg10[%c0_65, %c0_66] : memref<32x128xf32, #tpu.memory_space<vmem>>, vector<32x128xf32>
    %cst_67 = arith.constant dense<0.000000e+00> : vector<8x128xf32>
    %142 = tpu.matmul %5, %141, %cst_67 {dimension_numbers = #tpu.dot_dimension_numbers<[1], [0], [0], [1], [0, 0, 1, 1], [], []>} : vector<8x32xf32>, vector<32x128xf32>, vector<8x128xf32> -> vector<8x128xf32>
    %143 = arith.addf %140, %142 : vector<8x128xf32>
    %144 = arith.negf %143 : vector<8x128xf32>
    %145 = math.exp %144 : vector<8x128xf32>
    %cst_68 = arith.constant 1.000000e+00 : f32
    %146 = vector.broadcast %cst_68 : f32 to vector<8x128xf32>
    %147 = arith.addf %146, %145 : vector<8x128xf32>
    %148 = arith.divf %146, %147 : vector<8x128xf32>
    %149 = math.tanh %143 : vector<8x128xf32>
    %150 = vector.extract_strided_slice %148 {offsets = [0, 0], sizes = [8, 32], strides = [1, 1]} : vector<8x128xf32> to vector<8x32xf32>
    %151 = vector.extract_strided_slice %148 {offsets = [0, 32], sizes = [8, 32], strides = [1, 1]} : vector<8x128xf32> to vector<8x32xf32>
    %152 = vector.extract_strided_slice %149 {offsets = [0, 64], sizes = [8, 32], strides = [1, 1]} : vector<8x128xf32> to vector<8x32xf32>
    %153 = vector.extract_strided_slice %148 {offsets = [0, 96], sizes = [8, 32], strides = [1, 1]} : vector<8x128xf32> to vector<8x32xf32>
    %154 = arith.mulf %151, %11 : vector<8x32xf32>
    %155 = arith.mulf %150, %152 : vector<8x32xf32>
    %156 = arith.addf %154, %155 : vector<8x32xf32>
    %157 = math.tanh %156 : vector<8x32xf32>
    %158 = arith.mulf %153, %157 : vector<8x32xf32>
    %c0_69 = arith.constant 0 : index
    %c0_70 = arith.constant 0 : index
    %159 = vector.load %arg12[%c0_69, %c0_70] : memref<1x32xf32, #tpu.memory_space<vmem>>, vector<1x32xf32>
    %160 = vector.broadcast %159 : vector<1x32xf32> to vector<8x32xf32>
    %161 = arith.mulf %158, %160 : vector<8x32xf32>
    %cst_71 = arith.constant dense<0.000000e+00> : vector<8xf32>
    %162 = vector.multi_reduction <add>, %161, %cst_71 [1] : vector<8x32xf32> to vector<8xf32>
    %163 = vector.shape_cast %162 : vector<8xf32> to vector<8x1xf32>
    %c0_72 = arith.constant 0 : index
    %c0_73 = arith.constant 0 : index
    %164 = vector.load %arg13[%c0_72, %c0_73] : memref<1x1xf32, #tpu.memory_space<vmem>>, vector<1x1xf32>
    %165 = vector.broadcast %164 : vector<1x1xf32> to vector<8x1xf32>
    %166 = arith.addf %163, %165 : vector<8x1xf32>
    %c24 = arith.constant 24 : index
    %c0_74 = arith.constant 0 : index
    %167 = vector.load %arg0[%c24, %c0_74] : memref<64x1xf32, #tpu.memory_space<vmem>>, vector<8x1xf32>
    %c0_75 = arith.constant 0 : index
    %c0_76 = arith.constant 0 : index
    %168 = vector.load %arg3[%c0_75, %c0_76] : memref<1x128xf32, #tpu.memory_space<vmem>>, vector<1x128xf32>
    %169 = vector.broadcast %167 : vector<8x1xf32> to vector<8x128xf32>
    %170 = vector.broadcast %168 : vector<1x128xf32> to vector<8x128xf32>
    %171 = arith.mulf %169, %170 : vector<8x128xf32>
    %c0_77 = arith.constant 0 : index
    %c0_78 = arith.constant 0 : index
    %172 = vector.load %arg5[%c0_77, %c0_78] : memref<1x128xf32, #tpu.memory_space<vmem>>, vector<1x128xf32>
    %173 = vector.broadcast %172 : vector<1x128xf32> to vector<8x128xf32>
    %174 = arith.addf %171, %173 : vector<8x128xf32>
    %c0_79 = arith.constant 0 : index
    %c0_80 = arith.constant 0 : index
    %175 = vector.load %arg4[%c0_79, %c0_80] : memref<32x128xf32, #tpu.memory_space<vmem>>, vector<32x128xf32>
    %cst_81 = arith.constant dense<0.000000e+00> : vector<8x128xf32>
    %176 = tpu.matmul %112, %175, %cst_81 {dimension_numbers = #tpu.dot_dimension_numbers<[1], [0], [0], [1], [0, 0, 1, 1], [], []>} : vector<8x32xf32>, vector<32x128xf32>, vector<8x128xf32> -> vector<8x128xf32>
    %177 = arith.addf %174, %176 : vector<8x128xf32>
    %178 = arith.negf %177 : vector<8x128xf32>
    %179 = math.exp %178 : vector<8x128xf32>
    %cst_82 = arith.constant 1.000000e+00 : f32
    %180 = vector.broadcast %cst_82 : f32 to vector<8x128xf32>
    %181 = arith.addf %180, %179 : vector<8x128xf32>
    %182 = arith.divf %180, %181 : vector<8x128xf32>
    %183 = math.tanh %177 : vector<8x128xf32>
    %184 = vector.extract_strided_slice %182 {offsets = [0, 0], sizes = [8, 32], strides = [1, 1]} : vector<8x128xf32> to vector<8x32xf32>
    %185 = vector.extract_strided_slice %182 {offsets = [0, 32], sizes = [8, 32], strides = [1, 1]} : vector<8x128xf32> to vector<8x32xf32>
    %186 = vector.extract_strided_slice %183 {offsets = [0, 64], sizes = [8, 32], strides = [1, 1]} : vector<8x128xf32> to vector<8x32xf32>
    %187 = vector.extract_strided_slice %182 {offsets = [0, 96], sizes = [8, 32], strides = [1, 1]} : vector<8x128xf32> to vector<8x32xf32>
    %188 = arith.mulf %185, %110 : vector<8x32xf32>
    %189 = arith.mulf %184, %186 : vector<8x32xf32>
    %190 = arith.addf %188, %189 : vector<8x32xf32>
    %191 = math.tanh %190 : vector<8x32xf32>
    %192 = arith.mulf %187, %191 : vector<8x32xf32>
    %c0_83 = arith.constant 0 : index
    %c0_84 = arith.constant 0 : index
    %193 = vector.load %arg6[%c0_83, %c0_84] : memref<32x128xf32, #tpu.memory_space<vmem>>, vector<32x128xf32>
    %cst_85 = arith.constant dense<0.000000e+00> : vector<8x128xf32>
    %194 = tpu.matmul %112, %193, %cst_85 {dimension_numbers = #tpu.dot_dimension_numbers<[1], [0], [0], [1], [0, 0, 1, 1], [], []>} : vector<8x32xf32>, vector<32x128xf32>, vector<8x128xf32> -> vector<8x128xf32>
    %c0_86 = arith.constant 0 : index
    %c0_87 = arith.constant 0 : index
    %195 = vector.load %arg8[%c0_86, %c0_87] : memref<1x128xf32, #tpu.memory_space<vmem>>, vector<1x128xf32>
    %196 = vector.broadcast %195 : vector<1x128xf32> to vector<8x128xf32>
    %197 = arith.addf %194, %196 : vector<8x128xf32>
    %c0_88 = arith.constant 0 : index
    %c0_89 = arith.constant 0 : index
    %198 = vector.load %arg7[%c0_88, %c0_89] : memref<32x128xf32, #tpu.memory_space<vmem>>, vector<32x128xf32>
    %cst_90 = arith.constant dense<0.000000e+00> : vector<8x128xf32>
    %199 = tpu.matmul %135, %198, %cst_90 {dimension_numbers = #tpu.dot_dimension_numbers<[1], [0], [0], [1], [0, 0, 1, 1], [], []>} : vector<8x32xf32>, vector<32x128xf32>, vector<8x128xf32> -> vector<8x128xf32>
    %200 = arith.addf %197, %199 : vector<8x128xf32>
    %201 = arith.negf %200 : vector<8x128xf32>
    %202 = math.exp %201 : vector<8x128xf32>
    %cst_91 = arith.constant 1.000000e+00 : f32
    %203 = vector.broadcast %cst_91 : f32 to vector<8x128xf32>
    %204 = arith.addf %203, %202 : vector<8x128xf32>
    %205 = arith.divf %203, %204 : vector<8x128xf32>
    %206 = math.tanh %200 : vector<8x128xf32>
    %207 = vector.extract_strided_slice %205 {offsets = [0, 0], sizes = [8, 32], strides = [1, 1]} : vector<8x128xf32> to vector<8x32xf32>
    %208 = vector.extract_strided_slice %205 {offsets = [0, 32], sizes = [8, 32], strides = [1, 1]} : vector<8x128xf32> to vector<8x32xf32>
    %209 = vector.extract_strided_slice %206 {offsets = [0, 64], sizes = [8, 32], strides = [1, 1]} : vector<8x128xf32> to vector<8x32xf32>
    %210 = vector.extract_strided_slice %205 {offsets = [0, 96], sizes = [8, 32], strides = [1, 1]} : vector<8x128xf32> to vector<8x32xf32>
    %211 = arith.mulf %208, %133 : vector<8x32xf32>
    %212 = arith.mulf %207, %209 : vector<8x32xf32>
    %213 = arith.addf %211, %212 : vector<8x32xf32>
    %214 = math.tanh %213 : vector<8x32xf32>
    %215 = arith.mulf %210, %214 : vector<8x32xf32>
    %c0_92 = arith.constant 0 : index
    %c0_93 = arith.constant 0 : index
    %216 = vector.load %arg9[%c0_92, %c0_93] : memref<32x128xf32, #tpu.memory_space<vmem>>, vector<32x128xf32>
    %cst_94 = arith.constant dense<0.000000e+00> : vector<8x128xf32>
    %217 = tpu.matmul %135, %216, %cst_94 {dimension_numbers = #tpu.dot_dimension_numbers<[1], [0], [0], [1], [0, 0, 1, 1], [], []>} : vector<8x32xf32>, vector<32x128xf32>, vector<8x128xf32> -> vector<8x128xf32>
    %c0_95 = arith.constant 0 : index
    %c0_96 = arith.constant 0 : index
    %218 = vector.load %arg11[%c0_95, %c0_96] : memref<1x128xf32, #tpu.memory_space<vmem>>, vector<1x128xf32>
    %219 = vector.broadcast %218 : vector<1x128xf32> to vector<8x128xf32>
    %220 = arith.addf %217, %219 : vector<8x128xf32>
    %c0_97 = arith.constant 0 : index
    %c0_98 = arith.constant 0 : index
    %221 = vector.load %arg10[%c0_97, %c0_98] : memref<32x128xf32, #tpu.memory_space<vmem>>, vector<32x128xf32>
    %cst_99 = arith.constant dense<0.000000e+00> : vector<8x128xf32>
    %222 = tpu.matmul %158, %221, %cst_99 {dimension_numbers = #tpu.dot_dimension_numbers<[1], [0], [0], [1], [0, 0, 1, 1], [], []>} : vector<8x32xf32>, vector<32x128xf32>, vector<8x128xf32> -> vector<8x128xf32>
    %223 = arith.addf %220, %222 : vector<8x128xf32>
    %224 = arith.negf %223 : vector<8x128xf32>
    %225 = math.exp %224 : vector<8x128xf32>
    %cst_100 = arith.constant 1.000000e+00 : f32
    %226 = vector.broadcast %cst_100 : f32 to vector<8x128xf32>
    %227 = arith.addf %226, %225 : vector<8x128xf32>
    %228 = arith.divf %226, %227 : vector<8x128xf32>
    %229 = math.tanh %223 : vector<8x128xf32>
    %230 = vector.extract_strided_slice %228 {offsets = [0, 0], sizes = [8, 32], strides = [1, 1]} : vector<8x128xf32> to vector<8x32xf32>
    %231 = vector.extract_strided_slice %228 {offsets = [0, 32], sizes = [8, 32], strides = [1, 1]} : vector<8x128xf32> to vector<8x32xf32>
    %232 = vector.extract_strided_slice %229 {offsets = [0, 64], sizes = [8, 32], strides = [1, 1]} : vector<8x128xf32> to vector<8x32xf32>
    %233 = vector.extract_strided_slice %228 {offsets = [0, 96], sizes = [8, 32], strides = [1, 1]} : vector<8x128xf32> to vector<8x32xf32>
    %234 = arith.mulf %231, %156 : vector<8x32xf32>
    %235 = arith.mulf %230, %232 : vector<8x32xf32>
    %236 = arith.addf %234, %235 : vector<8x32xf32>
    %237 = math.tanh %236 : vector<8x32xf32>
    %238 = arith.mulf %233, %237 : vector<8x32xf32>
    %c0_101 = arith.constant 0 : index
    %c0_102 = arith.constant 0 : index
    %239 = vector.load %arg12[%c0_101, %c0_102] : memref<1x32xf32, #tpu.memory_space<vmem>>, vector<1x32xf32>
    %240 = vector.broadcast %239 : vector<1x32xf32> to vector<8x32xf32>
    %241 = arith.mulf %238, %240 : vector<8x32xf32>
    %cst_103 = arith.constant dense<0.000000e+00> : vector<8xf32>
    %242 = vector.multi_reduction <add>, %241, %cst_103 [1] : vector<8x32xf32> to vector<8xf32>
    %243 = vector.shape_cast %242 : vector<8xf32> to vector<8x1xf32>
    %c0_104 = arith.constant 0 : index
    %c0_105 = arith.constant 0 : index
    %244 = vector.load %arg13[%c0_104, %c0_105] : memref<1x1xf32, #tpu.memory_space<vmem>>, vector<1x1xf32>
    %245 = vector.broadcast %244 : vector<1x1xf32> to vector<8x1xf32>
    %246 = arith.addf %243, %245 : vector<8x1xf32>
    %c32 = arith.constant 32 : index
    %c0_106 = arith.constant 0 : index
    %247 = vector.load %arg0[%c32, %c0_106] : memref<64x1xf32, #tpu.memory_space<vmem>>, vector<8x1xf32>
    %c0_107 = arith.constant 0 : index
    %c0_108 = arith.constant 0 : index
    %248 = vector.load %arg3[%c0_107, %c0_108] : memref<1x128xf32, #tpu.memory_space<vmem>>, vector<1x128xf32>
    %249 = vector.broadcast %247 : vector<8x1xf32> to vector<8x128xf32>
    %250 = vector.broadcast %248 : vector<1x128xf32> to vector<8x128xf32>
    %251 = arith.mulf %249, %250 : vector<8x128xf32>
    %c0_109 = arith.constant 0 : index
    %c0_110 = arith.constant 0 : index
    %252 = vector.load %arg5[%c0_109, %c0_110] : memref<1x128xf32, #tpu.memory_space<vmem>>, vector<1x128xf32>
    %253 = vector.broadcast %252 : vector<1x128xf32> to vector<8x128xf32>
    %254 = arith.addf %251, %253 : vector<8x128xf32>
    %c0_111 = arith.constant 0 : index
    %c0_112 = arith.constant 0 : index
    %255 = vector.load %arg4[%c0_111, %c0_112] : memref<32x128xf32, #tpu.memory_space<vmem>>, vector<32x128xf32>
    %cst_113 = arith.constant dense<0.000000e+00> : vector<8x128xf32>
    %256 = tpu.matmul %192, %255, %cst_113 {dimension_numbers = #tpu.dot_dimension_numbers<[1], [0], [0], [1], [0, 0, 1, 1], [], []>} : vector<8x32xf32>, vector<32x128xf32>, vector<8x128xf32> -> vector<8x128xf32>
    %257 = arith.addf %254, %256 : vector<8x128xf32>
    %258 = arith.negf %257 : vector<8x128xf32>
    %259 = math.exp %258 : vector<8x128xf32>
    %cst_114 = arith.constant 1.000000e+00 : f32
    %260 = vector.broadcast %cst_114 : f32 to vector<8x128xf32>
    %261 = arith.addf %260, %259 : vector<8x128xf32>
    %262 = arith.divf %260, %261 : vector<8x128xf32>
    %263 = math.tanh %257 : vector<8x128xf32>
    %264 = vector.extract_strided_slice %262 {offsets = [0, 0], sizes = [8, 32], strides = [1, 1]} : vector<8x128xf32> to vector<8x32xf32>
    %265 = vector.extract_strided_slice %262 {offsets = [0, 32], sizes = [8, 32], strides = [1, 1]} : vector<8x128xf32> to vector<8x32xf32>
    %266 = vector.extract_strided_slice %263 {offsets = [0, 64], sizes = [8, 32], strides = [1, 1]} : vector<8x128xf32> to vector<8x32xf32>
    %267 = vector.extract_strided_slice %262 {offsets = [0, 96], sizes = [8, 32], strides = [1, 1]} : vector<8x128xf32> to vector<8x32xf32>
    %268 = arith.mulf %265, %190 : vector<8x32xf32>
    %269 = arith.mulf %264, %266 : vector<8x32xf32>
    %270 = arith.addf %268, %269 : vector<8x32xf32>
    %271 = math.tanh %270 : vector<8x32xf32>
    %272 = arith.mulf %267, %271 : vector<8x32xf32>
    %c0_115 = arith.constant 0 : index
    %c0_116 = arith.constant 0 : index
    %273 = vector.load %arg6[%c0_115, %c0_116] : memref<32x128xf32, #tpu.memory_space<vmem>>, vector<32x128xf32>
    %cst_117 = arith.constant dense<0.000000e+00> : vector<8x128xf32>
    %274 = tpu.matmul %192, %273, %cst_117 {dimension_numbers = #tpu.dot_dimension_numbers<[1], [0], [0], [1], [0, 0, 1, 1], [], []>} : vector<8x32xf32>, vector<32x128xf32>, vector<8x128xf32> -> vector<8x128xf32>
    %c0_118 = arith.constant 0 : index
    %c0_119 = arith.constant 0 : index
    %275 = vector.load %arg8[%c0_118, %c0_119] : memref<1x128xf32, #tpu.memory_space<vmem>>, vector<1x128xf32>
    %276 = vector.broadcast %275 : vector<1x128xf32> to vector<8x128xf32>
    %277 = arith.addf %274, %276 : vector<8x128xf32>
    %c0_120 = arith.constant 0 : index
    %c0_121 = arith.constant 0 : index
    %278 = vector.load %arg7[%c0_120, %c0_121] : memref<32x128xf32, #tpu.memory_space<vmem>>, vector<32x128xf32>
    %cst_122 = arith.constant dense<0.000000e+00> : vector<8x128xf32>
    %279 = tpu.matmul %215, %278, %cst_122 {dimension_numbers = #tpu.dot_dimension_numbers<[1], [0], [0], [1], [0, 0, 1, 1], [], []>} : vector<8x32xf32>, vector<32x128xf32>, vector<8x128xf32> -> vector<8x128xf32>
    %280 = arith.addf %277, %279 : vector<8x128xf32>
    %281 = arith.negf %280 : vector<8x128xf32>
    %282 = math.exp %281 : vector<8x128xf32>
    %cst_123 = arith.constant 1.000000e+00 : f32
    %283 = vector.broadcast %cst_123 : f32 to vector<8x128xf32>
    %284 = arith.addf %283, %282 : vector<8x128xf32>
    %285 = arith.divf %283, %284 : vector<8x128xf32>
    %286 = math.tanh %280 : vector<8x128xf32>
    %287 = vector.extract_strided_slice %285 {offsets = [0, 0], sizes = [8, 32], strides = [1, 1]} : vector<8x128xf32> to vector<8x32xf32>
    %288 = vector.extract_strided_slice %285 {offsets = [0, 32], sizes = [8, 32], strides = [1, 1]} : vector<8x128xf32> to vector<8x32xf32>
    %289 = vector.extract_strided_slice %286 {offsets = [0, 64], sizes = [8, 32], strides = [1, 1]} : vector<8x128xf32> to vector<8x32xf32>
    %290 = vector.extract_strided_slice %285 {offsets = [0, 96], sizes = [8, 32], strides = [1, 1]} : vector<8x128xf32> to vector<8x32xf32>
    %291 = arith.mulf %288, %213 : vector<8x32xf32>
    %292 = arith.mulf %287, %289 : vector<8x32xf32>
    %293 = arith.addf %291, %292 : vector<8x32xf32>
    %294 = math.tanh %293 : vector<8x32xf32>
    %295 = arith.mulf %290, %294 : vector<8x32xf32>
    %c0_124 = arith.constant 0 : index
    %c0_125 = arith.constant 0 : index
    %296 = vector.load %arg9[%c0_124, %c0_125] : memref<32x128xf32, #tpu.memory_space<vmem>>, vector<32x128xf32>
    %cst_126 = arith.constant dense<0.000000e+00> : vector<8x128xf32>
    %297 = tpu.matmul %215, %296, %cst_126 {dimension_numbers = #tpu.dot_dimension_numbers<[1], [0], [0], [1], [0, 0, 1, 1], [], []>} : vector<8x32xf32>, vector<32x128xf32>, vector<8x128xf32> -> vector<8x128xf32>
    %c0_127 = arith.constant 0 : index
    %c0_128 = arith.constant 0 : index
    %298 = vector.load %arg11[%c0_127, %c0_128] : memref<1x128xf32, #tpu.memory_space<vmem>>, vector<1x128xf32>
    %299 = vector.broadcast %298 : vector<1x128xf32> to vector<8x128xf32>
    %300 = arith.addf %297, %299 : vector<8x128xf32>
    %c0_129 = arith.constant 0 : index
    %c0_130 = arith.constant 0 : index
    %301 = vector.load %arg10[%c0_129, %c0_130] : memref<32x128xf32, #tpu.memory_space<vmem>>, vector<32x128xf32>
    %cst_131 = arith.constant dense<0.000000e+00> : vector<8x128xf32>
    %302 = tpu.matmul %238, %301, %cst_131 {dimension_numbers = #tpu.dot_dimension_numbers<[1], [0], [0], [1], [0, 0, 1, 1], [], []>} : vector<8x32xf32>, vector<32x128xf32>, vector<8x128xf32> -> vector<8x128xf32>
    %303 = arith.addf %300, %302 : vector<8x128xf32>
    %304 = arith.negf %303 : vector<8x128xf32>
    %305 = math.exp %304 : vector<8x128xf32>
    %cst_132 = arith.constant 1.000000e+00 : f32
    %306 = vector.broadcast %cst_132 : f32 to vector<8x128xf32>
    %307 = arith.addf %306, %305 : vector<8x128xf32>
    %308 = arith.divf %306, %307 : vector<8x128xf32>
    %309 = math.tanh %303 : vector<8x128xf32>
    %310 = vector.extract_strided_slice %308 {offsets = [0, 0], sizes = [8, 32], strides = [1, 1]} : vector<8x128xf32> to vector<8x32xf32>
    %311 = vector.extract_strided_slice %308 {offsets = [0, 32], sizes = [8, 32], strides = [1, 1]} : vector<8x128xf32> to vector<8x32xf32>
    %312 = vector.extract_strided_slice %309 {offsets = [0, 64], sizes = [8, 32], strides = [1, 1]} : vector<8x128xf32> to vector<8x32xf32>
    %313 = vector.extract_strided_slice %308 {offsets = [0, 96], sizes = [8, 32], strides = [1, 1]} : vector<8x128xf32> to vector<8x32xf32>
    %314 = arith.mulf %311, %236 : vector<8x32xf32>
    %315 = arith.mulf %310, %312 : vector<8x32xf32>
    %316 = arith.addf %314, %315 : vector<8x32xf32>
    %317 = math.tanh %316 : vector<8x32xf32>
    %318 = arith.mulf %313, %317 : vector<8x32xf32>
    %c0_133 = arith.constant 0 : index
    %c0_134 = arith.constant 0 : index
    %319 = vector.load %arg12[%c0_133, %c0_134] : memref<1x32xf32, #tpu.memory_space<vmem>>, vector<1x32xf32>
    %320 = vector.broadcast %319 : vector<1x32xf32> to vector<8x32xf32>
    %321 = arith.mulf %318, %320 : vector<8x32xf32>
    %cst_135 = arith.constant dense<0.000000e+00> : vector<8xf32>
    %322 = vector.multi_reduction <add>, %321, %cst_135 [1] : vector<8x32xf32> to vector<8xf32>
    %323 = vector.shape_cast %322 : vector<8xf32> to vector<8x1xf32>
    %c0_136 = arith.constant 0 : index
    %c0_137 = arith.constant 0 : index
    %324 = vector.load %arg13[%c0_136, %c0_137] : memref<1x1xf32, #tpu.memory_space<vmem>>, vector<1x1xf32>
    %325 = vector.broadcast %324 : vector<1x1xf32> to vector<8x1xf32>
    %326 = arith.addf %323, %325 : vector<8x1xf32>
    %c40 = arith.constant 40 : index
    %c0_138 = arith.constant 0 : index
    %327 = vector.load %arg0[%c40, %c0_138] : memref<64x1xf32, #tpu.memory_space<vmem>>, vector<8x1xf32>
    %c0_139 = arith.constant 0 : index
    %c0_140 = arith.constant 0 : index
    %328 = vector.load %arg3[%c0_139, %c0_140] : memref<1x128xf32, #tpu.memory_space<vmem>>, vector<1x128xf32>
    %329 = vector.broadcast %327 : vector<8x1xf32> to vector<8x128xf32>
    %330 = vector.broadcast %328 : vector<1x128xf32> to vector<8x128xf32>
    %331 = arith.mulf %329, %330 : vector<8x128xf32>
    %c0_141 = arith.constant 0 : index
    %c0_142 = arith.constant 0 : index
    %332 = vector.load %arg5[%c0_141, %c0_142] : memref<1x128xf32, #tpu.memory_space<vmem>>, vector<1x128xf32>
    %333 = vector.broadcast %332 : vector<1x128xf32> to vector<8x128xf32>
    %334 = arith.addf %331, %333 : vector<8x128xf32>
    %c0_143 = arith.constant 0 : index
    %c0_144 = arith.constant 0 : index
    %335 = vector.load %arg4[%c0_143, %c0_144] : memref<32x128xf32, #tpu.memory_space<vmem>>, vector<32x128xf32>
    %cst_145 = arith.constant dense<0.000000e+00> : vector<8x128xf32>
    %336 = tpu.matmul %272, %335, %cst_145 {dimension_numbers = #tpu.dot_dimension_numbers<[1], [0], [0], [1], [0, 0, 1, 1], [], []>} : vector<8x32xf32>, vector<32x128xf32>, vector<8x128xf32> -> vector<8x128xf32>
    %337 = arith.addf %334, %336 : vector<8x128xf32>
    %338 = arith.negf %337 : vector<8x128xf32>
    %339 = math.exp %338 : vector<8x128xf32>
    %cst_146 = arith.constant 1.000000e+00 : f32
    %340 = vector.broadcast %cst_146 : f32 to vector<8x128xf32>
    %341 = arith.addf %340, %339 : vector<8x128xf32>
    %342 = arith.divf %340, %341 : vector<8x128xf32>
    %343 = math.tanh %337 : vector<8x128xf32>
    %344 = vector.extract_strided_slice %342 {offsets = [0, 0], sizes = [8, 32], strides = [1, 1]} : vector<8x128xf32> to vector<8x32xf32>
    %345 = vector.extract_strided_slice %342 {offsets = [0, 32], sizes = [8, 32], strides = [1, 1]} : vector<8x128xf32> to vector<8x32xf32>
    %346 = vector.extract_strided_slice %343 {offsets = [0, 64], sizes = [8, 32], strides = [1, 1]} : vector<8x128xf32> to vector<8x32xf32>
    %347 = vector.extract_strided_slice %342 {offsets = [0, 96], sizes = [8, 32], strides = [1, 1]} : vector<8x128xf32> to vector<8x32xf32>
    %348 = arith.mulf %345, %270 : vector<8x32xf32>
    %349 = arith.mulf %344, %346 : vector<8x32xf32>
    %350 = arith.addf %348, %349 : vector<8x32xf32>
    %351 = math.tanh %350 : vector<8x32xf32>
    %352 = arith.mulf %347, %351 : vector<8x32xf32>
    %c0_147 = arith.constant 0 : index
    %c0_148 = arith.constant 0 : index
    %353 = vector.load %arg6[%c0_147, %c0_148] : memref<32x128xf32, #tpu.memory_space<vmem>>, vector<32x128xf32>
    %cst_149 = arith.constant dense<0.000000e+00> : vector<8x128xf32>
    %354 = tpu.matmul %272, %353, %cst_149 {dimension_numbers = #tpu.dot_dimension_numbers<[1], [0], [0], [1], [0, 0, 1, 1], [], []>} : vector<8x32xf32>, vector<32x128xf32>, vector<8x128xf32> -> vector<8x128xf32>
    %c0_150 = arith.constant 0 : index
    %c0_151 = arith.constant 0 : index
    %355 = vector.load %arg8[%c0_150, %c0_151] : memref<1x128xf32, #tpu.memory_space<vmem>>, vector<1x128xf32>
    %356 = vector.broadcast %355 : vector<1x128xf32> to vector<8x128xf32>
    %357 = arith.addf %354, %356 : vector<8x128xf32>
    %c0_152 = arith.constant 0 : index
    %c0_153 = arith.constant 0 : index
    %358 = vector.load %arg7[%c0_152, %c0_153] : memref<32x128xf32, #tpu.memory_space<vmem>>, vector<32x128xf32>
    %cst_154 = arith.constant dense<0.000000e+00> : vector<8x128xf32>
    %359 = tpu.matmul %295, %358, %cst_154 {dimension_numbers = #tpu.dot_dimension_numbers<[1], [0], [0], [1], [0, 0, 1, 1], [], []>} : vector<8x32xf32>, vector<32x128xf32>, vector<8x128xf32> -> vector<8x128xf32>
    %360 = arith.addf %357, %359 : vector<8x128xf32>
    %361 = arith.negf %360 : vector<8x128xf32>
    %362 = math.exp %361 : vector<8x128xf32>
    %cst_155 = arith.constant 1.000000e+00 : f32
    %363 = vector.broadcast %cst_155 : f32 to vector<8x128xf32>
    %364 = arith.addf %363, %362 : vector<8x128xf32>
    %365 = arith.divf %363, %364 : vector<8x128xf32>
    %366 = math.tanh %360 : vector<8x128xf32>
    %367 = vector.extract_strided_slice %365 {offsets = [0, 0], sizes = [8, 32], strides = [1, 1]} : vector<8x128xf32> to vector<8x32xf32>
    %368 = vector.extract_strided_slice %365 {offsets = [0, 32], sizes = [8, 32], strides = [1, 1]} : vector<8x128xf32> to vector<8x32xf32>
    %369 = vector.extract_strided_slice %366 {offsets = [0, 64], sizes = [8, 32], strides = [1, 1]} : vector<8x128xf32> to vector<8x32xf32>
    %370 = vector.extract_strided_slice %365 {offsets = [0, 96], sizes = [8, 32], strides = [1, 1]} : vector<8x128xf32> to vector<8x32xf32>
    %371 = arith.mulf %368, %293 : vector<8x32xf32>
    %372 = arith.mulf %367, %369 : vector<8x32xf32>
    %373 = arith.addf %371, %372 : vector<8x32xf32>
    %374 = math.tanh %373 : vector<8x32xf32>
    %375 = arith.mulf %370, %374 : vector<8x32xf32>
    %c0_156 = arith.constant 0 : index
    %c0_157 = arith.constant 0 : index
    %376 = vector.load %arg9[%c0_156, %c0_157] : memref<32x128xf32, #tpu.memory_space<vmem>>, vector<32x128xf32>
    %cst_158 = arith.constant dense<0.000000e+00> : vector<8x128xf32>
    %377 = tpu.matmul %295, %376, %cst_158 {dimension_numbers = #tpu.dot_dimension_numbers<[1], [0], [0], [1], [0, 0, 1, 1], [], []>} : vector<8x32xf32>, vector<32x128xf32>, vector<8x128xf32> -> vector<8x128xf32>
    %c0_159 = arith.constant 0 : index
    %c0_160 = arith.constant 0 : index
    %378 = vector.load %arg11[%c0_159, %c0_160] : memref<1x128xf32, #tpu.memory_space<vmem>>, vector<1x128xf32>
    %379 = vector.broadcast %378 : vector<1x128xf32> to vector<8x128xf32>
    %380 = arith.addf %377, %379 : vector<8x128xf32>
    %c0_161 = arith.constant 0 : index
    %c0_162 = arith.constant 0 : index
    %381 = vector.load %arg10[%c0_161, %c0_162] : memref<32x128xf32, #tpu.memory_space<vmem>>, vector<32x128xf32>
    %cst_163 = arith.constant dense<0.000000e+00> : vector<8x128xf32>
    %382 = tpu.matmul %318, %381, %cst_163 {dimension_numbers = #tpu.dot_dimension_numbers<[1], [0], [0], [1], [0, 0, 1, 1], [], []>} : vector<8x32xf32>, vector<32x128xf32>, vector<8x128xf32> -> vector<8x128xf32>
    %383 = arith.addf %380, %382 : vector<8x128xf32>
    %384 = arith.negf %383 : vector<8x128xf32>
    %385 = math.exp %384 : vector<8x128xf32>
    %cst_164 = arith.constant 1.000000e+00 : f32
    %386 = vector.broadcast %cst_164 : f32 to vector<8x128xf32>
    %387 = arith.addf %386, %385 : vector<8x128xf32>
    %388 = arith.divf %386, %387 : vector<8x128xf32>
    %389 = math.tanh %383 : vector<8x128xf32>
    %390 = vector.extract_strided_slice %388 {offsets = [0, 0], sizes = [8, 32], strides = [1, 1]} : vector<8x128xf32> to vector<8x32xf32>
    %391 = vector.extract_strided_slice %388 {offsets = [0, 32], sizes = [8, 32], strides = [1, 1]} : vector<8x128xf32> to vector<8x32xf32>
    %392 = vector.extract_strided_slice %389 {offsets = [0, 64], sizes = [8, 32], strides = [1, 1]} : vector<8x128xf32> to vector<8x32xf32>
    %393 = vector.extract_strided_slice %388 {offsets = [0, 96], sizes = [8, 32], strides = [1, 1]} : vector<8x128xf32> to vector<8x32xf32>
    %394 = arith.mulf %391, %316 : vector<8x32xf32>
    %395 = arith.mulf %390, %392 : vector<8x32xf32>
    %396 = arith.addf %394, %395 : vector<8x32xf32>
    %397 = math.tanh %396 : vector<8x32xf32>
    %398 = arith.mulf %393, %397 : vector<8x32xf32>
    %c0_165 = arith.constant 0 : index
    %c0_166 = arith.constant 0 : index
    %399 = vector.load %arg12[%c0_165, %c0_166] : memref<1x32xf32, #tpu.memory_space<vmem>>, vector<1x32xf32>
    %400 = vector.broadcast %399 : vector<1x32xf32> to vector<8x32xf32>
    %401 = arith.mulf %398, %400 : vector<8x32xf32>
    %cst_167 = arith.constant dense<0.000000e+00> : vector<8xf32>
    %402 = vector.multi_reduction <add>, %401, %cst_167 [1] : vector<8x32xf32> to vector<8xf32>
    %403 = vector.shape_cast %402 : vector<8xf32> to vector<8x1xf32>
    %c0_168 = arith.constant 0 : index
    %c0_169 = arith.constant 0 : index
    %404 = vector.load %arg13[%c0_168, %c0_169] : memref<1x1xf32, #tpu.memory_space<vmem>>, vector<1x1xf32>
    %405 = vector.broadcast %404 : vector<1x1xf32> to vector<8x1xf32>
    %406 = arith.addf %403, %405 : vector<8x1xf32>
    %c48 = arith.constant 48 : index
    %c0_170 = arith.constant 0 : index
    %407 = vector.load %arg0[%c48, %c0_170] : memref<64x1xf32, #tpu.memory_space<vmem>>, vector<8x1xf32>
    %c0_171 = arith.constant 0 : index
    %c0_172 = arith.constant 0 : index
    %408 = vector.load %arg3[%c0_171, %c0_172] : memref<1x128xf32, #tpu.memory_space<vmem>>, vector<1x128xf32>
    %409 = vector.broadcast %407 : vector<8x1xf32> to vector<8x128xf32>
    %410 = vector.broadcast %408 : vector<1x128xf32> to vector<8x128xf32>
    %411 = arith.mulf %409, %410 : vector<8x128xf32>
    %c0_173 = arith.constant 0 : index
    %c0_174 = arith.constant 0 : index
    %412 = vector.load %arg5[%c0_173, %c0_174] : memref<1x128xf32, #tpu.memory_space<vmem>>, vector<1x128xf32>
    %413 = vector.broadcast %412 : vector<1x128xf32> to vector<8x128xf32>
    %414 = arith.addf %411, %413 : vector<8x128xf32>
    %c0_175 = arith.constant 0 : index
    %c0_176 = arith.constant 0 : index
    %415 = vector.load %arg4[%c0_175, %c0_176] : memref<32x128xf32, #tpu.memory_space<vmem>>, vector<32x128xf32>
    %cst_177 = arith.constant dense<0.000000e+00> : vector<8x128xf32>
    %416 = tpu.matmul %352, %415, %cst_177 {dimension_numbers = #tpu.dot_dimension_numbers<[1], [0], [0], [1], [0, 0, 1, 1], [], []>} : vector<8x32xf32>, vector<32x128xf32>, vector<8x128xf32> -> vector<8x128xf32>
    %417 = arith.addf %414, %416 : vector<8x128xf32>
    %418 = arith.negf %417 : vector<8x128xf32>
    %419 = math.exp %418 : vector<8x128xf32>
    %cst_178 = arith.constant 1.000000e+00 : f32
    %420 = vector.broadcast %cst_178 : f32 to vector<8x128xf32>
    %421 = arith.addf %420, %419 : vector<8x128xf32>
    %422 = arith.divf %420, %421 : vector<8x128xf32>
    %423 = math.tanh %417 : vector<8x128xf32>
    %424 = vector.extract_strided_slice %422 {offsets = [0, 0], sizes = [8, 32], strides = [1, 1]} : vector<8x128xf32> to vector<8x32xf32>
    %425 = vector.extract_strided_slice %422 {offsets = [0, 32], sizes = [8, 32], strides = [1, 1]} : vector<8x128xf32> to vector<8x32xf32>
    %426 = vector.extract_strided_slice %423 {offsets = [0, 64], sizes = [8, 32], strides = [1, 1]} : vector<8x128xf32> to vector<8x32xf32>
    %427 = vector.extract_strided_slice %422 {offsets = [0, 96], sizes = [8, 32], strides = [1, 1]} : vector<8x128xf32> to vector<8x32xf32>
    %428 = arith.mulf %425, %350 : vector<8x32xf32>
    %429 = arith.mulf %424, %426 : vector<8x32xf32>
    %430 = arith.addf %428, %429 : vector<8x32xf32>
    %431 = math.tanh %430 : vector<8x32xf32>
    %432 = arith.mulf %427, %431 : vector<8x32xf32>
    %c0_179 = arith.constant 0 : index
    %c0_180 = arith.constant 0 : index
    %433 = vector.load %arg6[%c0_179, %c0_180] : memref<32x128xf32, #tpu.memory_space<vmem>>, vector<32x128xf32>
    %cst_181 = arith.constant dense<0.000000e+00> : vector<8x128xf32>
    %434 = tpu.matmul %352, %433, %cst_181 {dimension_numbers = #tpu.dot_dimension_numbers<[1], [0], [0], [1], [0, 0, 1, 1], [], []>} : vector<8x32xf32>, vector<32x128xf32>, vector<8x128xf32> -> vector<8x128xf32>
    %c0_182 = arith.constant 0 : index
    %c0_183 = arith.constant 0 : index
    %435 = vector.load %arg8[%c0_182, %c0_183] : memref<1x128xf32, #tpu.memory_space<vmem>>, vector<1x128xf32>
    %436 = vector.broadcast %435 : vector<1x128xf32> to vector<8x128xf32>
    %437 = arith.addf %434, %436 : vector<8x128xf32>
    %c0_184 = arith.constant 0 : index
    %c0_185 = arith.constant 0 : index
    %438 = vector.load %arg7[%c0_184, %c0_185] : memref<32x128xf32, #tpu.memory_space<vmem>>, vector<32x128xf32>
    %cst_186 = arith.constant dense<0.000000e+00> : vector<8x128xf32>
    %439 = tpu.matmul %375, %438, %cst_186 {dimension_numbers = #tpu.dot_dimension_numbers<[1], [0], [0], [1], [0, 0, 1, 1], [], []>} : vector<8x32xf32>, vector<32x128xf32>, vector<8x128xf32> -> vector<8x128xf32>
    %440 = arith.addf %437, %439 : vector<8x128xf32>
    %441 = arith.negf %440 : vector<8x128xf32>
    %442 = math.exp %441 : vector<8x128xf32>
    %cst_187 = arith.constant 1.000000e+00 : f32
    %443 = vector.broadcast %cst_187 : f32 to vector<8x128xf32>
    %444 = arith.addf %443, %442 : vector<8x128xf32>
    %445 = arith.divf %443, %444 : vector<8x128xf32>
    %446 = math.tanh %440 : vector<8x128xf32>
    %447 = vector.extract_strided_slice %445 {offsets = [0, 0], sizes = [8, 32], strides = [1, 1]} : vector<8x128xf32> to vector<8x32xf32>
    %448 = vector.extract_strided_slice %445 {offsets = [0, 32], sizes = [8, 32], strides = [1, 1]} : vector<8x128xf32> to vector<8x32xf32>
    %449 = vector.extract_strided_slice %446 {offsets = [0, 64], sizes = [8, 32], strides = [1, 1]} : vector<8x128xf32> to vector<8x32xf32>
    %450 = vector.extract_strided_slice %445 {offsets = [0, 96], sizes = [8, 32], strides = [1, 1]} : vector<8x128xf32> to vector<8x32xf32>
    %451 = arith.mulf %448, %373 : vector<8x32xf32>
    %452 = arith.mulf %447, %449 : vector<8x32xf32>
    %453 = arith.addf %451, %452 : vector<8x32xf32>
    %454 = math.tanh %453 : vector<8x32xf32>
    %455 = arith.mulf %450, %454 : vector<8x32xf32>
    %c0_188 = arith.constant 0 : index
    %c0_189 = arith.constant 0 : index
    %456 = vector.load %arg9[%c0_188, %c0_189] : memref<32x128xf32, #tpu.memory_space<vmem>>, vector<32x128xf32>
    %cst_190 = arith.constant dense<0.000000e+00> : vector<8x128xf32>
    %457 = tpu.matmul %375, %456, %cst_190 {dimension_numbers = #tpu.dot_dimension_numbers<[1], [0], [0], [1], [0, 0, 1, 1], [], []>} : vector<8x32xf32>, vector<32x128xf32>, vector<8x128xf32> -> vector<8x128xf32>
    %c0_191 = arith.constant 0 : index
    %c0_192 = arith.constant 0 : index
    %458 = vector.load %arg11[%c0_191, %c0_192] : memref<1x128xf32, #tpu.memory_space<vmem>>, vector<1x128xf32>
    %459 = vector.broadcast %458 : vector<1x128xf32> to vector<8x128xf32>
    %460 = arith.addf %457, %459 : vector<8x128xf32>
    %c0_193 = arith.constant 0 : index
    %c0_194 = arith.constant 0 : index
    %461 = vector.load %arg10[%c0_193, %c0_194] : memref<32x128xf32, #tpu.memory_space<vmem>>, vector<32x128xf32>
    %cst_195 = arith.constant dense<0.000000e+00> : vector<8x128xf32>
    %462 = tpu.matmul %398, %461, %cst_195 {dimension_numbers = #tpu.dot_dimension_numbers<[1], [0], [0], [1], [0, 0, 1, 1], [], []>} : vector<8x32xf32>, vector<32x128xf32>, vector<8x128xf32> -> vector<8x128xf32>
    %463 = arith.addf %460, %462 : vector<8x128xf32>
    %464 = arith.negf %463 : vector<8x128xf32>
    %465 = math.exp %464 : vector<8x128xf32>
    %cst_196 = arith.constant 1.000000e+00 : f32
    %466 = vector.broadcast %cst_196 : f32 to vector<8x128xf32>
    %467 = arith.addf %466, %465 : vector<8x128xf32>
    %468 = arith.divf %466, %467 : vector<8x128xf32>
    %469 = math.tanh %463 : vector<8x128xf32>
    %470 = vector.extract_strided_slice %468 {offsets = [0, 0], sizes = [8, 32], strides = [1, 1]} : vector<8x128xf32> to vector<8x32xf32>
    %471 = vector.extract_strided_slice %468 {offsets = [0, 32], sizes = [8, 32], strides = [1, 1]} : vector<8x128xf32> to vector<8x32xf32>
    %472 = vector.extract_strided_slice %469 {offsets = [0, 64], sizes = [8, 32], strides = [1, 1]} : vector<8x128xf32> to vector<8x32xf32>
    %473 = vector.extract_strided_slice %468 {offsets = [0, 96], sizes = [8, 32], strides = [1, 1]} : vector<8x128xf32> to vector<8x32xf32>
    %474 = arith.mulf %471, %396 : vector<8x32xf32>
    %475 = arith.mulf %470, %472 : vector<8x32xf32>
    %476 = arith.addf %474, %475 : vector<8x32xf32>
    %477 = math.tanh %476 : vector<8x32xf32>
    %478 = arith.mulf %473, %477 : vector<8x32xf32>
    %c0_197 = arith.constant 0 : index
    %c0_198 = arith.constant 0 : index
    %479 = vector.load %arg12[%c0_197, %c0_198] : memref<1x32xf32, #tpu.memory_space<vmem>>, vector<1x32xf32>
    %480 = vector.broadcast %479 : vector<1x32xf32> to vector<8x32xf32>
    %481 = arith.mulf %478, %480 : vector<8x32xf32>
    %cst_199 = arith.constant dense<0.000000e+00> : vector<8xf32>
    %482 = vector.multi_reduction <add>, %481, %cst_199 [1] : vector<8x32xf32> to vector<8xf32>
    %483 = vector.shape_cast %482 : vector<8xf32> to vector<8x1xf32>
    %c0_200 = arith.constant 0 : index
    %c0_201 = arith.constant 0 : index
    %484 = vector.load %arg13[%c0_200, %c0_201] : memref<1x1xf32, #tpu.memory_space<vmem>>, vector<1x1xf32>
    %485 = vector.broadcast %484 : vector<1x1xf32> to vector<8x1xf32>
    %486 = arith.addf %483, %485 : vector<8x1xf32>
    %c56 = arith.constant 56 : index
    %c0_202 = arith.constant 0 : index
    %487 = vector.load %arg0[%c56, %c0_202] : memref<64x1xf32, #tpu.memory_space<vmem>>, vector<8x1xf32>
    %c0_203 = arith.constant 0 : index
    %c0_204 = arith.constant 0 : index
    %488 = vector.load %arg3[%c0_203, %c0_204] : memref<1x128xf32, #tpu.memory_space<vmem>>, vector<1x128xf32>
    %489 = vector.broadcast %487 : vector<8x1xf32> to vector<8x128xf32>
    %490 = vector.broadcast %488 : vector<1x128xf32> to vector<8x128xf32>
    %491 = arith.mulf %489, %490 : vector<8x128xf32>
    %c0_205 = arith.constant 0 : index
    %c0_206 = arith.constant 0 : index
    %492 = vector.load %arg5[%c0_205, %c0_206] : memref<1x128xf32, #tpu.memory_space<vmem>>, vector<1x128xf32>
    %493 = vector.broadcast %492 : vector<1x128xf32> to vector<8x128xf32>
    %494 = arith.addf %491, %493 : vector<8x128xf32>
    %c0_207 = arith.constant 0 : index
    %c0_208 = arith.constant 0 : index
    %495 = vector.load %arg4[%c0_207, %c0_208] : memref<32x128xf32, #tpu.memory_space<vmem>>, vector<32x128xf32>
    %cst_209 = arith.constant dense<0.000000e+00> : vector<8x128xf32>
    %496 = tpu.matmul %432, %495, %cst_209 {dimension_numbers = #tpu.dot_dimension_numbers<[1], [0], [0], [1], [0, 0, 1, 1], [], []>} : vector<8x32xf32>, vector<32x128xf32>, vector<8x128xf32> -> vector<8x128xf32>
    %497 = arith.addf %494, %496 : vector<8x128xf32>
    %498 = arith.negf %497 : vector<8x128xf32>
    %499 = math.exp %498 : vector<8x128xf32>
    %cst_210 = arith.constant 1.000000e+00 : f32
    %500 = vector.broadcast %cst_210 : f32 to vector<8x128xf32>
    %501 = arith.addf %500, %499 : vector<8x128xf32>
    %502 = arith.divf %500, %501 : vector<8x128xf32>
    %503 = math.tanh %497 : vector<8x128xf32>
    %504 = vector.extract_strided_slice %502 {offsets = [0, 0], sizes = [8, 32], strides = [1, 1]} : vector<8x128xf32> to vector<8x32xf32>
    %505 = vector.extract_strided_slice %502 {offsets = [0, 32], sizes = [8, 32], strides = [1, 1]} : vector<8x128xf32> to vector<8x32xf32>
    %506 = vector.extract_strided_slice %503 {offsets = [0, 64], sizes = [8, 32], strides = [1, 1]} : vector<8x128xf32> to vector<8x32xf32>
    %507 = vector.extract_strided_slice %502 {offsets = [0, 96], sizes = [8, 32], strides = [1, 1]} : vector<8x128xf32> to vector<8x32xf32>
    %508 = arith.mulf %505, %430 : vector<8x32xf32>
    %509 = arith.mulf %504, %506 : vector<8x32xf32>
    %510 = arith.addf %508, %509 : vector<8x32xf32>
    %511 = math.tanh %510 : vector<8x32xf32>
    %512 = arith.mulf %507, %511 : vector<8x32xf32>
    %c0_211 = arith.constant 0 : index
    %c0_212 = arith.constant 0 : index
    %513 = vector.load %arg6[%c0_211, %c0_212] : memref<32x128xf32, #tpu.memory_space<vmem>>, vector<32x128xf32>
    %cst_213 = arith.constant dense<0.000000e+00> : vector<8x128xf32>
    %514 = tpu.matmul %432, %513, %cst_213 {dimension_numbers = #tpu.dot_dimension_numbers<[1], [0], [0], [1], [0, 0, 1, 1], [], []>} : vector<8x32xf32>, vector<32x128xf32>, vector<8x128xf32> -> vector<8x128xf32>
    %c0_214 = arith.constant 0 : index
    %c0_215 = arith.constant 0 : index
    %515 = vector.load %arg8[%c0_214, %c0_215] : memref<1x128xf32, #tpu.memory_space<vmem>>, vector<1x128xf32>
    %516 = vector.broadcast %515 : vector<1x128xf32> to vector<8x128xf32>
    %517 = arith.addf %514, %516 : vector<8x128xf32>
    %c0_216 = arith.constant 0 : index
    %c0_217 = arith.constant 0 : index
    %518 = vector.load %arg7[%c0_216, %c0_217] : memref<32x128xf32, #tpu.memory_space<vmem>>, vector<32x128xf32>
    %cst_218 = arith.constant dense<0.000000e+00> : vector<8x128xf32>
    %519 = tpu.matmul %455, %518, %cst_218 {dimension_numbers = #tpu.dot_dimension_numbers<[1], [0], [0], [1], [0, 0, 1, 1], [], []>} : vector<8x32xf32>, vector<32x128xf32>, vector<8x128xf32> -> vector<8x128xf32>
    %520 = arith.addf %517, %519 : vector<8x128xf32>
    %521 = arith.negf %520 : vector<8x128xf32>
    %522 = math.exp %521 : vector<8x128xf32>
    %cst_219 = arith.constant 1.000000e+00 : f32
    %523 = vector.broadcast %cst_219 : f32 to vector<8x128xf32>
    %524 = arith.addf %523, %522 : vector<8x128xf32>
    %525 = arith.divf %523, %524 : vector<8x128xf32>
    %526 = math.tanh %520 : vector<8x128xf32>
    %527 = vector.extract_strided_slice %525 {offsets = [0, 0], sizes = [8, 32], strides = [1, 1]} : vector<8x128xf32> to vector<8x32xf32>
    %528 = vector.extract_strided_slice %525 {offsets = [0, 32], sizes = [8, 32], strides = [1, 1]} : vector<8x128xf32> to vector<8x32xf32>
    %529 = vector.extract_strided_slice %526 {offsets = [0, 64], sizes = [8, 32], strides = [1, 1]} : vector<8x128xf32> to vector<8x32xf32>
    %530 = vector.extract_strided_slice %525 {offsets = [0, 96], sizes = [8, 32], strides = [1, 1]} : vector<8x128xf32> to vector<8x32xf32>
    %531 = arith.mulf %528, %453 : vector<8x32xf32>
    %532 = arith.mulf %527, %529 : vector<8x32xf32>
    %533 = arith.addf %531, %532 : vector<8x32xf32>
    %534 = math.tanh %533 : vector<8x32xf32>
    %535 = arith.mulf %530, %534 : vector<8x32xf32>
    %c0_220 = arith.constant 0 : index
    %c0_221 = arith.constant 0 : index
    %536 = vector.load %arg9[%c0_220, %c0_221] : memref<32x128xf32, #tpu.memory_space<vmem>>, vector<32x128xf32>
    %cst_222 = arith.constant dense<0.000000e+00> : vector<8x128xf32>
    %537 = tpu.matmul %455, %536, %cst_222 {dimension_numbers = #tpu.dot_dimension_numbers<[1], [0], [0], [1], [0, 0, 1, 1], [], []>} : vector<8x32xf32>, vector<32x128xf32>, vector<8x128xf32> -> vector<8x128xf32>
    %c0_223 = arith.constant 0 : index
    %c0_224 = arith.constant 0 : index
    %538 = vector.load %arg11[%c0_223, %c0_224] : memref<1x128xf32, #tpu.memory_space<vmem>>, vector<1x128xf32>
    %539 = vector.broadcast %538 : vector<1x128xf32> to vector<8x128xf32>
    %540 = arith.addf %537, %539 : vector<8x128xf32>
    %c0_225 = arith.constant 0 : index
    %c0_226 = arith.constant 0 : index
    %541 = vector.load %arg10[%c0_225, %c0_226] : memref<32x128xf32, #tpu.memory_space<vmem>>, vector<32x128xf32>
    %cst_227 = arith.constant dense<0.000000e+00> : vector<8x128xf32>
    %542 = tpu.matmul %478, %541, %cst_227 {dimension_numbers = #tpu.dot_dimension_numbers<[1], [0], [0], [1], [0, 0, 1, 1], [], []>} : vector<8x32xf32>, vector<32x128xf32>, vector<8x128xf32> -> vector<8x128xf32>
    %543 = arith.addf %540, %542 : vector<8x128xf32>
    %544 = arith.negf %543 : vector<8x128xf32>
    %545 = math.exp %544 : vector<8x128xf32>
    %cst_228 = arith.constant 1.000000e+00 : f32
    %546 = vector.broadcast %cst_228 : f32 to vector<8x128xf32>
    %547 = arith.addf %546, %545 : vector<8x128xf32>
    %548 = arith.divf %546, %547 : vector<8x128xf32>
    %549 = math.tanh %543 : vector<8x128xf32>
    %550 = vector.extract_strided_slice %548 {offsets = [0, 0], sizes = [8, 32], strides = [1, 1]} : vector<8x128xf32> to vector<8x32xf32>
    %551 = vector.extract_strided_slice %548 {offsets = [0, 32], sizes = [8, 32], strides = [1, 1]} : vector<8x128xf32> to vector<8x32xf32>
    %552 = vector.extract_strided_slice %549 {offsets = [0, 64], sizes = [8, 32], strides = [1, 1]} : vector<8x128xf32> to vector<8x32xf32>
    %553 = vector.extract_strided_slice %548 {offsets = [0, 96], sizes = [8, 32], strides = [1, 1]} : vector<8x128xf32> to vector<8x32xf32>
    %554 = arith.mulf %551, %476 : vector<8x32xf32>
    %555 = arith.mulf %550, %552 : vector<8x32xf32>
    %556 = arith.addf %554, %555 : vector<8x32xf32>
    %557 = math.tanh %556 : vector<8x32xf32>
    %558 = arith.mulf %553, %557 : vector<8x32xf32>
    %c0_229 = arith.constant 0 : index
    %c0_230 = arith.constant 0 : index
    %559 = vector.load %arg12[%c0_229, %c0_230] : memref<1x32xf32, #tpu.memory_space<vmem>>, vector<1x32xf32>
    %560 = vector.broadcast %559 : vector<1x32xf32> to vector<8x32xf32>
    %561 = arith.mulf %558, %560 : vector<8x32xf32>
    %cst_231 = arith.constant dense<0.000000e+00> : vector<8xf32>
    %562 = vector.multi_reduction <add>, %561, %cst_231 [1] : vector<8x32xf32> to vector<8xf32>
    %563 = vector.shape_cast %562 : vector<8xf32> to vector<8x1xf32>
    %c0_232 = arith.constant 0 : index
    %c0_233 = arith.constant 0 : index
    %564 = vector.load %arg13[%c0_232, %c0_233] : memref<1x1xf32, #tpu.memory_space<vmem>>, vector<1x1xf32>
    %565 = vector.broadcast %564 : vector<1x1xf32> to vector<8x1xf32>
    %566 = arith.addf %563, %565 : vector<8x1xf32>
    %c0_234 = arith.constant 0 : index
    %c0_235 = arith.constant 0 : index
    %567 = vector.load %arg6[%c0_234, %c0_235] : memref<32x128xf32, #tpu.memory_space<vmem>>, vector<32x128xf32>
    %cst_236 = arith.constant dense<0.000000e+00> : vector<8x128xf32>
    %568 = tpu.matmul %512, %567, %cst_236 {dimension_numbers = #tpu.dot_dimension_numbers<[1], [0], [0], [1], [0, 0, 1, 1], [], []>} : vector<8x32xf32>, vector<32x128xf32>, vector<8x128xf32> -> vector<8x128xf32>
    %c0_237 = arith.constant 0 : index
    %c0_238 = arith.constant 0 : index
    %569 = vector.load %arg8[%c0_237, %c0_238] : memref<1x128xf32, #tpu.memory_space<vmem>>, vector<1x128xf32>
    %570 = vector.broadcast %569 : vector<1x128xf32> to vector<8x128xf32>
    %571 = arith.addf %568, %570 : vector<8x128xf32>
    %c0_239 = arith.constant 0 : index
    %c0_240 = arith.constant 0 : index
    %572 = vector.load %arg7[%c0_239, %c0_240] : memref<32x128xf32, #tpu.memory_space<vmem>>, vector<32x128xf32>
    %cst_241 = arith.constant dense<0.000000e+00> : vector<8x128xf32>
    %573 = tpu.matmul %535, %572, %cst_241 {dimension_numbers = #tpu.dot_dimension_numbers<[1], [0], [0], [1], [0, 0, 1, 1], [], []>} : vector<8x32xf32>, vector<32x128xf32>, vector<8x128xf32> -> vector<8x128xf32>
    %574 = arith.addf %571, %573 : vector<8x128xf32>
    %575 = arith.negf %574 : vector<8x128xf32>
    %576 = math.exp %575 : vector<8x128xf32>
    %cst_242 = arith.constant 1.000000e+00 : f32
    %577 = vector.broadcast %cst_242 : f32 to vector<8x128xf32>
    %578 = arith.addf %577, %576 : vector<8x128xf32>
    %579 = arith.divf %577, %578 : vector<8x128xf32>
    %580 = math.tanh %574 : vector<8x128xf32>
    %581 = vector.extract_strided_slice %579 {offsets = [0, 0], sizes = [8, 32], strides = [1, 1]} : vector<8x128xf32> to vector<8x32xf32>
    %582 = vector.extract_strided_slice %579 {offsets = [0, 32], sizes = [8, 32], strides = [1, 1]} : vector<8x128xf32> to vector<8x32xf32>
    %583 = vector.extract_strided_slice %580 {offsets = [0, 64], sizes = [8, 32], strides = [1, 1]} : vector<8x128xf32> to vector<8x32xf32>
    %584 = vector.extract_strided_slice %579 {offsets = [0, 96], sizes = [8, 32], strides = [1, 1]} : vector<8x128xf32> to vector<8x32xf32>
    %585 = arith.mulf %582, %533 : vector<8x32xf32>
    %586 = arith.mulf %581, %583 : vector<8x32xf32>
    %587 = arith.addf %585, %586 : vector<8x32xf32>
    %588 = math.tanh %587 : vector<8x32xf32>
    %589 = arith.mulf %584, %588 : vector<8x32xf32>
    %c0_243 = arith.constant 0 : index
    %c0_244 = arith.constant 0 : index
    %590 = vector.load %arg9[%c0_243, %c0_244] : memref<32x128xf32, #tpu.memory_space<vmem>>, vector<32x128xf32>
    %cst_245 = arith.constant dense<0.000000e+00> : vector<8x128xf32>
    %591 = tpu.matmul %535, %590, %cst_245 {dimension_numbers = #tpu.dot_dimension_numbers<[1], [0], [0], [1], [0, 0, 1, 1], [], []>} : vector<8x32xf32>, vector<32x128xf32>, vector<8x128xf32> -> vector<8x128xf32>
    %c0_246 = arith.constant 0 : index
    %c0_247 = arith.constant 0 : index
    %592 = vector.load %arg11[%c0_246, %c0_247] : memref<1x128xf32, #tpu.memory_space<vmem>>, vector<1x128xf32>
    %593 = vector.broadcast %592 : vector<1x128xf32> to vector<8x128xf32>
    %594 = arith.addf %591, %593 : vector<8x128xf32>
    %c0_248 = arith.constant 0 : index
    %c0_249 = arith.constant 0 : index
    %595 = vector.load %arg10[%c0_248, %c0_249] : memref<32x128xf32, #tpu.memory_space<vmem>>, vector<32x128xf32>
    %cst_250 = arith.constant dense<0.000000e+00> : vector<8x128xf32>
    %596 = tpu.matmul %558, %595, %cst_250 {dimension_numbers = #tpu.dot_dimension_numbers<[1], [0], [0], [1], [0, 0, 1, 1], [], []>} : vector<8x32xf32>, vector<32x128xf32>, vector<8x128xf32> -> vector<8x128xf32>
    %597 = arith.addf %594, %596 : vector<8x128xf32>
    %598 = arith.negf %597 : vector<8x128xf32>
    %599 = math.exp %598 : vector<8x128xf32>
    %cst_251 = arith.constant 1.000000e+00 : f32
    %600 = vector.broadcast %cst_251 : f32 to vector<8x128xf32>
    %601 = arith.addf %600, %599 : vector<8x128xf32>
    %602 = arith.divf %600, %601 : vector<8x128xf32>
    %603 = math.tanh %597 : vector<8x128xf32>
    %604 = vector.extract_strided_slice %602 {offsets = [0, 0], sizes = [8, 32], strides = [1, 1]} : vector<8x128xf32> to vector<8x32xf32>
    %605 = vector.extract_strided_slice %602 {offsets = [0, 32], sizes = [8, 32], strides = [1, 1]} : vector<8x128xf32> to vector<8x32xf32>
    %606 = vector.extract_strided_slice %603 {offsets = [0, 64], sizes = [8, 32], strides = [1, 1]} : vector<8x128xf32> to vector<8x32xf32>
    %607 = vector.extract_strided_slice %602 {offsets = [0, 96], sizes = [8, 32], strides = [1, 1]} : vector<8x128xf32> to vector<8x32xf32>
    %608 = arith.mulf %605, %556 : vector<8x32xf32>
    %609 = arith.mulf %604, %606 : vector<8x32xf32>
    %610 = arith.addf %608, %609 : vector<8x32xf32>
    %611 = math.tanh %610 : vector<8x32xf32>
    %612 = arith.mulf %607, %611 : vector<8x32xf32>
    %c0_252 = arith.constant 0 : index
    %c0_253 = arith.constant 0 : index
    %613 = vector.load %arg12[%c0_252, %c0_253] : memref<1x32xf32, #tpu.memory_space<vmem>>, vector<1x32xf32>
    %614 = vector.broadcast %613 : vector<1x32xf32> to vector<8x32xf32>
    %615 = arith.mulf %612, %614 : vector<8x32xf32>
    %cst_254 = arith.constant dense<0.000000e+00> : vector<8xf32>
    %616 = vector.multi_reduction <add>, %615, %cst_254 [1] : vector<8x32xf32> to vector<8xf32>
    %617 = vector.shape_cast %616 : vector<8xf32> to vector<8x1xf32>
    %c0_255 = arith.constant 0 : index
    %c0_256 = arith.constant 0 : index
    %618 = vector.load %arg13[%c0_255, %c0_256] : memref<1x1xf32, #tpu.memory_space<vmem>>, vector<1x1xf32>
    %619 = vector.broadcast %618 : vector<1x1xf32> to vector<8x1xf32>
    %620 = arith.addf %617, %619 : vector<8x1xf32>
    %c0_257 = arith.constant 0 : index
    %c0_258 = arith.constant 0 : index
    %621 = vector.load %arg9[%c0_257, %c0_258] : memref<32x128xf32, #tpu.memory_space<vmem>>, vector<32x128xf32>
    %cst_259 = arith.constant dense<0.000000e+00> : vector<8x128xf32>
    %622 = tpu.matmul %589, %621, %cst_259 {dimension_numbers = #tpu.dot_dimension_numbers<[1], [0], [0], [1], [0, 0, 1, 1], [], []>} : vector<8x32xf32>, vector<32x128xf32>, vector<8x128xf32> -> vector<8x128xf32>
    %c0_260 = arith.constant 0 : index
    %c0_261 = arith.constant 0 : index
    %623 = vector.load %arg11[%c0_260, %c0_261] : memref<1x128xf32, #tpu.memory_space<vmem>>, vector<1x128xf32>
    %624 = vector.broadcast %623 : vector<1x128xf32> to vector<8x128xf32>
    %625 = arith.addf %622, %624 : vector<8x128xf32>
    %c0_262 = arith.constant 0 : index
    %c0_263 = arith.constant 0 : index
    %626 = vector.load %arg10[%c0_262, %c0_263] : memref<32x128xf32, #tpu.memory_space<vmem>>, vector<32x128xf32>
    %cst_264 = arith.constant dense<0.000000e+00> : vector<8x128xf32>
    %627 = tpu.matmul %612, %626, %cst_264 {dimension_numbers = #tpu.dot_dimension_numbers<[1], [0], [0], [1], [0, 0, 1, 1], [], []>} : vector<8x32xf32>, vector<32x128xf32>, vector<8x128xf32> -> vector<8x128xf32>
    %628 = arith.addf %625, %627 : vector<8x128xf32>
    %629 = arith.negf %628 : vector<8x128xf32>
    %630 = math.exp %629 : vector<8x128xf32>
    %cst_265 = arith.constant 1.000000e+00 : f32
    %631 = vector.broadcast %cst_265 : f32 to vector<8x128xf32>
    %632 = arith.addf %631, %630 : vector<8x128xf32>
    %633 = arith.divf %631, %632 : vector<8x128xf32>
    %634 = math.tanh %628 : vector<8x128xf32>
    %635 = vector.extract_strided_slice %633 {offsets = [0, 0], sizes = [8, 32], strides = [1, 1]} : vector<8x128xf32> to vector<8x32xf32>
    %636 = vector.extract_strided_slice %633 {offsets = [0, 32], sizes = [8, 32], strides = [1, 1]} : vector<8x128xf32> to vector<8x32xf32>
    %637 = vector.extract_strided_slice %634 {offsets = [0, 64], sizes = [8, 32], strides = [1, 1]} : vector<8x128xf32> to vector<8x32xf32>
    %638 = vector.extract_strided_slice %633 {offsets = [0, 96], sizes = [8, 32], strides = [1, 1]} : vector<8x128xf32> to vector<8x32xf32>
    %639 = arith.mulf %636, %610 : vector<8x32xf32>
    %640 = arith.mulf %635, %637 : vector<8x32xf32>
    %641 = arith.addf %639, %640 : vector<8x32xf32>
    %642 = math.tanh %641 : vector<8x32xf32>
    %643 = arith.mulf %638, %642 : vector<8x32xf32>
    %c0_266 = arith.constant 0 : index
    %c0_267 = arith.constant 0 : index
    %644 = vector.load %arg12[%c0_266, %c0_267] : memref<1x32xf32, #tpu.memory_space<vmem>>, vector<1x32xf32>
    %645 = vector.broadcast %644 : vector<1x32xf32> to vector<8x32xf32>
    %646 = arith.mulf %643, %645 : vector<8x32xf32>
    %cst_268 = arith.constant dense<0.000000e+00> : vector<8xf32>
    %647 = vector.multi_reduction <add>, %646, %cst_268 [1] : vector<8x32xf32> to vector<8xf32>
    %648 = vector.shape_cast %647 : vector<8xf32> to vector<8x1xf32>
    %c0_269 = arith.constant 0 : index
    %c0_270 = arith.constant 0 : index
    %649 = vector.load %arg13[%c0_269, %c0_270] : memref<1x1xf32, #tpu.memory_space<vmem>>, vector<1x1xf32>
    %650 = vector.broadcast %649 : vector<1x1xf32> to vector<8x1xf32>
    %651 = arith.addf %648, %650 : vector<8x1xf32>
    %c0_271 = arith.constant 0 : index
    %c0_272 = arith.constant 0 : index
    %c0_273 = arith.constant 0 : index
    %652 = vector.load %arg15[%c0_271, %c0_272, %c0_273] : memref<3x8x32xf32, #tpu.memory_space<vmem>>, vector<1x8x32xf32>
    %653 = vector.shape_cast %652 : vector<1x8x32xf32> to vector<8x32xf32>
    %654 = vector.shape_cast %512 : vector<8x32xf32> to vector<1x8x32xf32>
    tpu.vector_store %arg15[%c0_271, %c0_272, %c0_273], %654 {strides = array<i32>} : memref<3x8x32xf32, #tpu.memory_space<vmem>>, vector<1x8x32xf32>,
    %c0_274 = arith.constant 0 : index
    %c0_275 = arith.constant 0 : index
    %c0_276 = arith.constant 0 : index
    %655 = vector.load %arg16[%c0_274, %c0_275, %c0_276] : memref<3x8x32xf32, #tpu.memory_space<vmem>>, vector<1x8x32xf32>
    %656 = vector.shape_cast %655 : vector<1x8x32xf32> to vector<8x32xf32>
    %657 = vector.shape_cast %510 : vector<8x32xf32> to vector<1x8x32xf32>
    tpu.vector_store %arg16[%c0_274, %c0_275, %c0_276], %657 {strides = array<i32>} : memref<3x8x32xf32, #tpu.memory_space<vmem>>, vector<1x8x32xf32>,
    %c1_277 = arith.constant 1 : index
    %c0_278 = arith.constant 0 : index
    %c0_279 = arith.constant 0 : index
    %658 = vector.load %arg15[%c1_277, %c0_278, %c0_279] : memref<3x8x32xf32, #tpu.memory_space<vmem>>, vector<1x8x32xf32>
    %659 = vector.shape_cast %658 : vector<1x8x32xf32> to vector<8x32xf32>
    %660 = vector.shape_cast %589 : vector<8x32xf32> to vector<1x8x32xf32>
    tpu.vector_store %arg15[%c1_277, %c0_278, %c0_279], %660 {strides = array<i32>} : memref<3x8x32xf32, #tpu.memory_space<vmem>>, vector<1x8x32xf32>,
    %c1_280 = arith.constant 1 : index
    %c0_281 = arith.constant 0 : index
    %c0_282 = arith.constant 0 : index
    %661 = vector.load %arg16[%c1_280, %c0_281, %c0_282] : memref<3x8x32xf32, #tpu.memory_space<vmem>>, vector<1x8x32xf32>
    %662 = vector.shape_cast %661 : vector<1x8x32xf32> to vector<8x32xf32>
    %663 = vector.shape_cast %587 : vector<8x32xf32> to vector<1x8x32xf32>
    tpu.vector_store %arg16[%c1_280, %c0_281, %c0_282], %663 {strides = array<i32>} : memref<3x8x32xf32, #tpu.memory_space<vmem>>, vector<1x8x32xf32>,
    %c2_283 = arith.constant 2 : index
    %c0_284 = arith.constant 0 : index
    %c0_285 = arith.constant 0 : index
    %664 = vector.load %arg15[%c2_283, %c0_284, %c0_285] : memref<3x8x32xf32, #tpu.memory_space<vmem>>, vector<1x8x32xf32>
    %665 = vector.shape_cast %664 : vector<1x8x32xf32> to vector<8x32xf32>
    %666 = vector.shape_cast %643 : vector<8x32xf32> to vector<1x8x32xf32>
    tpu.vector_store %arg15[%c2_283, %c0_284, %c0_285], %666 {strides = array<i32>} : memref<3x8x32xf32, #tpu.memory_space<vmem>>, vector<1x8x32xf32>,
    %c2_286 = arith.constant 2 : index
    %c0_287 = arith.constant 0 : index
    %c0_288 = arith.constant 0 : index
    %667 = vector.load %arg16[%c2_286, %c0_287, %c0_288] : memref<3x8x32xf32, #tpu.memory_space<vmem>>, vector<1x8x32xf32>
    %668 = vector.shape_cast %667 : vector<1x8x32xf32> to vector<8x32xf32>
    %669 = vector.shape_cast %641 : vector<8x32xf32> to vector<1x8x32xf32>
    tpu.vector_store %arg16[%c2_286, %c0_287, %c0_288], %669 {strides = array<i32>} : memref<3x8x32xf32, #tpu.memory_space<vmem>>, vector<1x8x32xf32>,
    %670 = tpu.concatenate %166, %246, %326, %406, %486, %566, %620, %651 in 1 : vector<8x1xf32>, vector<8x1xf32>, vector<8x1xf32>, vector<8x1xf32>, vector<8x1xf32>, vector<8x1xf32>, vector<8x1xf32>, vector<8x1xf32> -> vector<8x8xf32>
    %c0_289 = arith.constant 0 : index
    %c0_290 = arith.constant 0 : index
    %671 = vector.load %arg14[%c0_289, %c0_290] : memref<8x8xf32, #tpu.memory_space<vmem>>, vector<8x8xf32>
    tpu.vector_store %arg14[%c0_289, %c0_290], %670 {strides = array<i32>} : memref<8x8xf32, #tpu.memory_space<vmem>>, vector<8x8xf32>,
    return
  }
}

</mosaic_0001>

<bundles_post_ra>
// kernel: lstm_forward.1
= control target key start
LH: loop header
LB: loop body
LE: loop exit
PB: predicated region body
PF: predicated region fallthrough
CT: control target
= control target key end

     0   :  { %s6320_s0 = inlined_call_operand.vmem [shape: f32[64,1], index: 0, kind: input, shape index: {}]   ;;  %s6321_s1 = inlined_call_operand.hbm [shape: f32[3,8,32], index: 1, kind: input, shape index: {}]   ;;  %s6322_s2 = inlined_call_operand.hbm [shape: f32[3,8,32], index: 2, kind: input, shape index: {}]   ;;  %s6323_s3 = inlined_call_operand.vmem [shape: f32[1,128], index: 3, kind: input, shape index: {}]   ;;  %s6324_s4 = inlined_call_operand.vmem [shape: f32[32,128], index: 4, kind: input, shape index: {}]   ;;  %s6325_s5 = inlined_call_operand.hbm [shape: f32[1,128], index: 5, kind: input, shape index: {}]   ;;  %s6326_s6 = inlined_call_operand.vmem [shape: f32[32,128], index: 6, kind: input, shape index: {}]   ;;  %s6327_s7 = inlined_call_operand.vmem [shape: f32[32,128], index: 7, kind: input, shape index: {}]   ;;  %s6328_s8 = inlined_call_operand.hbm [shape: f32[1,128], index: 8, kind: input, shape index: {}]   ;;  %s6329_s9 = inlined_call_operand.vmem [shape: f32[32,128], index: 9, kind: input, shape index: {}]   ;;  %s6330_s10 = inlined_call_operand.hbm [shape: f32[32,128], index: 10, kind: input, shape index: {}]   ;;  %s6331_s11 = inlined_call_operand.vmem [shape: f32[1,128], index: 11, kind: input, shape index: {}]   ;;  %s6332_s12 = inlined_call_operand.hbm [shape: f32[1,32], index: 12, kind: input, shape index: {}]   ;;  %s6333_s13 = inlined_call_operand.<no memory space> [shape: f32[1,1], index: 13, kind: input, shape index: {}]   ;;  %s6334_s14 = inlined_call_operand.vmem [shape: f32[8,8], index: 14, kind: output, shape index: {0}]   ;;  %s6335_s15 = inlined_call_operand.hbm [shape: f32[3,8,32], index: 15, kind: output, shape index: {1}]   ;;  %s6336_s16 = inlined_call_operand.hbm [shape: f32[3,8,32], index: 16, kind: output, shape index: {2}]  }
   0x1   :  { %6338 = sst [smem:[#allocation23_spill]] %s6320_s0  ;;  %v22_v0 = vstv %s6333_s13 }
   0x2   :  { %23 = vst [vmem:[#allocation2] sm:$0x1] %v22_v0 }
   0x3   :  { %24 = vsyncpa [#allocation4], 0 }
   0x4   :  { %25 = vsyncpa [#allocation7], 0 }
   0x5   :  { %26 = vsyncpa [#allocation10], 0 }
   0x6   :  { %27 = vsyncpa [#allocation13], 0 }
   0x7   :  { %28 = vsyncpa [#allocation5], 0 }
   0x8   :  { %29 = vsyncpa [#allocation16], 0  ;;  %s5397_s23 = smov [#allocation6]   ;;  %s5398_s25 = smov [#allocation9]  }
   0x9   :  { %s49_s24 = sshll.u32 %s5397_s23, 4  ;;  %s80_s26 = sshll.u32 %s5398_s25, 4  ;;  %s50_s24 = int_to_ptr.vmem [resolvable:$true] %s49_s24  ;;  %s5509_s26 = int_to_ptr.vmem [resolvable:$true] %s80_s26 }
   0xa   :  { %s5209_s29 = scalar_lea.hbm %s6322_s2, 384 }
   0xb   :  { %p5210_p0 = scmp.ne.s32.totalorder %s6322_s2, %s5209_s29  ;;  %p5213_p1 = scmp.lt.u32.totalorder %s5209_s29, %s6322_s2 }
   0xd   :  { %p5215_p2 = pnand %p5213_p1, %p5210_p0 }
   0xf   :  { %5218 = shalt.err (!%p5215_p2)
}
  0x10   :  { %s5219_s18 = scalar_lea.vmem %s50_s24, 384  ;;  %p5224_p4 = scmp.lt.s32.totalorder %s50_s24, %s50_s24 }
  0x11   :  { %p5220_p3 = scmp.ne.s32.totalorder %s50_s24, %s5219_s18  ;;  %p5225_p5 = scmp.lt.s32.totalorder %s5219_s18, %s5219_s18 }
  0x13   :  { %p5226_p6 = por %p5225_p5, %p5224_p4 }
  0x15   :  { %p5227_p7 = pnand %p5226_p6, %p5220_p3 }
  0x17   :  { %5230 = shalt.err (!%p5227_p7)
}
  0x18   :  { %s5399_s19 = smov 128   ;;  %s5400_s20 = smov 8  }
  0x19   :  { %55 = dma.hbm_to_vmem [thread:$0]  %s6322_s2, 384, %s50_s24, [#allocation7], %s5399_s19, %s5399_s19, %s5400_s20  }
  0x1a   :  { %s5231_s27 = scalar_lea.hbm %s6328_s8, 16 }
  0x1b   :  { %p5232_p8 = scmp.ne.s32.totalorder %s6328_s8, %s5231_s27  ;;  %p5235_p9 = scmp.lt.u32.totalorder %s5231_s27, %s6328_s8 }
  0x1d   :  { %p5237_p10 = pnand %p5235_p9, %p5232_p8 }
  0x1f   :  { %5240 = shalt.err (!%p5237_p10)
}
  0x20   :  { %s5241_s0 = scalar_lea.vmem %s5509_s26, 16  ;;  %s5245_s2 = scalar_lea.vmem %s5509_s26, 32 }
  0x21   :  { %p5242_p11 = scmp.ne.s32.totalorder %s5509_s26, %s5241_s0  ;;  %p5246_p12 = scmp.lt.s32.totalorder %s5509_s26, %s5509_s26 }
  0x22   :  { %p5247_p13 = scmp.lt.s32.totalorder %s5245_s2, %s5241_s0 }
  0x24   :  { %p5248_p0 = por %p5247_p13, %p5246_p12 }
  0x26   :  { %p5249_p1 = pnand %p5248_p0, %p5242_p11 }
  0x28   :  { %5252 = shalt.err (!%p5249_p1)
}
  0x29   :  { %83 = dma.hbm_to_vmem [thread:$0]  %s6328_s8, 16, %s5509_s26, [#allocation10]  }
  0x2a   :  { %s5401_s18 = smov [#allocation3]   ;;  %s5402_s22 = smov [#allocation8]  }
  0x2b   :  { %s37_s21 = sshll.u32 %s5401_s18, 4  ;;  %s66_s23 = sshll.u32 %s5402_s22, 4  ;;  %s38_s21 = int_to_ptr.vmem [resolvable:$true] %s37_s21  ;;  %s67_s23 = int_to_ptr.vmem [resolvable:$true] %s66_s23 }
  0x2c   :  { %s5253_s28 = scalar_lea.hbm %s6321_s1, 384 }
  0x2d   :  { %p5254_p2 = scmp.ne.s32.totalorder %s6321_s1, %s5253_s28  ;;  %p5257_p3 = scmp.lt.u32.totalorder %s5253_s28, %s6321_s1 }
  0x2f   :  { %p5259_p4 = pnand %p5257_p3, %p5254_p2 }
  0x31   :  { %5262 = shalt.err (!%p5259_p4)
}
  0x32   :  { %s5263_s8 = scalar_lea.vmem %s38_s21, 384  ;;  %p5268_p6 = scmp.lt.s32.totalorder %s38_s21, %s38_s21 }
  0x33   :  { %p5264_p5 = scmp.ne.s32.totalorder %s38_s21, %s5263_s8  ;;  %p5269_p7 = scmp.lt.s32.totalorder %s5263_s8, %s5263_s8 }
  0x35   :  { %p5270_p8 = por %p5269_p7, %p5268_p6 }
  0x37   :  { %p5271_p9 = pnand %p5270_p8, %p5264_p5 }
  0x39   :  { %5274 = shalt.err (!%p5271_p9)
}
  0x3a   :  { %43 = dma.hbm_to_vmem [thread:$0]  %s6321_s1, 384, %s38_s21, [#allocation4], %s5399_s19, %s5399_s19, %s5400_s20  }
  0x3b   :  { %s5275_s18 = scalar_lea.hbm %s6325_s5, 16 }
  0x3c   :  { %p5276_p10 = scmp.ne.s32.totalorder %s6325_s5, %s5275_s18  ;;  %p5279_p11 = scmp.lt.u32.totalorder %s5275_s18, %s6325_s5 }
  0x3e   :  { %p5281_p12 = pnand %p5279_p11, %p5276_p10 }
  0x40   :  { %5284 = shalt.err (!%p5281_p12)
}
  0x41   :  { %s5285_s29 = scalar_lea.vmem %s67_s23, 16  ;;  %s5289_s30 = scalar_lea.vmem %s67_s23, 32 }
  0x42   :  { %p5286_p13 = scmp.ne.s32.totalorder %s67_s23, %s5285_s29  ;;  %p5290_p0 = scmp.lt.s32.totalorder %s67_s23, %s67_s23 }
  0x43   :  { %p5291_p1 = scmp.lt.s32.totalorder %s5289_s30, %s5285_s29 }
  0x45   :  { %p5292_p2 = por %p5291_p1, %p5290_p0 }
  0x47   :  { %p5293_p3 = pnand %p5292_p2, %p5286_p13 }
  0x49   :  { %5296 = shalt.err (!%p5293_p3)
}
  0x4a   :  { %69 = dma.hbm_to_vmem [thread:$0]  %s6325_s5, 16, %s67_s23, [#allocation7]  }
  0x4b   :  { %s5403_s13 = smov [#allocation11]   ;;  %s5404_s8 = smov [#allocation12]  }
  0x4c   :  { %s91_s0 = sshll.u32 %s5403_s13, 4  ;;  %s106_s26 = sshll.u32 %s5404_s8, 4  ;;  %s92_s0 = int_to_ptr.vmem [resolvable:$true] %s91_s0  ;;  %s107_s26 = int_to_ptr.vmem [resolvable:$true] %s106_s26 }
  0x4d   :  { %s5297_s17 = scalar_lea.hbm %s6330_s10, 512 }
  0x4e   :  { %p5298_p4 = scmp.ne.s32.totalorder %s6330_s10, %s5297_s17  ;;  %p5301_p5 = scmp.lt.u32.totalorder %s5297_s17, %s6330_s10 }
  0x50   :  { %p5303_p6 = pnand %p5301_p5, %p5298_p4 }
  0x52   :  { %5306 = shalt.err (!%p5303_p6)
}
  0x53   :  { %s5307_s5 = scalar_lea.vmem %s92_s0, 512  ;;  %p5312_p8 = scmp.lt.s32.totalorder %s92_s0, %s92_s0 }
  0x54   :  { %p5308_p7 = scmp.ne.s32.totalorder %s92_s0, %s5307_s5  ;;  %p5313_p9 = scmp.lt.s32.totalorder %s5307_s5, %s5307_s5 }
  0x56   :  { %p5314_p10 = por %p5313_p9, %p5312_p8 }
  0x58   :  { %p5315_p11 = pnand %p5314_p10, %p5308_p7 }
  0x5a   :  { %5318 = shalt.err (!%p5315_p11)
}
  0x5b   :  { %97 = dma.hbm_to_vmem [thread:$0]  %s6330_s10, 512, %s92_s0, [#allocation10], %s5399_s19, %s5399_s19, %s5400_s20  }
  0x5c   :  { %s5319_s1 = scalar_lea.hbm %s6332_s12, 16 }
  0x5d   :  { %p5320_p12 = scmp.ne.s32.totalorder %s6332_s12, %s5319_s1  ;;  %p5323_p13 = scmp.lt.u32.totalorder %s5319_s1, %s6332_s12 }
  0x5f   :  { %p5325_p0 = pnand %p5323_p13, %p5320_p12 }
  0x61   :  { %5328 = shalt.err (!%p5325_p0)
}
  0x62   :  { %s5329_s24 = scalar_lea.vmem %s107_s26, 16  ;;  %s5333_s17 = scalar_lea.vmem %s107_s26, 32 }
  0x63   :  { %p5330_p1 = scmp.ne.s32.totalorder %s107_s26, %s5329_s24  ;;  %p5334_p2 = scmp.lt.s32.totalorder %s107_s26, %s107_s26 }
  0x64   :  { %p5335_p3 = scmp.lt.s32.totalorder %s5333_s17, %s5329_s24 }
  0x66   :  { %p5336_p4 = por %p5335_p3, %p5334_p2 }
  0x68   :  { %p5337_p5 = pnand %p5336_p4, %p5330_p1 }
  0x6a   :  { %5340 = shalt.err (!%p5337_p5)
}
  0x6b   :  { %109 = dma.hbm_to_vmem [thread:$0]  %s6332_s12, 16, %s107_s26, [#allocation13]  }
  0x6c   :  { %5385 = dma.done.wait [#allocation4], 384  }
  0x6d   :  { %5386 = vsyncadd [#allocation4], 4294966912 }
  0x6e   :  { %5387 = dma.done.wait [#allocation7], 400  }
  0x6f   :  { %5388 = vsyncadd [#allocation7], 4294966896 }
  0x70   :  { %5389 = dma.done.wait [#allocation10], 528  }
  0x71   :  { %5390 = vsyncadd [#allocation10], 4294966768 }
  0x72   :  { %5391 = dma.done.wait [#allocation13], 16  }
  0x73   :  { %5392 = vsyncadd [#allocation13], 4294967280  ;;  %v5405_v1 = vmov 0.0|0.0   ;;  %vm5406_vm0 = vmmov 0   ;;  %v5407_v2 = vmov 0.0   ;;  %v5408_v3 = vmov 0  }
  0x74   :  { %4699 = vmatprep.subr.bf16.mxu1 %v5405_v1  ;;  %4267 = vmatprep.mubr.msk.f32.mxu1 %vm5406_vm0, %v5407_v2  ;;  %v162_v4 = vld [vmem:[%s6324_s4] sm:$0xff]  ;;  %v163_v5 = vld [vmem:[%s6324_s4 + $0x8] sm:$0xff]  ;;  %v164_v6 = vld [vmem:[%s6324_s4 + $0x10] sm:$0xff]  ;;  %s6339_s30 = sld [smem:[#allocation23_spill]]  ;;  %s5409_s1 = smov 32   ;;  %vm166_vm1 = vcmask 261120  }
  0x75   :  { %5011 = vset.pattern.permute.xlu0 %v5408_v3  ;;  %4711 = vmatprep.subr.bf16.mxu0 %v5405_v1  ;;  %v5613_v7 = vpack.c.bf16 %v163_v5, %v162_v4  ;;  %v165_v8 = vld [vmem:[%s6324_s4 + $0x18] sm:$0xff]  ;;  %v130_v12 = vld [vmem:[#allocation3] sm:$0xff]  ;;  %v5638_v13 = vld [vmem:[%s6323_s3] ss:$0 sm:$0xff]  ;;  %s5410_s13 = smov 64   ;;  %s5413_s2 = smov 3  }
  0x76   :  { %4289 = vmatprep.mubr.msk.f32.mxu0 %vm5406_vm0, %v5407_v2  ;;  %5012 = vset.pattern.permute.xlu1 %v5408_v3  ;;  %v135_v10 = vld [vmem:[#allocation6] sm:$0xff]  ;;  %v5622_v11 = vpack.c.bf16 %v165_v8, %v164_v6  ;;  %v5641_v16 = vld [vmem:[#allocation8] ss:$0 sm:$0xff]  ;;  %v378_v35 = vld [vmem:[%s6326_s6 + $0x8] sm:$0xff]  ;;  %s5414_s24 = smov 2   ;;  %s5416_s17 = smov 5  }
  0x77   :  { %4701 = vmatpush3.bf16.msra.mxu1 %v5613_v7  ;;  %249 = vrot.lane.b32.xlu1 %v135_v10, %s5409_s1  ;;  %v377_v34 = vld [vmem:[%s6326_s6] sm:$0xff]  ;;  %v379_v36 = vld [vmem:[%s6326_s6 + $0x10] sm:$0xff]  ;;  %v380_v38 = vld [vmem:[%s6326_s6 + $0x18] sm:$0xff]  ;;  %s5417_s10 = smov 6   ;;  %s5418_s0 = smov 7  }
  0x78   :  { %4702 = vmatprep.subr.bf16.mxu1 %v5405_v1  ;;  %v5662_v37 = vpack.c.bf16 %v378_v35, %v377_v34  ;;  %v5668_v39 = vpack.c.bf16 %v380_v38, %v379_v36  ;;  %v458_v42 = vld [vmem:[%s6327_s7] sm:$0xff]  ;;  %v459_v43 = vld [vmem:[%s6327_s7 + $0x8] sm:$0xff]  ;;  %v460_v45 = vld [vmem:[%s6327_s7 + $0x10] sm:$0xff]  ;;  %s5419_s12 = smov [#allocation14]  }
  0x79   :  { %v5680_v44 = vpack.c.bf16 %v459_v43, %v458_v42  ;;  %v461_v46 = vld [vmem:[%s6327_s7 + $0x18] sm:$0xff]  ;;  %v132_v49 = vld [vmem:[#allocation3 + $0x8] sm:$0xff]  ;;  %v5709_v56 = vld [vmem:[#allocation9] ss:$0 sm:$0xff]  ;;  %s3956_s26 = sshll.u32 %s5419_s12, 4  ;;  %s3957_s26 = int_to_ptr.vmem [resolvable:$true] %s3956_s26 }
  0x7a   :  { %v140_v9 = vld [vmem:[%s6339_s30] sm:$0xff]  ;;  %v269_v33 = vld [vmem:[%s6339_s30 + $0x8] sm:$0xff]  ;;  %4713 = vmatpush3.bf16.msra.mxu0 %v5662_v37  ;;  %v5691_v48 = vpack.c.bf16 %v461_v46, %v460_v45  ;;  %v564_v34 = vld [vmem:[%s6339_s30 + $0x10] sm:$0xff]  ;;  %s5341_s22 = scalar_lea.vmem %s3957_s26, 384  ;;  %p5346_p7 = scmp.lt.s32.totalorder %s3957_s26, %s3957_s26 }
  0x7b   :  { %144 = vperm.xlu0 %5011, %v140_v9   ;;  %4704 = vmatpush3.bf16.msra.mxu1 %v5622_v11  ;;  %v137_v62 = vld [vmem:[#allocation6 + $0x8] sm:$0xff]  ;;  %v926_v45 = vld [vmem:[#allocation11 + $0x18] sm:$0xff]  ;;  %p5342_p6 = scmp.ne.s32.totalorder %s3957_s26, %s5341_s22  ;;  %p5347_p8 = scmp.lt.s32.totalorder %s5341_s22, %s5341_s22 }
  0x7c   :  { %4705 = vmatprep.subr.bf16.mxu1 %v5405_v1  ;;  %4714 = vmatprep.subr.bf16.mxu0 %v5405_v1  ;;  %v925_v43 = vld [vmem:[#allocation11 + $0x10] sm:$0xff] }
  0x7d   :  { %p5348_p9 = por %p5347_p8, %p5346_p7 }
  0x7e   :  { %4268 = vmatmul.mubr.msk.f32.vlgmr.msra.gmra.mrb[0].mxu1 %vm166_vm1, %v130_v12  ;;  %4716 = vmatpush3.bf16.msra.mxu0 %v5668_v39 }
  0x7f   :  { %4707 = vmatpush3.bf16.msra.mxu1 %v5613_v7  ;;  %4278 = vmatprep.mubr.msk.f32.mxu1 %vm5406_vm0, %v5407_v2  ;;  %p5349_p10 = pnand %p5348_p9, %p5342_p6 }
  0x80   :  { %4708 = vmatprep.subr.bf16.mxu1 %v5405_v1  ;;  %4717 = vmatprep.subr.bf16.mxu0 %v5405_v1 }
  0x83   :  { %4710 = vmatpush3.bf16.msra.mxu1 %v5622_v11 }
  0x84   :  { %4723 = vmatprep.subr.bf16.mxu1 %v5405_v1 }
  0xe9   :  { %v250_v28 = vpop.permute.xlu1 %249 }
  0xfa   :  { %v145_v14 = vpop.permute.xlu0 %144 }
  0xfb   :  { %v153_v15 = vmul.f32 %v5638_v13, %v145_v14 }
  0xfd   :  { %v161_v17 = vadd.f32 %v5641_v16, %v153_v15 }
 0x151   :  { %v236_v18 = vpop.f32.mrb[0].mxu1 }
 0x152   :  { %v240_v19 = vadd.f32 %v236_v18, %v161_v17  ;;  %v4269_v20 = vpop.f32.mrb[1].mxu1 }
 0x154   :  { %5013 = vtanh.f32 %v240_v19  ;;  %v3992_v22 = vmul.f32 -1.442695, %v240_v19 }
 0x156   :  { %5015 = vpow2.f32 %v3992_v22 }
 0x15e   :  { %v5014_v21 = vpop.eup %5013 }
 0x15f   :  { %254 = vrot.lane.b32.xlu0 %v5014_v21, %s5410_s13 }
 0x160   :  { %v5016_v23 = vpop.eup %5015 }
 0x161   :  { %v244_v24 = vadd.f32 1.0, %v5016_v23 }
 0x163   :  { %5017 = vrcp.f32 %v244_v24 }
 0x16d   :  { %v5018_v25 = vpop.eup %5017 }
 0x16e   :  { %v252_v29 = vmul.f32 %v5018_v25, %v250_v28 }
 0x1d1   :  { %v255_v26 = vpop.permute.xlu0 %254 }
 0x1d2   :  { %v257_v27 = vmul.f32 %v5018_v25, %v255_v26  ;;  %v842_v26 = vld [vmem:[%s6329_s9] sm:$0xff] }
 0x1d4   :  { %259 = vrot.lane.b32.xlu1 %v257_v27, %s5409_s1  ;;  %v843_v27 = vld [vmem:[%s6329_s9 + $0x8] sm:$0xff] }
 0x1d5   :  { %v5732_v28 = vpack.c.bf16 %v843_v27, %v842_v26 }
 0x246   :  { %v260_v30 = vpop.permute.xlu1 %259 }
 0x247   :  { %v5646_v31 = vadd.f32 %v260_v30, %v252_v29  ;;  %v844_v29 = vld [vmem:[%s6329_s9 + $0x10] sm:$0xff]  ;;  %v845_v30 = vld [vmem:[%s6329_s9 + $0x18] sm:$0xff]  ;;  %s5420_s9 = smov [#allocation15]  }
 0x248   :  { %s3968_s18 = sshll.u32 %s5420_s9, 4  ;;  %s6276_s18 = int_to_ptr.vmem [resolvable:$true] %s3968_s18 }
 0x249   :  { %5019 = vtanh.f32 %v5646_v31 }
 0x253   :  { %v5020_v32 = vpop.eup %5019 }
 0x254   :  { %265 = vrot.lane.b32.xlu0 %v5020_v32, %s5410_s13 }
 0x258   :  { %272 = vperm.xlu0 %5011, %v269_v33  }
 0x2c6   :  { %v266_v40 = vpop.permute.xlu0 %265 }
 0x2c7   :  { %v268_v41 = vmul.f32 %v5018_v25, %v266_v40  ;;  %v923_v40 = vld [vmem:[#allocation11] sm:$0xff] }
 0x2c9   :  { %278 = vrot.lane.b32.xlu1 %v268_v41, %s5409_s1  ;;  %v924_v41 = vld [vmem:[#allocation11 + $0x8] sm:$0xff] }
 0x2ca   :  { %v5757_v42 = vpack.c.bf16 %v924_v41, %v923_v40 }
 0x2d7   :  { %v273_v50 = vpop.permute.xlu0 %272 }
 0x2d8   :  { %v275_v51 = vmul.f32 %v5638_v13, %v273_v50 }
 0x2da   :  { %v276_v52 = vadd.f32 %v5641_v16, %v275_v51 }
 0x33b   :  { %v279_v47 = vpop.permute.xlu1 %278 }
 0x33c   :  { %4279 = vmatmul.mubr.msk.f32.vlgmr.msra.gmra.mrb[2].mxu1 %vm166_vm1, %v279_v47  ;;  %4290 = vmatmul.mubr.msk.f32.vlgmr.msra.gmra.mrb[0].mxu0 %vm166_vm1, %v279_v47  ;;  %v5764_v47 = vpack.c.bf16 %v926_v45, %v925_v43 }
 0x33d   :  { %4719 = vmatpush3.bf16.msra.mxu0 %v5680_v44  ;;  %4300 = vmatprep.mubr.msk.f32.mxu0 %vm5406_vm0, %v5407_v2 }
 0x33e   :  { %4720 = vmatprep.subr.bf16.mxu0 %v5405_v1  ;;  %4725 = vmatpush3.bf16.msra.mxu1 %v5613_v7 }
 0x33f   :  { %4726 = vmatprep.subr.bf16.mxu1 %v5405_v1  ;;  %4311 = vmatprep.mubr.msk.f32.mxu1 %vm5406_vm0, %v5407_v2 }
 0x341   :  { %4722 = vmatpush3.bf16.msra.mxu0 %v5691_v48 }
 0x342   :  { %4728 = vmatpush3.bf16.msra.mxu1 %v5622_v11  ;;  %4741 = vmatprep.subr.bf16.mxu0 %v5405_v1 }
 0x343   :  { %4729 = vmatprep.subr.bf16.mxu1 %v5405_v1 }
 0x344   :  { %4301 = vmatmul.mubr.msk.f32.vlgmr.msra.gmra.mrb[0].mxu0 %vm166_vm1, %v132_v49  ;;  %v134_v49 = vld [vmem:[#allocation3 + $0x10] sm:$0xff] }
 0x345   :  { %4344 = vmatprep.mubr.msk.f32.mxu0 %vm5406_vm0, %v5407_v2  ;;  %4743 = vmatpush3.bf16.msra.mxu0 %v5732_v28 }
 0x346   :  { %4744 = vmatprep.subr.bf16.mxu0 %v5405_v1 }
 0x40f   :  { %v348_v53 = vpop.f32.mrb[2].mxu1 }
 0x410   :  { %v352_v54 = vadd.f32 %v348_v53, %v276_v52  ;;  %v4280_v55 = vpop.f32.mrb[3].mxu1 }
 0x412   :  { %5021 = vtanh.f32 %v352_v54  ;;  %v3994_v63 = vmul.f32 -1.442695, %v352_v54 }
 0x417   :  { %v531_v57 = vpop.f32.mrb[0].mxu0 }
 0x418   :  { %v4939_v58 = vadd.f32 %v5709_v56, %v531_v57  ;;  %v4302_v59 = vpop.f32.mrb[1].mxu0 }
 0x41a   :  { %5023 = vtanh.f32 %v4939_v58  ;;  %v3998_v0 = vmul.f32 -1.442695, %v4939_v58  ;;  %v5796_v58 = vld [vmem:[%s6331_s11] ss:$0 sm:$0xff] }
 0x41b   :  { %5025 = vpow2.f32 %v3994_v63 }
 0x41c   :  { %v5022_v60 = vpop.eup %5021  ;;  %5027 = vpow2.f32 %v3998_v0 }
 0x41d   :  { %362 = vrot.lane.b32.xlu1 %v5022_v60, %s5410_s13 }
 0x424   :  { %v5024_v61 = vpop.eup %5023 }
 0x425   :  { %549 = vrot.lane.b32.xlu0 %v5024_v61, %s5410_s13  ;;  %v5026_v3 = vpop.eup %5025 }
 0x426   :  { %v356_v4 = vadd.f32 1.0, %v5026_v3  ;;  %v5028_v5 = vpop.eup %5027 }
 0x427   :  { %v539_v6 = vadd.f32 1.0, %v5028_v5 }
 0x428   :  { %5029 = vrcp.f32 %v356_v4 }
 0x429   :  { %544 = vrot.lane.b32.xlu0 %v137_v62, %s5409_s1  ;;  %5031 = vrcp.f32 %v539_v6 }
 0x432   :  { %v5030_v8 = vpop.eup %5029 }
 0x433   :  { %v5032_v12 = vpop.eup %5031  ;;  %v360_v17 = vmul.f32 %v5030_v8, %v5646_v31  ;;  %v5742_v31 = vpack.c.bf16 %v845_v30, %v844_v29 }
 0x435   :  { %4746 = vmatpush3.bf16.msra.mxu0 %v5742_v31 }
 0x436   :  { %4747 = vmatprep.subr.bf16.mxu0 %v5405_v1 }
 0x48f   :  { %v363_v9 = vpop.permute.xlu1 %362 }
 0x490   :  { %v365_v10 = vmul.f32 %v5030_v8, %v363_v9 }
 0x492   :  { %367 = vrot.lane.b32.xlu1 %v365_v10, %s5409_s1 }
 0x497   :  { %v550_v14 = vpop.permute.xlu0 %549 }
 0x498   :  { %v552_v15 = vmul.f32 %v5032_v12, %v550_v14 }
 0x49a   :  { %554 = vrot.lane.b32.xlu1 %v552_v15, %s5409_s1 }
 0x49b   :  { %v545_v20 = vpop.permute.xlu0 %544 }
 0x49c   :  { %v547_v21 = vmul.f32 %v5032_v12, %v545_v20 }
 0x504   :  { %v368_v18 = vpop.permute.xlu1 %367 }
 0x505   :  { %v5718_v19 = vadd.f32 %v368_v18, %v360_v17 }
 0x507   :  { %5033 = vtanh.f32 %v5718_v19 }
 0x50c   :  { %v555_v22 = vpop.permute.xlu1 %554 }
 0x50d   :  { %v5721_v23 = vadd.f32 %v555_v22, %v547_v21  ;;  %v139_v21 = vld [vmem:[#allocation6 + $0x10] sm:$0xff] }
 0x50f   :  { %5035 = vtanh.f32 %v5721_v23 }
 0x511   :  { %v5034_v24 = vpop.eup %5033 }
 0x512   :  { %373 = vrot.lane.b32.xlu0 %v5034_v24, %s5410_s13 }
 0x519   :  { %v5036_v25 = vpop.eup %5035 }
 0x51a   :  { %560 = vrot.lane.b32.xlu1 %v5036_v25, %s5410_s13 }
 0x584   :  { %v374_v32 = vpop.permute.xlu0 %373 }
 0x585   :  { %v376_v33 = vmul.f32 %v5030_v8, %v374_v32 }
 0x587   :  { %573 = vrot.lane.b32.xlu0 %v376_v33, %s5409_s1 }
 0x58b   :  { %567 = vperm.xlu0 %5011, %v564_v34  }
 0x58c   :  { %v561_v35 = vpop.permute.xlu1 %560 }
 0x58d   :  { %v563_v36 = vmul.f32 %v5032_v12, %v561_v35 }
 0x58f   :  { %743 = vrot.lane.b32.xlu1 %v563_v36, %s5409_s1 }
 0x5f9   :  { %v574_v38 = vpop.permute.xlu0 %573 }
 0x5fa   :  { %4312 = vmatmul.mubr.msk.f32.vlgmr.msra.gmra.mrb[4].mxu1 %vm166_vm1, %v574_v38 }
 0x5fb   :  { %4731 = vmatpush3.bf16.msra.mxu1 %v5662_v37  ;;  %4322 = vmatprep.mubr.msk.f32.mxu1 %vm5406_vm0, %v5407_v2 }
 0x5fc   :  { %4732 = vmatprep.subr.bf16.mxu1 %v5405_v1 }
 0x5ff   :  { %4734 = vmatpush3.bf16.msra.mxu1 %v5668_v39 }
 0x600   :  { %4735 = vmatprep.subr.bf16.mxu1 %v5405_v1 }
 0x601   :  { %v744_v46 = vpop.permute.xlu1 %743 }
 0x602   :  { %4323 = vmatmul.mubr.msk.f32.vlgmr.msra.gmra.mrb[6].mxu1 %vm166_vm1, %v574_v38  ;;  %4345 = vmatmul.mubr.msk.f32.vlgmr.msra.gmra.mrb[2].mxu0 %vm166_vm1, %v744_v46 }
 0x603   :  { %4737 = vmatpush3.bf16.msra.mxu1 %v5680_v44  ;;  %4749 = vmatpush3.bf16.msra.mxu0 %v5757_v42 }
 0x604   :  { %4738 = vmatprep.subr.bf16.mxu1 %v5405_v1  ;;  %4750 = vmatprep.subr.bf16.mxu0 %v5405_v1 }
 0x605   :  { %4333 = vmatprep.mubr.msk.f32.mxu1 %vm5406_vm0, %v5407_v2  ;;  %4355 = vmatprep.mubr.msk.f32.mxu0 %vm5406_vm0, %v5407_v2 }
 0x607   :  { %4740 = vmatpush3.bf16.msra.mxu1 %v5691_v48  ;;  %4752 = vmatpush3.bf16.msra.mxu0 %v5764_v47 }
 0x608   :  { %4753 = vmatprep.subr.bf16.mxu1 %v5405_v1  ;;  %4759 = vmatprep.subr.bf16.mxu0 %v5405_v1 }
 0x60a   :  { %4334 = vmatmul.mubr.msk.f32.vlgmr.msra.gmra.mrb[6].mxu1 %vm166_vm1, %v744_v46  ;;  %4356 = vmatmul.mubr.msk.f32.vlgmr.msra.gmra.mrb[2].mxu0 %vm166_vm1, %v134_v49  ;;  %v568_v50 = vpop.permute.xlu0 %567 }
 0x60b   :  { %4755 = vmatpush3.bf16.msra.mxu1 %v5613_v7  ;;  %4761 = vmatpush3.bf16.msra.mxu0 %v5662_v37  ;;  %v570_v51 = vmul.f32 %v5638_v13, %v568_v50 }
 0x60c   :  { %4756 = vmatprep.subr.bf16.mxu1 %v5405_v1  ;;  %4762 = vmatprep.subr.bf16.mxu0 %v5405_v1 }
 0x60d   :  { %4366 = vmatprep.mubr.msk.f32.mxu1 %vm5406_vm0, %v5407_v2  ;;  %4377 = vmatprep.mubr.msk.f32.mxu0 %vm5406_vm0, %v5407_v2  ;;  %v571_v52 = vadd.f32 %v5641_v16, %v570_v51 }
 0x60f   :  { %4758 = vmatpush3.bf16.msra.mxu1 %v5622_v11  ;;  %4764 = vmatpush3.bf16.msra.mxu0 %v5668_v39 }
 0x610   :  { %4765 = vmatprep.subr.bf16.mxu0 %v5405_v1  ;;  %4771 = vmatprep.subr.bf16.mxu1 %v5405_v1 }
 0x6cd   :  { %v643_v53 = vpop.f32.mrb[4].mxu1 }
 0x6ce   :  { %v647_v54 = vadd.f32 %v643_v53, %v571_v52  ;;  %v4313_v55 = vpop.f32.mrb[5].mxu1 }
 0x6d0   :  { %5037 = vtanh.f32 %v647_v54  ;;  %v4000_v5 = vmul.f32 -1.442695, %v647_v54  ;;  %v1054_v54 = vld [vmem:[%s6339_s30 + $0x18] sm:$0xff] }
 0x6da   :  { %v5038_v57 = vpop.eup %5037 }
 0x6db   :  { %657 = vrot.lane.b32.xlu1 %v5038_v57, %s5410_s13 }
 0x6dd   :  { %v813_v59 = vpop.f32.mrb[6].mxu1  ;;  %v996_v60 = vpop.f32.mrb[2].mxu0 }
 0x6de   :  { %v4940_v61 = vadd.f32 %v5709_v56, %v813_v59  ;;  %v4335_v62 = vpop.f32.mrb[7].mxu1  ;;  %v4941_v63 = vadd.f32 %v5796_v58, %v996_v60  ;;  %v4357_v0 = vpop.f32.mrb[3].mxu0 }
 0x6e0   :  { %5039 = vtanh.f32 %v4940_v61  ;;  %v4003_v8 = vmul.f32 -1.442695, %v4940_v61  ;;  %v4007_v10 = vmul.f32 -1.442695, %v4941_v63 }
 0x6e1   :  { %5041 = vtanh.f32 %v4941_v63 }
 0x6e2   :  { %5043 = vpow2.f32 %v4000_v5 }
 0x6e3   :  { %5045 = vpow2.f32 %v4003_v8 }
 0x6ea   :  { %v5040_v3 = vpop.eup %5039 }
 0x6eb   :  { %v5042_v4 = vpop.eup %5041  ;;  %827 = vrot.lane.b32.xlu0 %v5040_v3, %s5410_s13 }
 0x6ec   :  { %1014 = vrot.lane.b32.xlu1 %v5042_v4, %s5410_s13  ;;  %v5044_v6 = vpop.eup %5043 }
 0x6ed   :  { %v651_v9 = vadd.f32 1.0, %v5044_v6  ;;  %v5046_v12 = vpop.eup %5045 }
 0x6ee   :  { %v821_v18 = vadd.f32 1.0, %v5046_v12 }
 0x6ef   :  { %5047 = vrcp.f32 %v651_v9 }
 0x6f0   :  { %5049 = vpow2.f32 %v4007_v10 }
 0x6f1   :  { %5051 = vrcp.f32 %v821_v18 }
 0x6f9   :  { %v5048_v14 = vpop.eup %5047 }
 0x6fa   :  { %v5050_v20 = vpop.eup %5049  ;;  %v655_v32 = vmul.f32 %v5048_v14, %v5718_v19 }
 0x6fb   :  { %v1004_v22 = vadd.f32 1.0, %v5050_v20  ;;  %v5052_v24 = vpop.eup %5051 }
 0x6fc   :  { %v825_v36 = vmul.f32 %v5052_v24, %v5721_v23 }
 0x6fd   :  { %5053 = vrcp.f32 %v1004_v22 }
 0x707   :  { %v5054_v29 = vpop.eup %5053 }
 0x74d   :  { %v658_v15 = vpop.permute.xlu1 %657 }
 0x74e   :  { %v660_v17 = vmul.f32 %v5048_v14, %v658_v15 }
 0x750   :  { %662 = vrot.lane.b32.xlu0 %v660_v17, %s5409_s1 }
 0x754   :  { %1009 = vrot.lane.b32.xlu0 %v139_v21, %s5409_s1 }
 0x75d   :  { %v828_v25 = vpop.permute.xlu0 %827 }
 0x75e   :  { %v830_v26 = vmul.f32 %v5052_v24, %v828_v25  ;;  %v1015_v27 = vpop.permute.xlu1 %1014 }
 0x75f   :  { %v1017_v30 = vmul.f32 %v5054_v29, %v1015_v27 }
 0x760   :  { %832 = vrot.lane.b32.xlu1 %v830_v26, %s5409_s1 }
 0x764   :  { %1019 = vrot.lane.b32.xlu1 %v1017_v30, %s5409_s1 }
 0x7c2   :  { %v663_v33 = vpop.permute.xlu0 %662 }
 0x7c3   :  { %v5807_v34 = vadd.f32 %v663_v33, %v655_v32 }
 0x7c5   :  { %5055 = vtanh.f32 %v5807_v34 }
 0x7c6   :  { %v1010_v38 = vpop.permute.xlu0 %1009 }
 0x7c7   :  { %v1012_v43 = vmul.f32 %v5054_v29, %v1010_v38 }
 0x7cf   :  { %v5056_v35 = vpop.eup %5055 }
 0x7d0   :  { %668 = vrot.lane.b32.xlu0 %v5056_v35, %s5410_s13 }
 0x7d2   :  { %v833_v40 = vpop.permute.xlu1 %832 }
 0x7d3   :  { %v5812_v41 = vadd.f32 %v833_v40, %v825_v36 }
 0x7d5   :  { %5057 = vtanh.f32 %v5812_v41 }
 0x7d6   :  { %v1020_v45 = vpop.permute.xlu1 %1019 }
 0x7d7   :  { %v5815_v46 = vadd.f32 %v1020_v45, %v1012_v43 }
 0x7d9   :  { %5059 = vtanh.f32 %v5815_v46 }
 0x7df   :  { %v5058_v19 = vpop.eup %5057 }
 0x7e0   :  { %838 = vrot.lane.b32.xlu1 %v5058_v19, %s5410_s13 }
 0x7e3   :  { %v5060_v49 = vpop.eup %5059 }
 0x7e4   :  { %1025 = vrot.lane.b32.xlu0 %v5060_v49, %s5410_s13 }
 0x842   :  { %v669_v50 = vpop.permute.xlu0 %668 }
 0x843   :  { %v671_v23 = vmul.f32 %v5048_v14, %v669_v50 }
 0x845   :  { %1063 = vrot.lane.b32.xlu1 %v671_v23, %s5409_s1 }
 0x852   :  { %v839_v51 = vpop.permute.xlu1 %838 }
 0x853   :  { %v841_v52 = vmul.f32 %v5052_v24, %v839_v51 }
 0x855   :  { %1233 = vrot.lane.b32.xlu0 %v841_v52, %s5409_s1 }
 0x856   :  { %v1026_v53 = vpop.permute.xlu0 %1025 }
 0x857   :  { %v5825_v55 = vmul.f32 %v5054_v29, %v1026_v53 }
 0x859   :  { %1403 = vrot.lane.b32.xlu1 %v5825_v55, %s5409_s1  ;;  %1057 = vperm.xlu0 %5011, %v1054_v54  }
 0x8b7   :  { %v1064_v57 = vpop.permute.xlu1 %1063 }
 0x8b8   :  { %4367 = vmatmul.mubr.msk.f32.vlgmr.msra.gmra.mrb[8].mxu1 %vm166_vm1, %v1064_v57  ;;  %4378 = vmatmul.mubr.msk.f32.vlgmr.msra.gmra.mrb[4].mxu0 %vm166_vm1, %v1064_v57 }
 0x8b9   :  { %4767 = vmatpush3.bf16.msra.mxu0 %v5680_v44  ;;  %4773 = vmatpush3.bf16.msra.mxu1 %v5732_v28 }
 0x8ba   :  { %4768 = vmatprep.subr.bf16.mxu0 %v5405_v1  ;;  %4774 = vmatprep.subr.bf16.mxu1 %v5405_v1 }
 0x8bb   :  { %4388 = vmatprep.mubr.msk.f32.mxu0 %vm5406_vm0, %v5407_v2  ;;  %4399 = vmatprep.mubr.msk.f32.mxu1 %vm5406_vm0, %v5407_v2 }
 0x8bd   :  { %4770 = vmatpush3.bf16.msra.mxu0 %v5691_v48  ;;  %4776 = vmatpush3.bf16.msra.mxu1 %v5742_v31 }
 0x8be   :  { %4777 = vmatprep.subr.bf16.mxu1 %v5405_v1  ;;  %4783 = vmatprep.subr.bf16.mxu0 %v5405_v1 }
 0x8c7   :  { %v1234_v59 = vpop.permute.xlu0 %1233 }
 0x8c8   :  { %4389 = vmatmul.mubr.msk.f32.vlgmr.msra.gmra.mrb[4].mxu0 %vm166_vm1, %v1234_v59  ;;  %4400 = vmatmul.mubr.msk.f32.vlgmr.msra.gmra.mrb[10].mxu1 %vm166_vm1, %v1234_v59 }
 0x8c9   :  { %4779 = vmatpush3.bf16.msra.mxu1 %v5757_v42  ;;  %4410 = vmatprep.mubr.msk.f32.mxu1 %vm5406_vm0, %v5407_v2 }
 0x8ca   :  { %4780 = vmatprep.subr.bf16.mxu1 %v5405_v1  ;;  %4785 = vmatpush3.bf16.msra.mxu0 %v5613_v7 }
 0x8cb   :  { %4786 = vmatprep.subr.bf16.mxu0 %v5405_v1  ;;  %4421 = vmatprep.mubr.msk.f32.mxu0 %vm5406_vm0, %v5407_v2  ;;  %v1404_v60 = vpop.permute.xlu1 %1403 }
 0x8cd   :  { %4782 = vmatpush3.bf16.msra.mxu1 %v5764_v47 }
 0x8ce   :  { %4789 = vmatprep.subr.bf16.mxu1 %v5405_v1  ;;  %4788 = vmatpush3.bf16.msra.mxu0 %v5622_v11 }
 0x8cf   :  { %4801 = vmatprep.subr.bf16.mxu0 %v5405_v1 }
 0x8d0   :  { %4411 = vmatmul.mubr.msk.f32.vlgmr.msra.gmra.mrb[10].mxu1 %vm166_vm1, %v1404_v60 }
 0x8d1   :  { %4791 = vmatpush3.bf16.msra.mxu1 %v5662_v37  ;;  %4432 = vmatprep.mubr.msk.f32.mxu1 %vm5406_vm0, %v5407_v2 }
 0x8d2   :  { %4792 = vmatprep.subr.bf16.mxu1 %v5405_v1 }
 0x8d5   :  { %4794 = vmatpush3.bf16.msra.mxu1 %v5668_v39 }
 0x8d6   :  { %4795 = vmatprep.subr.bf16.mxu1 %v5405_v1 }
 0x8d8   :  { %v1058_v61 = vpop.permute.xlu0 %1057 }
 0x8d9   :  { %v1060_v62 = vmul.f32 %v5638_v13, %v1058_v61 }
 0x8db   :  { %v1061_v63 = vadd.f32 %v5641_v16, %v1060_v62 }
 0x98b   :  { %v1133_v0 = vpop.f32.mrb[8].mxu1 }
 0x98c   :  { %v1137_v3 = vadd.f32 %v1133_v0, %v1061_v63  ;;  %v4368_v4 = vpop.f32.mrb[9].mxu1 }
 0x98e   :  { %5061 = vtanh.f32 %v1137_v3  ;;  %v4011_v18 = vmul.f32 -1.442695, %v1137_v3 }
 0x998   :  { %v5062_v5 = vpop.eup %5061 }
 0x999   :  { %1147 = vrot.lane.b32.xlu1 %v5062_v5, %s5410_s13 }
 0x99b   :  { %v1303_v6 = vpop.f32.mrb[4].mxu0 }
 0x99c   :  { %v4942_v8 = vadd.f32 %v5709_v56, %v1303_v6  ;;  %v4390_v9 = vpop.f32.mrb[5].mxu0 }
 0x99e   :  { %5063 = vtanh.f32 %v4942_v8  ;;  %v4014_v21 = vmul.f32 -1.442695, %v4942_v8 }
 0x9a3   :  { %v1473_v10 = vpop.f32.mrb[10].mxu1 }
 0x9a4   :  { %v4943_v12 = vadd.f32 %v5796_v58, %v1473_v10  ;;  %v4412_v14 = vpop.f32.mrb[11].mxu1 }
 0x9a6   :  { %5065 = vtanh.f32 %v4943_v12  ;;  %v4017_v24 = vmul.f32 -1.442695, %v4943_v12 }
 0x9a7   :  { %5067 = vpow2.f32 %v4011_v18 }
 0x9a8   :  { %v5064_v15 = vpop.eup %5063  ;;  %5069 = vpow2.f32 %v4014_v21 }
 0x9a9   :  { %1317 = vrot.lane.b32.xlu0 %v5064_v15, %s5410_s13 }
 0x9b0   :  { %v5066_v17 = vpop.eup %5065 }
 0x9b1   :  { %1487 = vrot.lane.b32.xlu1 %v5066_v17, %s5410_s13  ;;  %v5068_v20 = vpop.eup %5067 }
 0x9b2   :  { %v1141_v22 = vadd.f32 1.0, %v5068_v20  ;;  %v5070_v25 = vpop.eup %5069 }
 0x9b3   :  { %v1311_v30 = vadd.f32 1.0, %v5070_v25 }
 0x9b4   :  { %5071 = vrcp.f32 %v1141_v22 }
 0x9b5   :  { %5073 = vpow2.f32 %v4017_v24 }
 0x9b6   :  { %5075 = vrcp.f32 %v1311_v30 }
 0x9be   :  { %v5072_v26 = vpop.eup %5071 }
 0x9bf   :  { %v5074_v32 = vpop.eup %5073  ;;  %v1145_v19 = vmul.f32 %v5072_v26, %v5807_v34 }
 0x9c0   :  { %v1481_v33 = vadd.f32 1.0, %v5074_v32  ;;  %v5076_v35 = vpop.eup %5075 }
 0x9c1   :  { %v1315_v51 = vmul.f32 %v5076_v35, %v5812_v41 }
 0x9c2   :  { %5077 = vrcp.f32 %v1481_v33 }
 0x9cc   :  { %v5078_v40 = vpop.eup %5077 }
 0x9cd   :  { %v1485_v54 = vmul.f32 %v5078_v40, %v5815_v46  ;;  %v1511_v46 = vld [vmem:[%s6339_s30 + $0x20] sm:$0xff] }
 0xa0b   :  { %v1148_v27 = vpop.permute.xlu1 %1147 }
 0xa0c   :  { %v1150_v29 = vmul.f32 %v5072_v26, %v1148_v27 }
 0xa0e   :  { %1152 = vrot.lane.b32.xlu0 %v1150_v29, %s5409_s1 }
 0xa1b   :  { %v1318_v36 = vpop.permute.xlu0 %1317 }
 0xa1c   :  { %v1320_v38 = vmul.f32 %v5076_v35, %v1318_v36 }
 0xa1e   :  { %1322 = vrot.lane.b32.xlu1 %v1320_v38, %s5409_s1 }
 0xa23   :  { %v1488_v43 = vpop.permute.xlu1 %1487 }
 0xa24   :  { %v1490_v45 = vmul.f32 %v5078_v40, %v1488_v43 }
 0xa26   :  { %1492 = vrot.lane.b32.xlu0 %v1490_v45, %s5409_s1 }
 0xa80   :  { %v1153_v49 = vpop.permute.xlu0 %1152 }
 0xa81   :  { %v5875_v50 = vadd.f32 %v1153_v49, %v1145_v19 }
 0xa83   :  { %5079 = vtanh.f32 %v5875_v50 }
 0xa8d   :  { %v5080_v23 = vpop.eup %5079 }
 0xa8e   :  { %1158 = vrot.lane.b32.xlu1 %v5080_v23, %s5410_s13 }
 0xa90   :  { %v1323_v52 = vpop.permute.xlu1 %1322 }
 0xa91   :  { %v5880_v53 = vadd.f32 %v1323_v52, %v1315_v51 }
 0xa93   :  { %5081 = vtanh.f32 %v5880_v53 }
 0xa98   :  { %v1493_v57 = vpop.permute.xlu0 %1492 }
 0xa99   :  { %v5884_v59 = vadd.f32 %v1493_v57, %v1485_v54 }
 0xa9b   :  { %5083 = vtanh.f32 %v5884_v59 }
 0xa9d   :  { %v5082_v34 = vpop.eup %5081 }
 0xa9e   :  { %1328 = vrot.lane.b32.xlu0 %v5082_v34, %s5410_s13 }
 0xaa5   :  { %v5084_v60 = vpop.eup %5083 }
 0xaa6   :  { %1498 = vrot.lane.b32.xlu1 %v5084_v60, %s5410_s13 }
 0xb00   :  { %v1159_v61 = vpop.permute.xlu1 %1158 }
 0xb01   :  { %v1161_v41 = vmul.f32 %v5072_v26, %v1159_v61 }
 0xb03   :  { %1520 = vrot.lane.b32.xlu0 %v1161_v41, %s5409_s1 }
 0xb10   :  { %v1329_v62 = vpop.permute.xlu0 %1328 }
 0xb11   :  { %v1331_v63 = vmul.f32 %v5076_v35, %v1329_v62 }
 0xb13   :  { %1690 = vrot.lane.b32.xlu1 %v1331_v63, %s5409_s1 }
 0xb17   :  { %1514 = vperm.xlu1 %5012, %v1511_v46  }
 0xb18   :  { %v1499_v0 = vpop.permute.xlu1 %1498 }
 0xb19   :  { %v5894_v3 = vmul.f32 %v5078_v40, %v1499_v0 }
 0xb1b   :  { %1860 = vrot.lane.b32.xlu0 %v5894_v3, %s5409_s1 }
 0xb75   :  { %v1521_v4 = vpop.permute.xlu0 %1520 }
 0xb76   :  { %4422 = vmatmul.mubr.msk.f32.vlgmr.msra.gmra.mrb[6].mxu0 %vm166_vm1, %v1521_v4  ;;  %4433 = vmatmul.mubr.msk.f32.vlgmr.msra.gmra.mrb[12].mxu1 %vm166_vm1, %v1521_v4 }
 0xb77   :  { %4797 = vmatpush3.bf16.msra.mxu1 %v5680_v44  ;;  %4803 = vmatpush3.bf16.msra.mxu0 %v5732_v28 }
 0xb78   :  { %4798 = vmatprep.subr.bf16.mxu1 %v5405_v1  ;;  %4804 = vmatprep.subr.bf16.mxu0 %v5405_v1 }
 0xb79   :  { %4443 = vmatprep.mubr.msk.f32.mxu1 %vm5406_vm0, %v5407_v2  ;;  %4454 = vmatprep.mubr.msk.f32.mxu0 %vm5406_vm0, %v5407_v2 }
 0xb7b   :  { %4800 = vmatpush3.bf16.msra.mxu1 %v5691_v48  ;;  %4806 = vmatpush3.bf16.msra.mxu0 %v5742_v31 }
 0xb7c   :  { %4807 = vmatprep.subr.bf16.mxu0 %v5405_v1  ;;  %4813 = vmatprep.subr.bf16.mxu1 %v5405_v1 }
 0xb85   :  { %v1691_v5 = vpop.permute.xlu1 %1690 }
 0xb86   :  { %4444 = vmatmul.mubr.msk.f32.vlgmr.msra.gmra.mrb[12].mxu1 %vm166_vm1, %v1691_v5  ;;  %4455 = vmatmul.mubr.msk.f32.vlgmr.msra.gmra.mrb[8].mxu0 %vm166_vm1, %v1691_v5 }
 0xb87   :  { %4809 = vmatpush3.bf16.msra.mxu0 %v5757_v42  ;;  %4465 = vmatprep.mubr.msk.f32.mxu0 %vm5406_vm0, %v5407_v2 }
 0xb88   :  { %4810 = vmatprep.subr.bf16.mxu0 %v5405_v1  ;;  %4815 = vmatpush3.bf16.msra.mxu1 %v5613_v7 }
 0xb89   :  { %4816 = vmatprep.subr.bf16.mxu1 %v5405_v1  ;;  %4476 = vmatprep.mubr.msk.f32.mxu1 %vm5406_vm0, %v5407_v2 }
 0xb8b   :  { %4812 = vmatpush3.bf16.msra.mxu0 %v5764_v47 }
 0xb8c   :  { %4819 = vmatprep.subr.bf16.mxu0 %v5405_v1  ;;  %4818 = vmatpush3.bf16.msra.mxu1 %v5622_v11 }
 0xb8d   :  { %v1861_v6 = vpop.permute.xlu0 %1860  ;;  %4831 = vmatprep.subr.bf16.mxu1 %v5405_v1 }
 0xb8e   :  { %4466 = vmatmul.mubr.msk.f32.vlgmr.msra.gmra.mrb[8].mxu0 %vm166_vm1, %v1861_v6 }
 0xb8f   :  { %4821 = vmatpush3.bf16.msra.mxu0 %v5662_v37  ;;  %4487 = vmatprep.mubr.msk.f32.mxu0 %vm5406_vm0, %v5407_v2 }
 0xb90   :  { %4822 = vmatprep.subr.bf16.mxu0 %v5405_v1 }
 0xb93   :  { %4824 = vmatpush3.bf16.msra.mxu0 %v5668_v39 }
 0xb94   :  { %4825 = vmatprep.subr.bf16.mxu0 %v5405_v1 }
 0xb96   :  { %v1515_v8 = vpop.permute.xlu1 %1514 }
 0xb97   :  { %v1517_v9 = vmul.f32 %v5638_v13, %v1515_v8 }
 0xb99   :  { %v1518_v10 = vadd.f32 %v5641_v16, %v1517_v9 }
 0xc49   :  { %v1590_v12 = vpop.f32.mrb[6].mxu0 }
 0xc4a   :  { %v1594_v14 = vadd.f32 %v1590_v12, %v1518_v10  ;;  %v4423_v15 = vpop.f32.mrb[7].mxu0 }
 0xc4c   :  { %5085 = vtanh.f32 %v1594_v14  ;;  %v4019_v29 = vmul.f32 -1.442695, %v1594_v14 }
 0xc56   :  { %v5086_v17 = vpop.eup %5085 }
 0xc57   :  { %1604 = vrot.lane.b32.xlu0 %v5086_v17, %s5410_s13 }
 0xc59   :  { %v1760_v18 = vpop.f32.mrb[12].mxu1 }
 0xc5a   :  { %v4944_v20 = vadd.f32 %v5709_v56, %v1760_v18  ;;  %v4445_v21 = vpop.f32.mrb[13].mxu1 }
 0xc5c   :  { %5087 = vtanh.f32 %v4944_v20  ;;  %v4022_v32 = vmul.f32 -1.442695, %v4944_v20 }
 0xc61   :  { %v1930_v22 = vpop.f32.mrb[8].mxu0 }
 0xc62   :  { %v4945_v24 = vadd.f32 %v5796_v58, %v1930_v22  ;;  %v4467_v25 = vpop.f32.mrb[9].mxu0 }
 0xc64   :  { %5089 = vtanh.f32 %v4945_v24  ;;  %v4025_v35 = vmul.f32 -1.442695, %v4945_v24 }
 0xc65   :  { %5091 = vpow2.f32 %v4019_v29 }
 0xc66   :  { %v5088_v26 = vpop.eup %5087  ;;  %5093 = vpow2.f32 %v4022_v32 }
 0xc67   :  { %1774 = vrot.lane.b32.xlu1 %v5088_v26, %s5410_s13 }
 0xc6e   :  { %v5090_v27 = vpop.eup %5089 }
 0xc6f   :  { %1944 = vrot.lane.b32.xlu0 %v5090_v27, %s5410_s13  ;;  %v5092_v30 = vpop.eup %5091 }
 0xc70   :  { %v1598_v33 = vadd.f32 1.0, %v5092_v30  ;;  %v5094_v36 = vpop.eup %5093 }
 0xc71   :  { %v1768_v45 = vadd.f32 1.0, %v5094_v36 }
 0xc72   :  { %5095 = vrcp.f32 %v1598_v33 }
 0xc73   :  { %5097 = vpow2.f32 %v4025_v35 }
 0xc74   :  { %5099 = vrcp.f32 %v1768_v45 }
 0xc7c   :  { %v5096_v38 = vpop.eup %5095 }
 0xc7d   :  { %v5098_v19 = vpop.eup %5097  ;;  %v1602_v60 = vmul.f32 %v5096_v38, %v5875_v50 }
 0xc7e   :  { %v1938_v49 = vadd.f32 1.0, %v5098_v19  ;;  %v5100_v23 = vpop.eup %5099 }
 0xc7f   :  { %v1772_v63 = vmul.f32 %v5100_v23, %v5880_v53 }
 0xc80   :  { %5101 = vrcp.f32 %v1938_v49 }
 0xc8a   :  { %v5102_v54 = vpop.eup %5101 }
 0xc8b   :  { %v1942_v4 = vmul.f32 %v5102_v54, %v5884_v59  ;;  %v1968_v59 = vld [vmem:[%s6339_s30 + $0x28] sm:$0xff] }
 0xcc9   :  { %v1605_v40 = vpop.permute.xlu0 %1604 }
 0xcca   :  { %v1607_v43 = vmul.f32 %v5096_v38, %v1605_v40 }
 0xccc   :  { %1609 = vrot.lane.b32.xlu1 %v1607_v43, %s5409_s1 }
 0xcd9   :  { %v1775_v51 = vpop.permute.xlu1 %1774 }
 0xcda   :  { %v1777_v52 = vmul.f32 %v5100_v23, %v1775_v51 }
 0xcdc   :  { %1779 = vrot.lane.b32.xlu0 %v1777_v52, %s5409_s1 }
 0xce1   :  { %v1945_v57 = vpop.permute.xlu0 %1944 }
 0xce2   :  { %v1947_v34 = vmul.f32 %v5102_v54, %v1945_v57 }
 0xce4   :  { %1949 = vrot.lane.b32.xlu1 %v1947_v34, %s5409_s1 }
 0xd3e   :  { %v1610_v61 = vpop.permute.xlu1 %1609 }
 0xd3f   :  { %v5944_v41 = vadd.f32 %v1610_v61, %v1602_v60 }
 0xd41   :  { %5103 = vtanh.f32 %v5944_v41 }
 0xd4b   :  { %v5104_v62 = vpop.eup %5103 }
 0xd4c   :  { %1615 = vrot.lane.b32.xlu0 %v5104_v62, %s5410_s13 }
 0xd4e   :  { %v1780_v46 = vpop.permute.xlu0 %1779 }
 0xd4f   :  { %v5949_v0 = vadd.f32 %v1780_v46, %v1772_v63 }
 0xd51   :  { %5105 = vtanh.f32 %v5949_v0 }
 0xd56   :  { %v1950_v5 = vpop.permute.xlu1 %1949 }
 0xd57   :  { %v5953_v6 = vadd.f32 %v1950_v5, %v1942_v4 }
 0xd59   :  { %5107 = vtanh.f32 %v5953_v6 }
 0xd5b   :  { %v5106_v50 = vpop.eup %5105 }
 0xd5c   :  { %1785 = vrot.lane.b32.xlu1 %v5106_v50, %s5410_s13 }
 0xd63   :  { %v5108_v8 = vpop.eup %5107 }
 0xd64   :  { %1955 = vrot.lane.b32.xlu0 %v5108_v8, %s5410_s13 }
 0xdbe   :  { %v1616_v9 = vpop.permute.xlu0 %1615 }
 0xdbf   :  { %v1618_v53 = vmul.f32 %v5096_v38, %v1616_v9 }
 0xdc1   :  { %1977 = vrot.lane.b32.xlu1 %v1618_v53, %s5409_s1 }
 0xdce   :  { %v1786_v10 = vpop.permute.xlu1 %1785 }
 0xdcf   :  { %v1788_v12 = vmul.f32 %v5100_v23, %v1786_v10 }
 0xdd1   :  { %2147 = vrot.lane.b32.xlu0 %v1788_v12, %s5409_s1 }
 0xdd5   :  { %1971 = vperm.xlu0 %5011, %v1968_v59  }
 0xdd6   :  { %v1956_v14 = vpop.permute.xlu0 %1955 }
 0xdd7   :  { %v5963_v15 = vmul.f32 %v5102_v54, %v1956_v14 }
 0xdd9   :  { %2317 = vrot.lane.b32.xlu1 %v5963_v15, %s5409_s1 }
 0xe33   :  { %v1978_v17 = vpop.permute.xlu1 %1977 }
 0xe34   :  { %4477 = vmatmul.mubr.msk.f32.vlgmr.msra.gmra.mrb[14].mxu1 %vm166_vm1, %v1978_v17  ;;  %4488 = vmatmul.mubr.msk.f32.vlgmr.msra.gmra.mrb[10].mxu0 %vm166_vm1, %v1978_v17 }
 0xe35   :  { %4827 = vmatpush3.bf16.msra.mxu0 %v5680_v44  ;;  %4833 = vmatpush3.bf16.msra.mxu1 %v5732_v28 }
 0xe36   :  { %4828 = vmatprep.subr.bf16.mxu0 %v5405_v1  ;;  %4834 = vmatprep.subr.bf16.mxu1 %v5405_v1 }
 0xe37   :  { %4498 = vmatprep.mubr.msk.f32.mxu0 %vm5406_vm0, %v5407_v2  ;;  %4509 = vmatprep.mubr.msk.f32.mxu1 %vm5406_vm0, %v5407_v2 }
 0xe39   :  { %4830 = vmatpush3.bf16.msra.mxu0 %v5691_v48  ;;  %4836 = vmatpush3.bf16.msra.mxu1 %v5742_v31 }
 0xe3a   :  { %4837 = vmatprep.subr.bf16.mxu1 %v5405_v1  ;;  %4843 = vmatprep.subr.bf16.mxu0 %v5405_v1 }
 0xe43   :  { %v2148_v18 = vpop.permute.xlu0 %2147 }
 0xe44   :  { %4499 = vmatmul.mubr.msk.f32.vlgmr.msra.gmra.mrb[10].mxu0 %vm166_vm1, %v2148_v18  ;;  %4510 = vmatmul.mubr.msk.f32.vlgmr.msra.gmra.mrb[16].mxu1 %vm166_vm1, %v2148_v18 }
 0xe45   :  { %4839 = vmatpush3.bf16.msra.mxu1 %v5757_v42  ;;  %4520 = vmatprep.mubr.msk.f32.mxu1 %vm5406_vm0, %v5407_v2 }
 0xe46   :  { %4840 = vmatprep.subr.bf16.mxu1 %v5405_v1  ;;  %4845 = vmatpush3.bf16.msra.mxu0 %v5613_v7 }
 0xe47   :  { %4846 = vmatprep.subr.bf16.mxu0 %v5405_v1  ;;  %4531 = vmatprep.mubr.msk.f32.mxu0 %vm5406_vm0, %v5407_v2 }
 0xe49   :  { %4842 = vmatpush3.bf16.msra.mxu1 %v5764_v47 }
 0xe4a   :  { %4849 = vmatprep.subr.bf16.mxu1 %v5405_v1  ;;  %4848 = vmatpush3.bf16.msra.mxu0 %v5622_v11 }
 0xe4b   :  { %v2318_v20 = vpop.permute.xlu1 %2317  ;;  %4861 = vmatprep.subr.bf16.mxu0 %v5405_v1 }
 0xe4c   :  { %4521 = vmatmul.mubr.msk.f32.vlgmr.msra.gmra.mrb[16].mxu1 %vm166_vm1, %v2318_v20 }
 0xe4d   :  { %4851 = vmatpush3.bf16.msra.mxu1 %v5662_v37  ;;  %4542 = vmatprep.mubr.msk.f32.mxu1 %vm5406_vm0, %v5407_v2 }
 0xe4e   :  { %4852 = vmatprep.subr.bf16.mxu1 %v5405_v1 }
 0xe51   :  { %4854 = vmatpush3.bf16.msra.mxu1 %v5668_v39 }
 0xe52   :  { %4855 = vmatprep.subr.bf16.mxu1 %v5405_v1 }
 0xe54   :  { %v1972_v21 = vpop.permute.xlu0 %1971 }
 0xe55   :  { %v1974_v22 = vmul.f32 %v5638_v13, %v1972_v21 }
 0xe57   :  { %v1975_v24 = vadd.f32 %v5641_v16, %v1974_v22 }
 0xf07   :  { %v2047_v25 = vpop.f32.mrb[14].mxu1 }
 0xf08   :  { %v2051_v26 = vadd.f32 %v2047_v25, %v1975_v24  ;;  %v4478_v27 = vpop.f32.mrb[15].mxu1 }
 0xf0a   :  { %5109 = vtanh.f32 %v2051_v26  ;;  %v4027_v40 = vmul.f32 -1.442695, %v2051_v26 }
 0xf14   :  { %v5110_v29 = vpop.eup %5109 }
 0xf15   :  { %2061 = vrot.lane.b32.xlu1 %v5110_v29, %s5410_s13 }
 0xf17   :  { %v2217_v30 = vpop.f32.mrb[10].mxu0 }
 0xf18   :  { %v4946_v32 = vadd.f32 %v5709_v56, %v2217_v30  ;;  %v4500_v33 = vpop.f32.mrb[11].mxu0 }
 0xf1a   :  { %5111 = vtanh.f32 %v4946_v32  ;;  %v4030_v45 = vmul.f32 -1.442695, %v4946_v32  ;;  %v6077_v32 = vld [vmem:[#allocation8] ss:$0 sm:$0xff] }
 0xf1f   :  { %v2387_v35 = vpop.f32.mrb[16].mxu1 }
 0xf20   :  { %v4947_v36 = vadd.f32 %v5796_v58, %v2387_v35  ;;  %v4522_v38 = vpop.f32.mrb[17].mxu1 }
 0xf22   :  { %5113 = vtanh.f32 %v4947_v36  ;;  %v4033_v56 = vmul.f32 -1.442695, %v4947_v36 }
 0xf23   :  { %5115 = vpow2.f32 %v4027_v40  ;;  %v6081_v40 = vld [vmem:[#allocation9] ss:$0 sm:$0xff] }
 0xf24   :  { %v5112_v13 = vpop.eup %5111  ;;  %5117 = vpow2.f32 %v4030_v45 }
 0xf25   :  { %2231 = vrot.lane.b32.xlu0 %v5112_v13, %s5410_s13 }
 0xf2c   :  { %v5114_v16 = vpop.eup %5113 }
 0xf2d   :  { %2401 = vrot.lane.b32.xlu1 %v5114_v16, %s5410_s13  ;;  %v5116_v43 = vpop.eup %5115 }
 0xf2e   :  { %v2055_v19 = vadd.f32 1.0, %v5116_v43  ;;  %v5118_v49 = vpop.eup %5117 }
 0xf2f   :  { %v2225_v54 = vadd.f32 1.0, %v5118_v49 }
 0xf30   :  { %5119 = vrcp.f32 %v2055_v19 }
 0xf31   :  { %5121 = vpow2.f32 %v4033_v56 }
 0xf32   :  { %5123 = vrcp.f32 %v2225_v54 }
 0xf3a   :  { %v5120_v23 = vpop.eup %5119 }
 0xf3b   :  { %v5122_v57 = vpop.eup %5121  ;;  %v2059_v5 = vmul.f32 %v5120_v23, %v5944_v41 }
 0xf3c   :  { %v2395_v34 = vadd.f32 1.0, %v5122_v57  ;;  %v5124_v60 = vpop.eup %5123 }
 0xf3d   :  { %v2229_v53 = vmul.f32 %v5124_v60, %v5949_v0 }
 0xf3e   :  { %5125 = vrcp.f32 %v2395_v34 }
 0xf48   :  { %v5126_v63 = vpop.eup %5125 }
 0xf49   :  { %v2399_v59 = vmul.f32 %v5126_v63, %v5953_v6  ;;  %v2425_v6 = vld [vmem:[%s6339_s30 + $0x30] sm:$0xff] }
 0xf87   :  { %v2062_v51 = vpop.permute.xlu1 %2061 }
 0xf88   :  { %v2064_v52 = vmul.f32 %v5120_v23, %v2062_v51 }
 0xf8a   :  { %2066 = vrot.lane.b32.xlu0 %v2064_v52, %s5409_s1 }
 0xf97   :  { %v2232_v61 = vpop.permute.xlu0 %2231 }
 0xf98   :  { %v2234_v62 = vmul.f32 %v5124_v60, %v2232_v61 }
 0xf9a   :  { %2236 = vrot.lane.b32.xlu1 %v2234_v62, %s5409_s1 }
 0xf9f   :  { %v2402_v46 = vpop.permute.xlu1 %2401 }
 0xfa0   :  { %v2404_v4 = vmul.f32 %v5126_v63, %v2402_v46 }
 0xfa2   :  { %2406 = vrot.lane.b32.xlu0 %v2404_v4, %s5409_s1 }
 0xffc   :  { %v2067_v50 = vpop.permute.xlu0 %2066 }
 0xffd   :  { %v6013_v8 = vadd.f32 %v2067_v50, %v2059_v5 }
 0xfff   :  { %5127 = vtanh.f32 %v6013_v8 }
0x1009   :  { %v5128_v9 = vpop.eup %5127 }
0x100a   :  { %2072 = vrot.lane.b32.xlu1 %v5128_v9, %s5410_s13 }
0x100c   :  { %v2237_v10 = vpop.permute.xlu1 %2236 }
0x100d   :  { %v6018_v12 = vadd.f32 %v2237_v10, %v2229_v53 }
0x100f   :  { %5129 = vtanh.f32 %v6018_v12 }
0x1014   :  { %v2407_v14 = vpop.permute.xlu0 %2406 }
0x1015   :  { %v6022_v17 = vadd.f32 %v2407_v14, %v2399_v59 }
0x1017   :  { %5131 = vtanh.f32 %v6022_v17 }
0x1019   :  { %v5130_v41 = vpop.eup %5129 }
0x101a   :  { %2242 = vrot.lane.b32.xlu0 %v5130_v41, %s5410_s13 }
0x1021   :  { %v5132_v18 = vpop.eup %5131 }
0x1022   :  { %2412 = vrot.lane.b32.xlu1 %v5132_v18, %s5410_s13 }
0x107c   :  { %v2073_v20 = vpop.permute.xlu1 %2072 }
0x107d   :  { %v2075_v0 = vmul.f32 %v5120_v23, %v2073_v20 }
0x107f   :  { %2434 = vrot.lane.b32.xlu0 %v2075_v0, %s5409_s1 }
0x108c   :  { %v2243_v21 = vpop.permute.xlu0 %2242 }
0x108d   :  { %v2245_v22 = vmul.f32 %v5124_v60, %v2243_v21 }
0x108f   :  { %2604 = vrot.lane.b32.xlu1 %v2245_v22, %s5409_s1 }
0x1093   :  { %2428 = vperm.xlu1 %5012, %v2425_v6  }
0x1094   :  { %v2413_v24 = vpop.permute.xlu1 %2412 }
0x1095   :  { %v6032_v25 = vmul.f32 %v5126_v63, %v2413_v24 }
0x1097   :  { %2774 = vrot.lane.b32.xlu0 %v6032_v25, %s5409_s1 }
0x10f1   :  { %v2435_v26 = vpop.permute.xlu0 %2434 }
0x10f2   :  { %4532 = vmatmul.mubr.msk.f32.vlgmr.msra.gmra.mrb[12].mxu0 %vm166_vm1, %v2435_v26  ;;  %4543 = vmatmul.mubr.msk.f32.vlgmr.msra.gmra.mrb[18].mxu1 %vm166_vm1, %v2435_v26 }
0x10f3   :  { %4857 = vmatpush3.bf16.msra.mxu1 %v5680_v44  ;;  %4863 = vmatpush3.bf16.msra.mxu0 %v5732_v28 }
0x10f4   :  { %4858 = vmatprep.subr.bf16.mxu1 %v5405_v1  ;;  %4864 = vmatprep.subr.bf16.mxu0 %v5405_v1 }
0x10f5   :  { %4553 = vmatprep.mubr.msk.f32.mxu1 %vm5406_vm0, %v5407_v2  ;;  %4564 = vmatprep.mubr.msk.f32.mxu0 %vm5406_vm0, %v5407_v2 }
0x10f7   :  { %4860 = vmatpush3.bf16.msra.mxu1 %v5691_v48  ;;  %4866 = vmatpush3.bf16.msra.mxu0 %v5742_v31 }
0x10f8   :  { %4867 = vmatprep.subr.bf16.mxu0 %v5405_v1  ;;  %4873 = vmatprep.subr.bf16.mxu1 %v5405_v1 }
0x1101   :  { %v2605_v27 = vpop.permute.xlu1 %2604 }
0x1102   :  { %4554 = vmatmul.mubr.msk.f32.vlgmr.msra.gmra.mrb[18].mxu1 %vm166_vm1, %v2605_v27  ;;  %4565 = vmatmul.mubr.msk.f32.vlgmr.msra.gmra.mrb[14].mxu0 %vm166_vm1, %v2605_v27 }
0x1103   :  { %4869 = vmatpush3.bf16.msra.mxu0 %v5757_v42  ;;  %4575 = vmatprep.mubr.msk.f32.mxu0 %vm5406_vm0, %v5407_v2 }
0x1104   :  { %4870 = vmatprep.subr.bf16.mxu0 %v5405_v1  ;;  %4875 = vmatpush3.bf16.msra.mxu1 %v5613_v7 }
0x1105   :  { %4876 = vmatprep.subr.bf16.mxu1 %v5405_v1  ;;  %4586 = vmatprep.mubr.msk.f32.mxu1 %vm5406_vm0, %v5407_v2 }
0x1107   :  { %4872 = vmatpush3.bf16.msra.mxu0 %v5764_v47 }
0x1108   :  { %4879 = vmatprep.subr.bf16.mxu0 %v5405_v1  ;;  %4878 = vmatpush3.bf16.msra.mxu1 %v5622_v11  ;;  %v6074_v11 = vld [vmem:[%s6323_s3] ss:$0 sm:$0xff] }
0x1109   :  { %v2775_v29 = vpop.permute.xlu0 %2774  ;;  %4891 = vmatprep.subr.bf16.mxu1 %v5405_v1 }
0x110a   :  { %4576 = vmatmul.mubr.msk.f32.vlgmr.msra.gmra.mrb[14].mxu0 %vm166_vm1, %v2775_v29 }
0x110b   :  { %4881 = vmatpush3.bf16.msra.mxu0 %v5662_v37  ;;  %4597 = vmatprep.mubr.msk.f32.mxu0 %vm5406_vm0, %v5407_v2 }
0x110c   :  { %4882 = vmatprep.subr.bf16.mxu0 %v5405_v1 }
0x110f   :  { %4884 = vmatpush3.bf16.msra.mxu0 %v5668_v39 }
0x1110   :  { %4885 = vmatprep.subr.bf16.mxu0 %v5405_v1 }
0x1112   :  { %v2429_v7 = vpop.permute.xlu1 %2428 }
0x1113   :  { %v2431_v30 = vmul.f32 %v6074_v11, %v2429_v7 }
0x1115   :  { %v2432_v33 = vadd.f32 %v6077_v32, %v2431_v30 }
0x11c5   :  { %v2504_v35 = vpop.f32.mrb[12].mxu0 }
0x11c6   :  { %v2508_v36 = vadd.f32 %v2504_v35, %v2432_v33  ;;  %v4533_v38 = vpop.f32.mrb[13].mxu0 }
0x11c8   :  { %5133 = vtanh.f32 %v2508_v36  ;;  %v4035_v52 = vmul.f32 -1.442695, %v2508_v36 }
0x11d2   :  { %v5134_v13 = vpop.eup %5133 }
0x11d3   :  { %2518 = vrot.lane.b32.xlu0 %v5134_v13, %s5410_s13 }
0x11d5   :  { %v2674_v16 = vpop.f32.mrb[18].mxu1 }
0x11d6   :  { %v4948_v43 = vadd.f32 %v6081_v40, %v2674_v16  ;;  %v4555_v45 = vpop.f32.mrb[19].mxu1 }
0x11d8   :  { %5135 = vtanh.f32 %v4948_v43  ;;  %v4038_v57 = vmul.f32 -1.442695, %v4948_v43 }
0x11dd   :  { %v2844_v19 = vpop.f32.mrb[14].mxu0 }
0x11de   :  { %v4949_v56 = vadd.f32 %v5796_v58, %v2844_v19  ;;  %v4577_v49 = vpop.f32.mrb[15].mxu0 }
0x11e0   :  { %5137 = vtanh.f32 %v4949_v56  ;;  %v4041_v60 = vmul.f32 -1.442695, %v4949_v56 }
0x11e1   :  { %5139 = vpow2.f32 %v4035_v52 }
0x11e2   :  { %v5136_v23 = vpop.eup %5135  ;;  %5141 = vpow2.f32 %v4038_v57  ;;  %v6156_v57 = vld [vmem:[%s6331_s11] ss:$0 sm:$0xff]  ;;  %s5411_s11 = smov 96  }
0x11e3   :  { %2688 = vrot.lane.b32.xlu1 %v5136_v23, %s5410_s13 }
0x11ea   :  { %v5138_v51 = vpop.eup %5137 }
0x11eb   :  { %2858 = vrot.lane.b32.xlu0 %v5138_v51, %s5410_s13  ;;  %v5140_v54 = vpop.eup %5139 }
0x11ec   :  { %v2512_v34 = vadd.f32 1.0, %v5140_v54  ;;  %v5142_v61 = vpop.eup %5141 }
0x11ed   :  { %v2682_v46 = vadd.f32 1.0, %v5142_v61 }
0x11ee   :  { %5143 = vrcp.f32 %v2512_v34 }
0x11ef   :  { %5145 = vpow2.f32 %v4041_v60 }
0x11f0   :  { %5147 = vrcp.f32 %v2682_v46 }
0x11f8   :  { %v5144_v62 = vpop.eup %5143 }
0x11f9   :  { %v5146_v4 = vpop.eup %5145  ;;  %v2516_v41 = vmul.f32 %v5144_v62, %v6013_v8 }
0x11fa   :  { %v2852_v5 = vadd.f32 1.0, %v5146_v4  ;;  %v5148_v50 = vpop.eup %5147 }
0x11fb   :  { %v2686_v21 = vmul.f32 %v5148_v50, %v6018_v12 }
0x11fc   :  { %5149 = vrcp.f32 %v2852_v5 }
0x1206   :  { %v5150_v10 = vpop.eup %5149 }
0x1207   :  { %v2856_v24 = vmul.f32 %v5150_v10, %v6022_v17  ;;  %v2882_v17 = vld [vmem:[%s6339_s30 + $0x38] sm:$0xff] }
0x1245   :  { %v2519_v58 = vpop.permute.xlu0 %2518 }
0x1246   :  { %v2521_v63 = vmul.f32 %v5144_v62, %v2519_v58 }
0x1248   :  { %2523 = vrot.lane.b32.xlu1 %v2521_v63, %s5409_s1 }
0x1255   :  { %v2689_v9 = vpop.permute.xlu1 %2688 }
0x1256   :  { %v2691_v53 = vmul.f32 %v5148_v50, %v2689_v9 }
0x1258   :  { %2693 = vrot.lane.b32.xlu0 %v2691_v53, %s5409_s1 }
0x125d   :  { %v2859_v59 = vpop.permute.xlu0 %2858 }
0x125e   :  { %v2861_v14 = vmul.f32 %v5150_v10, %v2859_v59 }
0x1260   :  { %2863 = vrot.lane.b32.xlu1 %v2861_v14, %s5409_s1 }
0x12ba   :  { %v2524_v18 = vpop.permute.xlu1 %2523 }
0x12bb   :  { %v6091_v20 = vadd.f32 %v2524_v18, %v2516_v41 }
0x12bd   :  { %5151 = vtanh.f32 %v6091_v20 }
0x12c7   :  { %v5152_v0 = vpop.eup %5151 }
0x12c8   :  { %2529 = vrot.lane.b32.xlu0 %v5152_v0, %s5410_s13 }
0x12ca   :  { %v2694_v22 = vpop.permute.xlu0 %2693 }
0x12cb   :  { %v6096_v6 = vadd.f32 %v2694_v22, %v2686_v21 }
0x12cd   :  { %5153 = vtanh.f32 %v6096_v6 }
0x12d2   :  { %v2864_v26 = vpop.permute.xlu1 %2863 }
0x12d3   :  { %v6100_v27 = vadd.f32 %v2864_v26, %v2856_v24 }
0x12d5   :  { %5155 = vtanh.f32 %v6100_v27 }
0x12d7   :  { %v5154_v8 = vpop.eup %5153 }
0x12d8   :  { %2699 = vrot.lane.b32.xlu1 %v5154_v8, %s5410_s13 }
0x12df   :  { %v5156_v29 = vpop.eup %5155 }
0x12e0   :  { %2869 = vrot.lane.b32.xlu0 %v5156_v29, %s5410_s13 }
0x133a   :  { %v2530_v7 = vpop.permute.xlu0 %2529 }
0x133b   :  { %v2532_v12 = vmul.f32 %v5144_v62, %v2530_v7 }
0x133d   :  { %2891 = vrot.lane.b32.xlu1 %v2532_v12, %s5409_s1 }
0x134a   :  { %v2700_v30 = vpop.permute.xlu1 %2699 }
0x134b   :  { %v2702_v33 = vmul.f32 %v5148_v50, %v2700_v30 }
0x134d   :  { %3061 = vrot.lane.b32.xlu0 %v2702_v33, %s5409_s1 }
0x1351   :  { %2885 = vperm.xlu0 %5011, %v2882_v17  }
0x1352   :  { %v2870_v35 = vpop.permute.xlu0 %2869 }
0x1353   :  { %v6110_v36 = vmul.f32 %v5150_v10, %v2870_v35 }
0x1355   :  { %3231 = vrot.lane.b32.xlu1 %v6110_v36, %s5409_s1 }
0x13af   :  { %v2892_v38 = vpop.permute.xlu1 %2891 }
0x13b0   :  { %4587 = vmatmul.mubr.msk.f32.vlgmr.msra.gmra.mrb[20].mxu1 %vm166_vm1, %v2892_v38  ;;  %4598 = vmatmul.mubr.msk.f32.vlgmr.msra.gmra.mrb[16].mxu0 %vm166_vm1, %v2892_v38 }
0x13b1   :  { %4887 = vmatpush3.bf16.msra.mxu0 %v5680_v44  ;;  %4893 = vmatpush3.bf16.msra.mxu1 %v5732_v28 }
0x13b2   :  { %4888 = vmatprep.subr.bf16.mxu0 %v5405_v1  ;;  %4894 = vmatprep.subr.bf16.mxu1 %v5405_v1 }
0x13b3   :  { %4608 = vmatprep.mubr.msk.f32.mxu0 %vm5406_vm0, %v5407_v2  ;;  %4619 = vmatprep.mubr.msk.f32.mxu1 %vm5406_vm0, %v5407_v2 }
0x13b5   :  { %4890 = vmatpush3.bf16.msra.mxu0 %v5691_v48  ;;  %4896 = vmatpush3.bf16.msra.mxu1 %v5742_v31 }
0x13b6   :  { %4897 = vmatprep.subr.bf16.mxu1 %v5405_v1  ;;  %4903 = vmatprep.subr.bf16.mxu0 %v5405_v1 }
0x13bf   :  { %v3062_v13 = vpop.permute.xlu0 %3061 }
0x13c0   :  { %4609 = vmatmul.mubr.msk.f32.vlgmr.msra.gmra.mrb[16].mxu0 %vm166_vm1, %v3062_v13  ;;  %4620 = vmatmul.mubr.msk.f32.vlgmr.msra.gmra.mrb[22].mxu1 %vm166_vm1, %v3062_v13 }
0x13c1   :  { %4899 = vmatpush3.bf16.msra.mxu1 %v5757_v42  ;;  %4630 = vmatprep.mubr.msk.f32.mxu1 %vm5406_vm0, %v5407_v2 }
0x13c2   :  { %4900 = vmatprep.subr.bf16.mxu1 %v5405_v1  ;;  %4905 = vmatpush3.bf16.msra.mxu0 %v5662_v37 }
0x13c3   :  { %4906 = vmatprep.subr.bf16.mxu0 %v5405_v1  ;;  %4641 = vmatprep.mubr.msk.f32.mxu0 %vm5406_vm0, %v5407_v2 }
0x13c5   :  { %4902 = vmatpush3.bf16.msra.mxu1 %v5764_v47 }
0x13c6   :  { %4908 = vmatpush3.bf16.msra.mxu0 %v5668_v39  ;;  %4915 = vmatprep.subr.bf16.mxu1 %v5405_v1 }
0x13c7   :  { %v3232_v16 = vpop.permute.xlu1 %3231  ;;  %4909 = vmatprep.subr.bf16.mxu0 %v5405_v1 }
0x13c8   :  { %4631 = vmatmul.mubr.msk.f32.vlgmr.msra.gmra.mrb[22].mxu1 %vm166_vm1, %v3232_v16 }
0x13c9   :  { %4917 = vmatpush3.bf16.msra.mxu1 %v5732_v28  ;;  %4663 = vmatprep.mubr.msk.f32.mxu1 %vm5406_vm0, %v5407_v2 }
0x13ca   :  { %4918 = vmatprep.subr.bf16.mxu1 %v5405_v1 }
0x13cd   :  { %4920 = vmatpush3.bf16.msra.mxu1 %v5742_v31 }
0x13ce   :  { %4921 = vmatprep.subr.bf16.mxu1 %v5405_v1 }
0x13d0   :  { %v2886_v37 = vpop.permute.xlu0 %2885 }
0x13d1   :  { %v2888_v39 = vmul.f32 %v6074_v11, %v2886_v37 }
0x13d3   :  { %v2889_v43 = vadd.f32 %v6077_v32, %v2888_v39 }
0x1483   :  { %v2961_v45 = vpop.f32.mrb[20].mxu1 }
0x1484   :  { %v2965_v19 = vadd.f32 %v2961_v45, %v2889_v43  ;;  %v4588_v56 = vpop.f32.mrb[21].mxu1 }
0x1486   :  { %5157 = vtanh.f32 %v2965_v19  ;;  %v4043_v61 = vmul.f32 -1.442695, %v2965_v19 }
0x1490   :  { %v5158_v49 = vpop.eup %5157 }
0x1491   :  { %2975 = vrot.lane.b32.xlu1 %v5158_v49, %s5410_s13 }
0x1493   :  { %v3131_v23 = vpop.f32.mrb[16].mxu0 }
0x1494   :  { %v4950_v51 = vadd.f32 %v6081_v40, %v3131_v23  ;;  %v4610_v52 = vpop.f32.mrb[17].mxu0 }
0x1496   :  { %5159 = vtanh.f32 %v4950_v51  ;;  %v4046_v58 = vmul.f32 -1.442695, %v4950_v51 }
0x149b   :  { %v3301_v54 = vpop.f32.mrb[22].mxu1 }
0x149c   :  { %v4951_v11 = vadd.f32 %v6156_v57, %v3301_v54  ;;  %v4632_v32 = vpop.f32.mrb[23].mxu1 }
0x149e   :  { %5161 = vtanh.f32 %v4951_v11  ;;  %v4049_v46 = vmul.f32 -1.442695, %v4951_v11 }
0x149f   :  { %5163 = vpow2.f32 %v4043_v61 }
0x14a0   :  { %v5160_v34 = vpop.eup %5159  ;;  %5165 = vpow2.f32 %v4046_v58 }
0x14a1   :  { %3145 = vrot.lane.b32.xlu0 %v5160_v34, %s5410_s13 }
0x14a8   :  { %v5162_v60 = vpop.eup %5161 }
0x14a9   :  { %3315 = vrot.lane.b32.xlu1 %v5162_v60, %s5410_s13  ;;  %v5164_v62 = vpop.eup %5163 }
0x14aa   :  { %v2969_v63 = vadd.f32 1.0, %v5164_v62  ;;  %v5166_v4 = vpop.eup %5165 }
0x14ab   :  { %v3139_v53 = vadd.f32 1.0, %v5166_v4 }
0x14ac   :  { %5167 = vrcp.f32 %v2969_v63 }
0x14ad   :  { %5169 = vpow2.f32 %v4049_v46 }
0x14ae   :  { %5171 = vrcp.f32 %v3139_v53 }
0x14b6   :  { %v5168_v5 = vpop.eup %5167 }
0x14b7   :  { %v5170_v10 = vpop.eup %5169  ;;  %v2973_v24 = vmul.f32 %v5168_v5, %v6091_v20 }
0x14b8   :  { %v3309_v59 = vadd.f32 1.0, %v5170_v10  ;;  %v5172_v14 = vpop.eup %5171 }
0x14b9   :  { %v3143_v7 = vmul.f32 %v5172_v14, %v6096_v6 }
0x14ba   :  { %5173 = vrcp.f32 %v3309_v59 }
0x14c4   :  { %v5174_v0 = vpop.eup %5173 }
0x14c5   :  { %v3313_v33 = vmul.f32 %v5174_v0, %v6100_v27 }
0x1503   :  { %v2976_v50 = vpop.permute.xlu1 %2975 }
0x1504   :  { %v2978_v9 = vmul.f32 %v5168_v5, %v2976_v50 }
0x1506   :  { %2980 = vrot.lane.b32.xlu0 %v2978_v9, %s5409_s1 }
0x1513   :  { %v3146_v41 = vpop.permute.xlu0 %3145 }
0x1514   :  { %v3148_v18 = vmul.f32 %v5172_v14, %v3146_v41 }
0x1516   :  { %3150 = vrot.lane.b32.xlu1 %v3148_v18, %s5409_s1 }
0x151b   :  { %v3316_v21 = vpop.permute.xlu1 %3315 }
0x151c   :  { %v3318_v22 = vmul.f32 %v5174_v0, %v3316_v21 }
0x151e   :  { %3320 = vrot.lane.b32.xlu0 %v3318_v22, %s5409_s1 }
0x1578   :  { %v2981_v26 = vpop.permute.xlu0 %2980 }
0x1579   :  { %v6165_v8 = vadd.f32 %v2981_v26, %v2973_v24 }
0x157b   :  { %5175 = vtanh.f32 %v6165_v8 }
0x1585   :  { %v5176_v29 = vpop.eup %5175 }
0x1586   :  { %2986 = vrot.lane.b32.xlu1 %v5176_v29, %s5410_s13 }
0x1588   :  { %v3151_v12 = vpop.permute.xlu1 %3150 }
0x1589   :  { %v6170_v30 = vadd.f32 %v3151_v12, %v3143_v7 }
0x158b   :  { %5177 = vtanh.f32 %v6170_v30 }
0x1590   :  { %v3321_v17 = vpop.permute.xlu0 %3320 }
0x1591   :  { %v6174_v35 = vadd.f32 %v3321_v17, %v3313_v33 }
0x1593   :  { %5179 = vtanh.f32 %v6174_v35 }
0x1595   :  { %v5178_v20 = vpop.eup %5177 }
0x1596   :  { %3156 = vrot.lane.b32.xlu0 %v5178_v20, %s5410_s13 }
0x159d   :  { %v5180_v38 = vpop.eup %5179 }
0x159e   :  { %3326 = vrot.lane.b32.xlu1 %v5180_v38, %s5410_s13 }
0x15f8   :  { %v2987_v13 = vpop.permute.xlu1 %2986 }
0x15f9   :  { %v2989_v6 = vmul.f32 %v5168_v5, %v2987_v13 }
0x15fb   :  { %3340 = vrot.lane.b32.xlu0 %v2989_v6, %s5409_s1 }
0x1608   :  { %v3157_v16 = vpop.permute.xlu0 %3156 }
0x1609   :  { %v3159_v37 = vmul.f32 %v5172_v14, %v3157_v16 }
0x160b   :  { %3415 = vrot.lane.b32.xlu1 %v3159_v37, %s5409_s1 }
0x1610   :  { %v3327_v27 = vpop.permute.xlu1 %3326 }
0x1611   :  { %v6181_v39 = vmul.f32 %v5174_v0, %v3327_v27 }
0x1613   :  { %3585 = vrot.lane.b32.xlu0 %v6181_v39, %s5409_s1 }
0x166d   :  { %v3341_v43 = vpop.permute.xlu0 %3340 }
0x166e   :  { %3878 = vst.msk [vmem:[#allocation14] sm:$0xff] %vm166_vm1, %v3341_v43  ;;  %4642 = vmatmul.mubr.msk.f32.vlgmr.msra.gmra.mrb[18].mxu0 %vm166_vm1, %v3341_v43 }
0x166f   :  { %4911 = vmatpush3.bf16.msra.mxu0 %v5680_v44  ;;  %4652 = vmatprep.mubr.msk.f32.mxu0 %vm5406_vm0, %v5407_v2 }
0x1670   :  { %4912 = vmatprep.subr.bf16.mxu0 %v5405_v1 }
0x1673   :  { %4914 = vmatpush3.bf16.msra.mxu0 %v5691_v48 }
0x1674   :  { %4927 = vmatprep.subr.bf16.mxu0 %v5405_v1 }
0x167d   :  { %v3416_v45 = vpop.permute.xlu1 %3415 }
0x167e   :  { %4653 = vmatmul.mubr.msk.f32.vlgmr.msra.gmra.mrb[18].mxu0 %vm166_vm1, %v3416_v45  ;;  %4664 = vmatmul.mubr.msk.f32.vlgmr.msra.gmra.mrb[24].mxu1 %vm166_vm1, %v3416_v45 }
0x167f   :  { %4923 = vmatpush3.bf16.msra.mxu1 %v5757_v42  ;;  %4674 = vmatprep.mubr.msk.f32.mxu1 %vm5406_vm0, %v5407_v2 }
0x1680   :  { %4924 = vmatprep.subr.bf16.mxu1 %v5405_v1  ;;  %4929 = vmatpush3.bf16.msra.mxu0 %v5732_v28 }
0x1681   :  { %4930 = vmatprep.subr.bf16.mxu0 %v5405_v1  ;;  %4685 = vmatprep.mubr.msk.f32.mxu0 %vm5406_vm0, %v5407_v2 }
0x1683   :  { %4926 = vmatpush3.bf16.msra.mxu1 %v5764_v47 }
0x1684   :  { %4932 = vmatpush3.bf16.msra.mxu0 %v5742_v31 }
0x1685   :  { %v3586_v44 = vpop.permute.xlu0 %3585  ;;  %4933 = vmatprep.subr.bf16.mxu0 %v5405_v1 }
0x1686   :  { %4675 = vmatmul.mubr.msk.f32.vlgmr.msra.gmra.mrb[24].mxu1 %vm166_vm1, %v3586_v44 }
0x1751   :  { %v3485_v48 = vpop.f32.mrb[18].mxu0 }
0x1752   :  { %v4952_v19 = vadd.f32 %v6081_v40, %v3485_v48  ;;  %v4654_v56 = vpop.f32.mrb[19].mxu0 }
0x1754   :  { %5181 = vtanh.f32 %v4952_v19  ;;  %v4052_v31 = vmul.f32 -1.442695, %v4952_v19 }
0x1759   :  { %v3655_v28 = vpop.f32.mrb[24].mxu1 }
0x175a   :  { %v4953_v49 = vadd.f32 %v6156_v57, %v3655_v28  ;;  %v4676_v23 = vpop.f32.mrb[25].mxu1 }
0x175c   :  { %5183 = vtanh.f32 %v4953_v49  ;;  %v4055_v54 = vmul.f32 -1.442695, %v4953_v49 }
0x175d   :  { %5185 = vpow2.f32 %v4052_v31 }
0x175e   :  { %v5182_v51 = vpop.eup %5181  ;;  %5187 = vpow2.f32 %v4055_v54 }
0x175f   :  { %3499 = vrot.lane.b32.xlu1 %v5182_v51, %s5410_s13 }
0x1766   :  { %v5184_v52 = vpop.eup %5183 }
0x1767   :  { %3669 = vrot.lane.b32.xlu0 %v5184_v52, %s5410_s13  ;;  %v5186_v11 = vpop.eup %5185 }
0x1768   :  { %v3493_v32 = vadd.f32 1.0, %v5186_v11  ;;  %v5188_v40 = vpop.eup %5187 }
0x1769   :  { %v3663_v34 = vadd.f32 1.0, %v5188_v40 }
0x176a   :  { %5189 = vrcp.f32 %v3493_v32 }
0x176b   :  { %5191 = vrcp.f32 %v3663_v34 }
0x1774   :  { %v5190_v60 = vpop.eup %5189 }
0x1775   :  { %v5192_v58 = vpop.eup %5191  ;;  %v3497_v4 = vmul.f32 %v5190_v60, %v6170_v30  ;;  %v4008_v30 = vld [vmem:[#allocation12] ss:$0 sm:$0xff] }
0x1776   :  { %v3667_v9 = vmul.f32 %v5192_v58, %v6174_v35 }
0x17d1   :  { %v3500_v61 = vpop.permute.xlu1 %3499 }
0x17d2   :  { %v3502_v62 = vmul.f32 %v5190_v60, %v3500_v61 }
0x17d4   :  { %3504 = vrot.lane.b32.xlu1 %v3502_v62, %s5409_s1 }
0x17d9   :  { %v3670_v63 = vpop.permute.xlu0 %3669 }
0x17da   :  { %v3672_v46 = vmul.f32 %v5192_v58, %v3670_v63 }
0x17dc   :  { %3674 = vrot.lane.b32.xlu0 %v3672_v46, %s5409_s1 }
0x1846   :  { %v3505_v5 = vpop.permute.xlu1 %3504 }
0x1847   :  { %v6214_v50 = vadd.f32 %v3505_v5, %v3497_v4 }
0x1849   :  { %5193 = vtanh.f32 %v6214_v50 }
0x184e   :  { %v3675_v53 = vpop.permute.xlu0 %3674 }
0x184f   :  { %v3677_v10 = vadd.f32 %v3675_v53, %v3667_v9 }
0x1851   :  { %5195 = vtanh.f32 %v3677_v10 }
0x1853   :  { %v5194_v59 = vpop.eup %5193 }
0x1854   :  { %3510 = vrot.lane.b32.xlu1 %v5194_v59, %s5410_s13 }
0x185b   :  { %v5196_v14 = vpop.eup %5195 }
0x185c   :  { %3680 = vrot.lane.b32.xlu0 %v5196_v14, %s5410_s13 }
0x18c6   :  { %v3511_v41 = vpop.permute.xlu1 %3510 }
0x18c7   :  { %v3513_v18 = vmul.f32 %v5190_v60, %v3511_v41 }
0x18c9   :  { %3694 = vrot.lane.b32.xlu1 %v3513_v18, %s5409_s1 }
0x18ce   :  { %v3681_v0 = vpop.permute.xlu0 %3680 }
0x18cf   :  { %v3683_v21 = vmul.f32 %v5192_v58, %v3681_v0  ;;  %v6262_v58 = vld [vmem:[#allocation2] ss:$0 sm:$0xff] }
0x18d1   :  { %3769 = vrot.lane.b32.xlu0 %v3683_v21, %s5409_s1 }
0x193b   :  { %v3695_v22 = vpop.permute.xlu1 %3694 }
0x193c   :  { %3886 = vst.msk [vmem:[#allocation14 + $0x8] sm:$0xff] %vm166_vm1, %v3695_v22  ;;  %4686 = vmatmul.mubr.msk.f32.vlgmr.msra.gmra.mrb[20].mxu0 %vm166_vm1, %v3695_v22 }
0x193d   :  { %4935 = vmatpush3.bf16.msra.mxu0 %v5757_v42  ;;  %4696 = vmatprep.mubr.msk.f32.mxu0 %vm5406_vm0, %v5407_v2 }
0x193e   :  { %4936 = vmatprep.subr.bf16.mxu0 %v5405_v1 }
0x1941   :  { %4938 = vmatpush3.bf16.msra.mxu0 %v5764_v47 }
0x1943   :  { %v3770_v24 = vpop.permute.xlu0 %3769 }
0x1944   :  { %4697 = vmatmul.mubr.msk.f32.vlgmr.msra.gmra.mrb[20].mxu0 %vm166_vm1, %v3770_v24 }
0x1a17   :  { %v3839_v26 = vpop.f32.mrb[20].mxu0 }
0x1a18   :  { %v4954_v29 = vadd.f32 %v6156_v57, %v3839_v26  ;;  %v4698_v7 = vpop.f32.mrb[21].mxu0 }
0x1a1a   :  { %5197 = vtanh.f32 %v4954_v29  ;;  %v4058_v2 = vmul.f32 -1.442695, %v4954_v29 }
0x1a1c   :  { %5199 = vpow2.f32 %v4058_v2 }
0x1a24   :  { %v5198_v12 = vpop.eup %5197 }
0x1a25   :  { %3853 = vrot.lane.b32.xlu1 %v5198_v12, %s5410_s13 }
0x1a26   :  { %v5200_v1 = vpop.eup %5199 }
0x1a27   :  { %v3847_v42 = vadd.f32 1.0, %v5200_v1 }
0x1a29   :  { %1035 = vrot.lane.b32.xlu1 %v4008_v30, %s5411_s11  ;;  %5201 = vrcp.f32 %v3847_v42 }
0x1a33   :  { %v5202_v47 = vpop.eup %5201 }
0x1a34   :  { %v3851_v16 = vmul.f32 %v5202_v47, %v3677_v10 }
0x1a97   :  { %v3854_v33 = vpop.permute.xlu1 %3853 }
0x1a98   :  { %v3856_v17 = vmul.f32 %v5202_v47, %v3854_v33 }
0x1a9a   :  { %3858 = vrot.lane.b32.xlu0 %v3856_v17, %s5409_s1 }
0x1a9b   :  { %v1036_v57 = vpop.permute.xlu1 %1035 }
0x1a9c   :  { %v1038_v35 = vmul.f32 %v1036_v57, %v5825_v55  ;;  %v1502_v20 = vmul.f32 %v5894_v3, %v1036_v57  ;;  %v1959_v55 = vmul.f32 %v5963_v15, %v1036_v57  ;;  %v2416_v3 = vmul.f32 %v6032_v25, %v1036_v57 }
0x1a9d   :  { %v2873_v23 = vmul.f32 %v6110_v36, %v1036_v57  ;;  %v3684_v25 = vmul.f32 %v3683_v21, %v1036_v57  ;;  %v3330_v31 = vmul.f32 %v6181_v39, %v1036_v57 }
0x1a9e   :  { %1040 = vrot.lane.b32.xlu0 %v1038_v35, %s5409_s1 }
0x1aa2   :  { %1504 = vrot.lane.b32.xlu0 %v1502_v20, %s5409_s1 }
0x1b0c   :  { %v3859_v38 = vpop.permute.xlu0 %3858 }
0x1b0d   :  { %v3861_v37 = vadd.f32 %v3859_v38, %v3851_v16 }
0x1b0f   :  { %5203 = vtanh.f32 %v3861_v37 }
0x1b10   :  { %v1041_v13 = vpop.permute.xlu0 %1040 }
0x1b11   :  { %v1043_v6 = vsel %vm166_vm1, %v1041_v13, 0.0 }
0x1b12   :  { %1044 = vadd.xlane.f32.xlu1 %v1043_v6 }
0x1b14   :  { %v1505_v27 = vpop.permute.xlu0 %1504 }
0x1b15   :  { %v1507_v43 = vsel %vm166_vm1, %v1505_v27, 0.0 }
0x1b16   :  { %1508 = vadd.xlane.f32.xlu0 %v1507_v43 }
0x1b19   :  { %v5204_v45 = vpop.eup %5203 }
0x1b23   :  { %3864 = vrot.lane.b32.xlu1 %v5204_v45, %s5410_s13  ;;  %s5412_s13 = smov 1  }
0x1b2c   :  { %1961 = vrot.lane.b32.xlu0 %v1959_v55, %s5409_s1 }
0x1b30   :  { %2418 = vrot.lane.b32.xlu0 %v2416_v3, %s5409_s1 }
0x1b9f   :  { %v6247_v49 = vpop.xlane.xlu1 %1044 }
0x1ba3   :  { %v1509_v44 = vpop.xlane.xlu0 %1508  ;;  %v3865_v15 = vpop.permute.xlu1 %3864 }
0x1ba4   :  { %v3867_v51 = vmul.f32 %v5202_v47, %v3865_v15  ;;  %v1510_v63 = vadd.f32 %v6262_v58, %v1509_v44 }
0x1ba6   :  { %v3868_v52 = vmul.f32 %v3867_v51, %v1036_v57 }
0x1ba7   :  { %v1962_v48 = vpop.permute.xlu0 %1961 }
0x1ba8   :  { %v1964_v19 = vsel %vm166_vm1, %v1962_v48, 0.0 }
0x1ba9   :  { %1965 = vadd.xlane.f32.xlu1 %v1964_v19 }
0x1bab   :  { %v2419_v56 = vpop.permute.xlu0 %2418 }
0x1bac   :  { %v2421_v28 = vsel %vm166_vm1, %v2419_v56, 0.0 }
0x1bad   :  { %2422 = vadd.xlane.f32.xlu0 %v2421_v28 }
0x1bba   :  { %2875 = vrot.lane.b32.xlu1 %v2873_v23, %s5409_s1 }
0x1bbe   :  { %3686 = vrot.lane.b32.xlu1 %v3684_v25, %s5409_s1 }
0x1bc2   :  { %3870 = vrot.lane.b32.xlu1 %v3868_v52, %s5409_s1 }
0x1bc3   :  { %3332 = vrot.lane.b32.xlu0 %v3330_v31, %s5409_s1 }
0x1c36   :  { %v1966_v54 = vpop.xlane.xlu1 %1965 }
0x1c37   :  { %v1967_v4 = vadd.f32 %v6262_v58, %v1966_v54 }
0x1c3a   :  { %v2423_v11 = vpop.xlane.xlu0 %2422  ;;  %v2876_v32 = vpop.permute.xlu1 %2875 }
0x1c3b   :  { %v2878_v40 = vsel %vm166_vm1, %v2876_v32, 0.0  ;;  %v2424_v46 = vadd.f32 %v6262_v58, %v2423_v11 }
0x1c3c   :  { %2879 = vadd.xlane.f32.xlu1 %v2878_v40 }
0x1c3e   :  { %v3333_v36 = vpop.permute.xlu0 %3332  ;;  %v3687_v34 = vpop.permute.xlu1 %3686 }
0x1c3f   :  { %v3335_v60 = vsel %vm166_vm1, %v3333_v36, 0.0  ;;  %v3689_v62 = vsel %vm166_vm1, %v3687_v34, 0.0 }
0x1c40   :  { %3336 = vadd.xlane.f32.xlu0 %v3335_v60 }
0x1c42   :  { %v3871_v61 = vpop.permute.xlu1 %3870 }
0x1c43   :  { %v3873_v39 = vsel %vm166_vm1, %v3871_v61, 0.0 }
0x1c44   :  { %3690 = vadd.xlane.f32.xlu0 %v3689_v62  ;;  %3874 = vadd.xlane.f32.xlu1 %v3873_v39 }
0x1c55   :  { %3888 = vrot.lane.b32.xlu1 %v6214_v50, %s5411_s11 }
0x1c59   :  { %3894 = vrot.lane.b32.xlu1 %v3867_v51, %s5409_s1  ;;  %s5415_s1 = smov 4  }
0x1c5a   :  { %3880 = vrot.lane.b32.xlu0 %v6165_v8, %s5411_s11 }
0x1c5d   :  { %3906 = vrot.lane.b32.xlu1 %v1510_v63, %s5412_s13 }
0x1c5e   :  { %3900 = vrot.lane.b32.xlu0 %v3861_v37, %s5411_s11 }
0x1c61   :  { %3914 = vrot.lane.b32.xlu1 %v2424_v46, %s5413_s2 }
0x1c62   :  { %3910 = vrot.lane.b32.xlu0 %v1967_v4, %s5414_s24 }
0x1cc9   :  { %v2880_v5 = vpop.xlane.xlu1 %2879 }
0x1cca   :  { %v2881_v50 = vadd.f32 %v6262_v58, %v2880_v5 }
0x1ccc   :  { %3918 = vrot.lane.b32.xlu0 %v2881_v50, %s5415_s1 }
0x1ccd   :  { %v3337_v8 = vpop.xlane.xlu0 %3336 }
0x1cce   :  { %v3338_v9 = vadd.f32 %v6262_v58, %v3337_v8 }
0x1cd0   :  { %3922 = vrot.lane.b32.xlu1 %v3338_v9, %s5416_s17 }
0x1cd1   :  { %v3691_v53 = vpop.xlane.xlu0 %3690  ;;  %v3875_v10 = vpop.xlane.xlu1 %3874 }
0x1cd2   :  { %v3692_v59 = vadd.f32 %v6262_v58, %v3691_v53  ;;  %v3876_v14 = vadd.f32 %v6262_v58, %v3875_v10 }
0x1cd4   :  { %3926 = vrot.lane.b32.xlu0 %v3692_v59, %s5417_s10  ;;  %3930 = vrot.lane.b32.xlu1 %v3876_v14, %s5418_s0 }
0x1cd5   :  { %v3881_v41 = vpop.permute.xlu0 %3880  ;;  %v3889_v18 = vpop.permute.xlu1 %3888 }
0x1cd6   :  { %3883 = vst.msk [vmem:[#allocation15] sm:$0xff] %vm166_vm1, %v3881_v41  ;;  %3892 = vst.msk [vmem:[#allocation15 + $0x8] sm:$0xff] %vm166_vm1, %v3889_v18 }
0x1cd9   :  { %v3901_v0 = vpop.permute.xlu0 %3900  ;;  %v3895_v21 = vpop.permute.xlu1 %3894 }
0x1cda   :  { %3904 = vst.msk [vmem:[#allocation15 + $0x10] sm:$0xff] %vm166_vm1, %v3901_v0  ;;  %3898 = vst.msk [vmem:[#allocation14 + $0x10] sm:$0xff] %vm166_vm1, %v3895_v21 }
0x1cdb   :  { %5352 = shalt.err (!%p5349_p10)
}
0x1cdc   :  { %s5353_s5 = scalar_lea.hbm %s6335_s15, 384 }
0x1cdd   :  { %p5354_p11 = scmp.ne.s32.totalorder %s6335_s15, %s5353_s5  ;;  %p5357_p12 = scmp.lt.u32.totalorder %s5353_s5, %s6335_s15 }
0x1cdf   :  { %p5359_p13 = pnand %p5357_p12, %p5354_p11 }
0x1ce1   :  { %5362 = shalt.err (!%p5359_p13)
}
0x1ce2   :  { %3962 = dma.vmem_to_hbm [thread:$0]  %s3957_s26, 384, %s6335_s15, [#allocation5], %s5399_s19, %s5399_s19, %s5400_s20  }
0x1ce3   :  { %s5363_s3 = scalar_lea.vmem %s6276_s18, 384  ;;  %p5368_p1 = scmp.lt.s32.totalorder %s6276_s18, %s6276_s18 }
0x1ce4   :  { %p5364_p0 = scmp.ne.s32.totalorder %s6276_s18, %s5363_s3  ;;  %p5369_p2 = scmp.lt.s32.totalorder %s5363_s3, %s5363_s3 }
0x1ce6   :  { %p5370_p3 = por %p5369_p2, %p5368_p1 }
0x1ce8   :  { %p5371_p4 = pnand %p5370_p3, %p5364_p0 }
0x1cea   :  { %5374 = shalt.err (!%p5371_p4)
}
0x1ceb   :  { %s5375_s8 = scalar_lea.hbm %s6336_s16, 384 }
0x1cec   :  { %p5376_p5 = scmp.ne.s32.totalorder %s6336_s16, %s5375_s8  ;;  %p5379_p6 = scmp.lt.u32.totalorder %s5375_s8, %s6336_s16 }
0x1cee   :  { %p5381_p7 = pnand %p5379_p6, %p5376_p5 }
0x1cf0   :  { %5384 = shalt.err (!%p5381_p7)
}
0x1cf1   :  { %3974 = dma.vmem_to_hbm [thread:$0]  %s6276_s18, 384, %s6336_s16, [#allocation16], %s5399_s19, %s5399_s19, %s5400_s20   ;;  %v3907_v22 = vpop.permute.xlu1 %3906  ;;  %vm3933_vm2 = vcmask 7168   ;;  %v1053_v24 = vadd.f32 %v6262_v58, %v6247_v49  ;;  %v3911_v26 = vpop.permute.xlu0 %3910  ;;  %vm3935_vm3 = vcmask 15360   ;;  %vm3937_vm4 = vcmask 23552  }
0x1cf2   :  { %vm3939_vm5 = vcmask 31744   ;;  %vm3941_vm6 = vcmask 39936   ;;  %vm3943_vm7 = vcmask 48128   ;;  %vm3945_vm8 = vcmask 56320  }
0x1cf3   :  { %v3934_v7 = vsel %vm3933_vm2, %v1053_v24, %v3907_v22  ;;  %vm3947_vm9 = vcmask 64512  }
0x1cf4   :  { %v3936_v2 = vsel %vm3935_vm3, %v3934_v7, %v3911_v26 }
0x1cf5   :  { %v3915_v29 = vpop.permute.xlu1 %3914 }
0x1cf6   :  { %v3938_v1 = vsel %vm3937_vm4, %v3936_v2, %v3915_v29 }
0x1d3e   :  { %v3919_v12 = vpop.permute.xlu0 %3918 }
0x1d3f   :  { %v3940_v42 = vsel %vm3939_vm5, %v3938_v1, %v3919_v12 }
0x1d42   :  { %v3923_v30 = vpop.permute.xlu1 %3922 }
0x1d43   :  { %v3942_v47 = vsel %vm3941_vm6, %v3940_v42, %v3923_v30 }
0x1d46   :  { %v3927_v33 = vpop.permute.xlu0 %3926  ;;  %v3931_v17 = vpop.permute.xlu1 %3930 }
0x1d47   :  { %v3944_v57 = vsel %vm3943_vm7, %v3942_v47, %v3927_v33 }
0x1d48   :  { %v3946_v35 = vsel %vm3945_vm8, %v3944_v57, %v3931_v17 }
0x1d49   :  { %3948 = vst.msk [vmem:[%s6334_s14] sm:$0xff] %vm3947_vm9, %v3946_v35 }
0x1d4a   :  { %5393 = dma.done.wait [#allocation5], 384  }
0x1d4b   :  { %5394 = vsyncadd [#allocation5], 4294966912 }
0x1d4c   :  { %5395 = dma.done.wait [#allocation16], 384  }
0x1d4d   :  { %5396 = vsyncadd [#allocation16], 4294966912 }
0x1d4e   :  { %3983 = vsyncpa [#allocation4], 1 }
0x1d4f   :  { %3984 = vsyncpa [#allocation7], 1 }
0x1d50   :  { %3985 = vsyncpa [#allocation10], 1 }
0x1d51   :  { %3986 = vsyncpa [#allocation13], 1 }
0x1d52   :  { %3987 = vsyncpa [#allocation5], 1 }
0x1d53   :  { %3988 = vsyncpa [#allocation16], 1 }

</bundles_post_ra>
